<compile_context>
chip_gen: v6e
topology: v6e:2x2x1
jax: 0.10.0
libtpu: 0.0.40
codegen_flags: <defaults>
</compile_context>

<pallas_src>
import functools

import jax
import jax.numpy as jnp
from jax.experimental import pallas as pl
from jax.experimental.pallas import tpu as pltpu


def _mm_dtype(cin):
    # Feed the MXU in bf16 (f32 accumulation); keep tiny contraction dims f32.
    return jnp.bfloat16 if cin >= 8 else jnp.float32


def _pick_tile(n, cap=1024):
    """Largest N tile <= cap that divides n (whole N for n <= cap)."""
    if n <= cap:
        return n
    for t in range(cap, 0, -1):
        if n % t == 0:
            return t
    return n


def _mosaic_params(semantics, block_bytes, scratch_bytes=0):
    """CompilerParams with a VMEM limit derived from the actual footprint."""
    est = 2 * block_bytes + scratch_bytes + (8 << 20)   # x2: double buffering
    limit = int(min(max(est, 32 << 20), 64 << 20))      # stay v7x-safe
    return pltpu.CompilerParams(dimension_semantics=semantics,
                                vmem_limit_bytes=limit)


# ----------------------------------------------------------------------------
# Pallas kernels
# ----------------------------------------------------------------------------
def _edgeconv_kernel(idx_ref, x_ref, w_ref, shift_ref, out_ref,
                     p_sc, r_sc, y_sc, *, k, n, cout):
    """Fused EdgeConv: projection + neighbor gather + max over K + LeakyReLU.

    idx_ref   : (B*N*k,) int32 SMEM (scalar prefetch) -- flat kNN indices
    x_ref     : (1, N, Cin)   bf16/f32 points / features
    w_ref     : (Cin, 2*Cout) bf16/f32 [Wn | Wc] with BN scale folded in
    shift_ref : (1, Cout)     f32 folded BN shift
    out_ref   : (1, N, Cout)  bf16
    p_sc/r_sc/y_sc : (N, Cout) f32 VMEM scratch
    """
    b = pl.program_id(0)

    # Projection for all N points in one MXU pass (f32 accumulation).
    pr = jnp.dot(x_ref[0], w_ref[...], preferred_element_type=jnp.float32)
    p_sc[...] = pr[:, :cout]                       # neighbor term (gathered below)
    r_sc[...] = pr[:, cout:] + shift_ref[...]      # center term + BN shift

    base = b * (n * k)

    def process(start, count):
        # max over K of the gathered neighbor projections for `count` points.
        rows = []
        for i in range(count):
            off = base + (start + i) * k
            acc = p_sc[pl.ds(idx_ref[off], 1), :]
            for kk in range(1, k):
                acc = jnp.maximum(acc, p_sc[pl.ds(idx_ref[off + kk], 1), :])
            rows.append(acc)
        m = rows[0] if count == 1 else jnp.concatenate(rows, axis=0)
        # LeakyReLU is monotone and r/shift are constant over K, so adding r
        # and applying the activation once after the max is exact.
        y = m + r_sc[pl.ds(start, count), :]
        y_sc[pl.ds(start, count), :] = jnp.where(y > 0.0, y, 0.2 * y)

    n_grp = n // 8
    if n_grp > 0:
        @pl.loop(0, n_grp)
        def _(g):
            process(pl.multiple_of(g * 8, 8), 8)   # 8 points / iteration
    if n % 8:
        process(n_grp * 8, n % 8)                  # static tail

    # Single lane-dense store (and single f32 -> bf16 cast) for the block.
    out_ref[0, :, :] = y_sc[...].astype(out_ref.dtype)


def _conv5_pool_kernel(x1_ref, x2_ref, x3_ref, x4_ref,
                       w1_ref, w2_ref, w3_ref, w4_ref,
                       scale_ref, shift_ref, out_ref,
                       max_sc, sum_sc, *, inv_n):
    """Fused concat(x1..x4) + conv5 + BN + LeakyReLU + max/avg pool over N."""
    n = pl.program_id(1)
    y = jnp.dot(x1_ref[0], w1_ref[...], preferred_element_type=jnp.float32)
    y = y + jnp.dot(x2_ref[0], w2_ref[...], preferred_element_type=jnp.float32)
    y = y + jnp.dot(x3_ref[0], w3_ref[...], preferred_element_type=jnp.float32)
    y = y + jnp.dot(x4_ref[0], w4_ref[...], preferred_element_type=jnp.float32)
    y = y * scale_ref[...] + shift_ref[...]
    y = jnp.where(y > 0.0, y, 0.2 * y)                       # (TN, E) f32

    tile_max = jnp.max(y, axis=0, keepdims=True)             # (1, E)
    tile_sum = jnp.sum(y, axis=0, keepdims=True)             # (1, E)

    @pl.when(n == 0)
    def _():
        max_sc[...] = tile_max
        sum_sc[...] = tile_sum

    @pl.when(n > 0)
    def _():
        max_sc[...] = jnp.maximum(max_sc[...], tile_max)
        sum_sc[...] = sum_sc[...] + tile_sum

    @pl.when(n == pl.num_programs(1) - 1)
    def _():
        out_ref[...] = jnp.concatenate(
            [max_sc[...], sum_sc[...] * inv_n], axis=-1)[None]


def _head_kernel(f_ref, w1_ref, s6_ref, b6_ref, w2_ref, s7_ref, b7_ref,
                 w3_ref, bias3_ref, out_ref):
    """MLP head: linear1(no bias)+bn6+lrelu, linear2+bn7+lrelu, linear3."""
    h = jnp.dot(f_ref[...], w1_ref[...], preferred_element_type=jnp.float32)
    h = h * s6_ref[...] + b6_ref[...]
    h = jnp.where(h > 0, h, 0.2 * h)
    # TODO(synk): dp1 (Dropout) is identity in eval mode.
    h = jnp.dot(h, w2_ref[...], preferred_element_type=jnp.float32)
    h = h * s7_ref[...] + b7_ref[...]              # linear2 bias folded into b7
    h = jnp.where(h > 0, h, 0.2 * h)
    # TODO(synk): dp2 (Dropout) is identity in eval mode.
    out_ref[...] = jnp.dot(h, w3_ref[...],
                           preferred_element_type=jnp.float32) + bias3_ref[...]


# ----------------------------------------------------------------------------
# Pallas wrappers
# ----------------------------------------------------------------------------
def edgeconv(x, w, scale, shift, k):
    """One EdgeConv layer.  x: (B, N, Cin), w: (2*Cin, Cout) -> (B, N, Cout) bf16."""
    B, N, Cin = x.shape
    Cout = w.shape[1]

    # kNN (pairwise distances + top_k) stays in plain JAX.
    # TODO(synk): jax.lax.approx_max_k would be faster at large N but changes
    # which neighbors are selected, so exact lax.top_k is kept.
    idx = knn_idx(x.astype(jnp.float32), k)                  # (B, N, k) int32
    idx_flat = idx.reshape(B * N * k).astype(jnp.int32)      # flat 1-D -> SMEM

    # W-split with the folded BN scale, concatenated into a single MXU weight.
    mmd = _mm_dtype(Cin)
    wn = w[:Cin, :] * scale
    wc = (w[Cin:, :] - w[:Cin, :]) * scale
    w_cat = jnp.concatenate([wn, wc], axis=1).astype(mmd)    # (Cin, 2*Cout)
    x_in = x.astype(mmd)                                     # cast in wrapper

    esize = jnp.dtype(mmd).itemsize
    block_bytes = (N * Cin * esize + Cin * 2 * Cout * esize
                   + Cout * 4 + N * Cout * 2)
    scratch_bytes = 3 * N * Cout * 4

    kernel = functools.partial(_edgeconv_kernel, k=k, n=N, cout=Cout)
    return pl.pallas_call(
        kernel,
        out_shape=jax.ShapeDtypeStruct((B, N, Cout), jnp.bfloat16),
        grid_spec=pltpu.PrefetchScalarGridSpec(
            num_scalar_prefetch=1,                 # idx_flat lands in SMEM
            grid=(B,),
            in_specs=[
                pl.BlockSpec((1, N, Cin), lambda b, idx: (b, 0, 0)),
                pl.BlockSpec((Cin, 2 * Cout), lambda b, idx: (0, 0)),
                pl.BlockSpec((1, Cout), lambda b, idx: (0, 0)),
            ],
            out_specs=pl.BlockSpec((1, N, Cout), lambda b, idx: (b, 0, 0)),
            scratch_shapes=[pltpu.VMEM((N, Cout), jnp.float32)] * 3,
        ),
        compiler_params=_mosaic_params(("parallel",), block_bytes, scratch_bytes),
    )(idx_flat, x_in, w_cat, shift)


def conv5_pool(x1, x2, x3, x4, w, scale, shift):
    """Fused concat + conv5 + BN + LeakyReLU + max/avg pool: -> (B, 2E) f32."""
    B, N, c1 = x1.shape
    c2, c3, c4 = x2.shape[2], x3.shape[2], x4.shape[2]
    E = w.shape[1]
    tn = _pick_tile(N)
    nN = N // tn
    wb = w.astype(jnp.bfloat16)
    w1 = wb[:c1]
    w2 = wb[c1:c1 + c2]
    w3 = wb[c1 + c2:c1 + c2 + c3]
    w4 = wb[c1 + c2 + c3:]
    cs = c1 + c2 + c3 + c4
    block_bytes = tn * cs * 2 + cs * E * 2 + 2 * E * 4 + 2 * E * 4
    kernel = functools.partial(_conv5_pool_kernel, inv_n=1.0 / N)
    out = pl.pallas_call(
        kernel,
        out_shape=jax.ShapeDtypeStruct((B, 1, 2 * E), jnp.float32),
        grid_spec=pltpu.PrefetchScalarGridSpec(
            num_scalar_prefetch=0,
            grid=(B, nN),
            in_specs=[
                pl.BlockSpec((1, tn, c1), lambda b, n: (b, n, 0)),
                pl.BlockSpec((1, tn, c2), lambda b, n: (b, n, 0)),
                pl.BlockSpec((1, tn, c3), lambda b, n: (b, n, 0)),
                pl.BlockSpec((1, tn, c4), lambda b, n: (b, n, 0)),
                pl.BlockSpec((c1, E), lambda b, n: (0, 0)),
                pl.BlockSpec((c2, E), lambda b, n: (0, 0)),
                pl.BlockSpec((c3, E), lambda b, n: (0, 0)),
                pl.BlockSpec((c4, E), lambda b, n: (0, 0)),
                pl.BlockSpec((1, E), lambda b, n: (0, 0)),
                pl.BlockSpec((1, E), lambda b, n: (0, 0)),
            ],
            out_specs=pl.BlockSpec((1, 1, 2 * E), lambda b, n: (b, 0, 0)),
            scratch_shapes=[pltpu.VMEM((1, E), jnp.float32),
                            pltpu.VMEM((1, E), jnp.float32)],
        ),
        compiler_params=_mosaic_params(("parallel", "arbitrary"),
                                       block_bytes, 2 * E * 4),
    )(x1, x2, x3, x4, w1, w2, w3, w4, scale, shift)
    return out.reshape(B, 2 * E)


def head(feat, w1, s6, b6, w2, bias2, s7, b7, w3, bias3):
    """feat: (B, 2E) f32 -> logits (B, output_channels)."""
    b7_folded = s7 * bias2 + b7            # fold linear2 bias into bn7 shift
    vm = pl.BlockSpec(memory_space=pltpu.MemorySpace.VMEM)
    return pl.pallas_call(
        _head_kernel,
        out_shape=jax.ShapeDtypeStruct((feat.shape[0], w3.shape[1]), jnp.float32),
        in_specs=[vm] * 9,
        out_specs=vm,
    )(feat, w1, s6, b6, w2, s7, b7_folded, w3, bias3)


# ----------------------------------------------------------------------------
# JAX glue: kNN index computation (top_k)
# ----------------------------------------------------------------------------
def knn_idx(x_nc, k):
    """x_nc: (B, N, C) f32 -> neighbor indices (B, N, k) (nearest, incl. self).

    Score = 2*x_i.x_j - ||x_j||^2; the row-constant -||x_i||^2 term of the
    reference pairwise distance is dropped (identical per-row top-k order).
    """
    dots = jnp.einsum("bnc,bmc->bnm", x_nc, x_nc)
    sq = jnp.sum(x_nc * x_nc, axis=-1)
    return jax.lax.top_k(2.0 * dots - sq[:, None, :], k)[1]


# ----------------------------------------------------------------------------
# Full forward
# ----------------------------------------------------------------------------
def dgcnn_forward(x, params, k, with_intermediates=False):
    """x: (B, 3, N)  ->  (logits (B, 40), feat (B, 2*emb_dims))."""
    x_nc = jnp.transpose(x, (0, 2, 1))                     # (B, N, 3) f32
    x1 = edgeconv(x_nc, *params["c1"], k=k)                # (B, N, 64)  bf16
    x2 = edgeconv(x1, *params["c2"], k=k)                  # (B, N, 64)  bf16
    x3 = edgeconv(x2, *params["c3"], k=k)                  # (B, N, 128) bf16
    x4 = edgeconv(x3, *params["c4"], k=k)                  # (B, N, 256) bf16
    feat = conv5_pool(x1, x2, x3, x4, *params["c5"])       # (B, 2E) f32
    logits = head(feat, *params["head"])                   # (B, 40) f32
    if with_intermediates:
        return logits, feat, (x1, x2, x3, x4)
    return logits, feat


# ----------------------------------------------------------------------------
# Plain-JAX reference (mirrors the kernel's bf16 casting) for validation
# ----------------------------------------------------------------------------
_HI = jax.lax.Precision.HIGHEST


def _ref_edgeconv(x, w, scale, shift, k):
    B, N, Cin = x.shape
    idx = knn_idx(x.astype(jnp.float32), k)
    mmd = _mm_dtype(Cin)
    wn = (w[:Cin] * scale).astype(mmd)
    wc = ((w[Cin:] - w[:Cin]) * scale).astype(mmd)
    xm = x.astype(mmd)
    p = jnp.einsum("bnc,cd->bnd", xm, wn,
                   preferred_element_type=jnp.float32, precision=_HI)
    r = jnp.einsum("bnc,cd->bnd", xm, wc,
                   preferred_element_type=jnp.float32, precision=_HI) + shift
    pj = jax.vmap(lambda pb, ib: pb[ib])(p, idx)           # (B, N, k, Cout)
    y = pj.max(axis=2) + r
    return jnp.where(y > 0.0, y, 0.2 * y).astype(jnp.bfloat16)


def _ref_conv5_pool(x1, x2, x3, x4, w, scale, shift):
    xc = jnp.concatenate([x1, x2, x3, x4], axis=-1)
    y = jnp.einsum("bnc,cd->bnd", xc, w.astype(jnp.bfloat16),
                   preferred_element_type=jnp.float32, precision=_HI)
    y = y * scale + shift
    y = jnp.where(y > 0.0, y, 0.2 * y)
    return jnp.concatenate([y.max(axis=1), y.mean(axis=1)], axis=-1)


def _ref_head(feat, w1, s6, b6, w2, bias2, s7, b7, w3, bias3):
    h = jnp.dot(feat, w1, precision=_HI) * s6 + b6
    h = jnp.where(h > 0, h, 0.2 * h)
    h = (jnp.dot(h, w2, precision=_HI) + bias2) * s7 + b7
    h = jnp.where(h > 0, h, 0.2 * h)
    return jnp.dot(h, w3, precision=_HI) + bias3


# ----------------------------------------------------------------------------
# Deterministic synthetic parameters
# ----------------------------------------------------------------------------
def _conv_bn_params(key, cin, cout):
    kw, kg, kb, km, kv = jax.random.split(key, 5)
    w = jax.random.normal(kw, (cin, cout), jnp.float32) / jnp.sqrt(float(cin))
    gamma = jax.random.uniform(kg, (cout,), jnp.float32, 0.5, 1.5)
    beta = jax.random.normal(kb, (cout,), jnp.float32) * 0.1
    mean = jax.random.normal(km, (cout,), jnp.float32) * 0.1
    var = jax.random.uniform(kv, (cout,), jnp.float32, 0.5, 1.5)
    scale = gamma / jnp.sqrt(var + 1e-5)
    shift = beta - mean * scale
    return w, scale.reshape(1, cout), shift.reshape(1, cout)


def make_params(key, emb_dims, output_channels=40):
    ks = jax.random.split(key, 8)
    p = {
        "c1": _conv_bn_params(ks[0], 6, 64),
        "c2": _conv_bn_params(ks[1], 128, 64),
        "c3": _conv_bn_params(ks[2], 128, 128),
        "c4": _conv_bn_params(ks[3], 256, 256),
        "c5": _conv_bn_params(ks[4], 512, emb_dims),
    }
    w1, s6, b6 = _conv_bn_params(ks[5], 2 * emb_dims, 512)   # linear1 (no bias)+bn6
    w2, s7, b7 = _conv_bn_params(ks[6], 512, 256)            # linear2 + bn7
    k2b, k3w, k3b = jax.random.split(ks[7], 3)
    bias2 = jax.random.normal(k2b, (1, 256), jnp.float32) * 0.1
    w3 = jax.random.normal(k3w, (256, output_channels), jnp.float32) / 16.0
    bias3 = jax.random.normal(k3b, (1, output_channels), jnp.float32) * 0.1
    p["head"] = (w1, s6, b6, w2, bias2, s7, b7, w3, bias3)
    return p


# ----------------------------------------------------------------------------
if __name__ == "__main__":
    B, N, K, EMB = 2, 16, 4, 64          # small shapes; args: k=4, emb_dims=64
    key = jax.random.PRNGKey(0)
    kx, kp = jax.random.split(key)

    x = jax.random.normal(kx, (B, 3, N), jnp.float32)    # point cloud (B, 3, N)
    params = make_params(kp, emb_dims=EMB, output_channels=40)

    fwd = jax.jit(functools.partial(dgcnn_forward, k=K, with_intermediates=True))
    logits, feat, (x1, x2, x3, x4) = fwd(x, params)
    jax.block_until_ready((logits, feat, x1, x2, x3, x4))

    assert logits.shape == (B, 40) and feat.shape == (B, 2 * EMB)

    # Stage-wise check: each reference stage consumes the *kernel's* input for
    # that stage (same kNN indices, mirrored bf16 casts), isolating the Pallas
    # kernels from bf16/rounding drift of the preceding stages.
    def close(a, b, tol=2e-2):
        return bool(jnp.allclose(jnp.asarray(a, jnp.float32),
                                 jnp.asarray(b, jnp.float32),
                                 rtol=tol, atol=tol))

    x_nc = jnp.transpose(x, (0, 2, 1))
    assert close(x1, _ref_edgeconv(x_nc, *params["c1"], K))
    assert close(x2, _ref_edgeconv(x1, *params["c2"], K))
    assert close(x3, _ref_edgeconv(x2, *params["c3"], K))
    assert close(x4, _ref_edgeconv(x3, *params["c4"], K))
    assert close(feat, _ref_conv5_pool(x1, x2, x3, x4, *params["c5"]))
    assert close(logits, _ref_head(feat, *params["head"]))
    print("KERNEL_OK")
</pallas_src>

<mosaic_0001>
module attributes {stable_mosaic.version = 11 : i64} {
  func.func @_edgeconv_kernel(%arg0: i32, %arg1: memref<128xi32, #tpu.memory_space<smem>>, %arg2: memref<1x16x64xbf16, #tpu.memory_space<vmem>>, %arg3: memref<64x128xbf16, #tpu.memory_space<vmem>>, %arg4: memref<1x64xf32, #tpu.memory_space<vmem>>, %arg5: memref<1x16x64xbf16, #tpu.memory_space<vmem>>, %arg6: memref<16x64xf32, #tpu.memory_space<vmem>>, %arg7: memref<16x64xf32, #tpu.memory_space<vmem>>, %arg8: memref<16x64xf32, #tpu.memory_space<vmem>>) attributes {dimension_semantics = [#tpu.dimension_semantics<parallel>], iteration_bounds = array<i64: 2>, scalar_prefetch = 1 : i64, scratch_operands = 3 : i64, tpu.core_type = #tpu.core_type<tc>, window_params = [{transform_indices = @transform_0, window_bounds = array<i64: 1, 16, 64>}, {pipeline_mode = #tpu.pipeline_mode<synchronous>, transform_indices = @transform_1, window_bounds = array<i64: 64, 128>}, {pipeline_mode = #tpu.pipeline_mode<synchronous>, transform_indices = @transform_2, window_bounds = array<i64: 1, 64>}, {transform_indices = @transform_3, window_bounds = array<i64: 1, 16, 64>}]} {
    %c0 = arith.constant 0 : index
    %c0_0 = arith.constant 0 : index
    %c0_1 = arith.constant 0 : index
    %0 = vector.load %arg2[%c0, %c0_0, %c0_1] : memref<1x16x64xbf16, #tpu.memory_space<vmem>>, vector<1x16x64xbf16>
    %1 = vector.shape_cast %0 : vector<1x16x64xbf16> to vector<16x64xbf16>
    %c0_2 = arith.constant 0 : index
    %c0_3 = arith.constant 0 : index
    %2 = vector.load %arg3[%c0_2, %c0_3] : memref<64x128xbf16, #tpu.memory_space<vmem>>, vector<64x128xbf16>
    %cst = arith.constant dense<0.000000e+00> : vector<16x128xf32>
    %3 = tpu.matmul %1, %2, %cst {dimension_numbers = #tpu.dot_dimension_numbers<[1], [0], [0], [1], [0, 0, 1, 1], [], []>} : vector<16x64xbf16>, vector<64x128xbf16>, vector<16x128xf32> -> vector<16x128xf32>
    %4 = vector.extract_strided_slice %3 {offsets = [0, 0], sizes = [16, 64], strides = [1, 1]} : vector<16x128xf32> to vector<16x64xf32>
    %c0_4 = arith.constant 0 : index
    %c0_5 = arith.constant 0 : index
    %5 = vector.load %arg6[%c0_4, %c0_5] : memref<16x64xf32, #tpu.memory_space<vmem>>, vector<16x64xf32>
    tpu.vector_store %arg6[%c0_4, %c0_5], %4 {strides = array<i32>} : memref<16x64xf32, #tpu.memory_space<vmem>>, vector<16x64xf32>,
    %6 = vector.extract_strided_slice %3 {offsets = [0, 64], sizes = [16, 64], strides = [1, 1]} : vector<16x128xf32> to vector<16x64xf32>
    %c0_6 = arith.constant 0 : index
    %c0_7 = arith.constant 0 : index
    %7 = vector.load %arg4[%c0_6, %c0_7] : memref<1x64xf32, #tpu.memory_space<vmem>>, vector<1x64xf32>
    %8 = vector.broadcast %7 : vector<1x64xf32> to vector<16x64xf32>
    %9 = arith.addf %6, %8 : vector<16x64xf32>
    %c0_8 = arith.constant 0 : index
    %c0_9 = arith.constant 0 : index
    %10 = vector.load %arg7[%c0_8, %c0_9] : memref<16x64xf32, #tpu.memory_space<vmem>>, vector<16x64xf32>
    tpu.vector_store %arg7[%c0_8, %c0_9], %9 {strides = array<i32>} : memref<16x64xf32, #tpu.memory_space<vmem>>, vector<16x64xf32>,
    %c64_i32 = arith.constant 64 : i32
    %11 = arith.muli %arg0, %c64_i32 : i32
    %c0_i32 = arith.constant 0 : i32
    %c2_i32 = arith.constant 2 : i32
    %12 = arith.addi %c0_i32, %c2_i32 : i32
    %c1_i32 = arith.constant 1 : i32
    scf.for %arg9 = %c0_i32 to %12 step %c1_i32  : i32 {
      %c1_i32_16 = arith.constant 1 : i32
      %18 = arith.muli %arg9, %c1_i32_16 : i32
      %c0_i32_17 = arith.constant 0 : i32
      %19 = arith.addi %c0_i32_17, %18 : i32
      %c8_i32 = arith.constant 8 : i32
      %20 = arith.muli %19, %c8_i32 : i32
      %21 = tpu.assume_multiple %20, 8 : i32
      %c0_i32_18 = arith.constant 0 : i32
      %22 = arith.addi %21, %c0_i32_18 : i32
      %c4_i32 = arith.constant 4 : i32
      %23 = arith.muli %22, %c4_i32 : i32
      %24 = arith.addi %11, %23 : i32
      %25 = arith.index_cast %24 : i32 to index
      %26 = memref.load %arg1[%25] : memref<128xi32, #tpu.memory_space<smem>>
      %27 = arith.index_cast %26 : i32 to index
      %c0_19 = arith.constant 0 : index
      %28 = vector.load %arg6[%27, %c0_19] : memref<16x64xf32, #tpu.memory_space<vmem>>, vector<1x64xf32>
      %c1_i32_20 = arith.constant 1 : i32
      %29 = arith.addi %24, %c1_i32_20 : i32
      %30 = arith.index_cast %29 : i32 to index
      %31 = memref.load %arg1[%30] : memref<128xi32, #tpu.memory_space<smem>>
      %32 = arith.index_cast %31 : i32 to index
      %c0_21 = arith.constant 0 : index
      %33 = vector.load %arg6[%32, %c0_21] : memref<16x64xf32, #tpu.memory_space<vmem>>, vector<1x64xf32>
      %34 = arith.maximumf %28, %33 : vector<1x64xf32>
      %c2_i32_22 = arith.constant 2 : i32
      %35 = arith.addi %24, %c2_i32_22 : i32
      %36 = arith.index_cast %35 : i32 to index
      %37 = memref.load %arg1[%36] : memref<128xi32, #tpu.memory_space<smem>>
      %38 = arith.index_cast %37 : i32 to index
      %c0_23 = arith.constant 0 : index
      %39 = vector.load %arg6[%38, %c0_23] : memref<16x64xf32, #tpu.memory_space<vmem>>, vector<1x64xf32>
      %40 = arith.maximumf %34, %39 : vector<1x64xf32>
      %c3_i32 = arith.constant 3 : i32
      %41 = arith.addi %24, %c3_i32 : i32
      %42 = arith.index_cast %41 : i32 to index
      %43 = memref.load %arg1[%42] : memref<128xi32, #tpu.memory_space<smem>>
      %44 = arith.index_cast %43 : i32 to index
      %c0_24 = arith.constant 0 : index
      %45 = vector.load %arg6[%44, %c0_24] : memref<16x64xf32, #tpu.memory_space<vmem>>, vector<1x64xf32>
      %46 = arith.maximumf %40, %45 : vector<1x64xf32>
      %c1_i32_25 = arith.constant 1 : i32
      %47 = arith.addi %21, %c1_i32_25 : i32
      %c4_i32_26 = arith.constant 4 : i32
      %48 = arith.muli %47, %c4_i32_26 : i32
      %49 = arith.addi %11, %48 : i32
      %50 = arith.index_cast %49 : i32 to index
      %51 = memref.load %arg1[%50] : memref<128xi32, #tpu.memory_space<smem>>
      %52 = arith.index_cast %51 : i32 to index
      %c0_27 = arith.constant 0 : index
      %53 = vector.load %arg6[%52, %c0_27] : memref<16x64xf32, #tpu.memory_space<vmem>>, vector<1x64xf32>
      %c1_i32_28 = arith.constant 1 : i32
      %54 = arith.addi %49, %c1_i32_28 : i32
      %55 = arith.index_cast %54 : i32 to index
      %56 = memref.load %arg1[%55] : memref<128xi32, #tpu.memory_space<smem>>
      %57 = arith.index_cast %56 : i32 to index
      %c0_29 = arith.constant 0 : index
      %58 = vector.load %arg6[%57, %c0_29] : memref<16x64xf32, #tpu.memory_space<vmem>>, vector<1x64xf32>
      %59 = arith.maximumf %53, %58 : vector<1x64xf32>
      %c2_i32_30 = arith.constant 2 : i32
      %60 = arith.addi %49, %c2_i32_30 : i32
      %61 = arith.index_cast %60 : i32 to index
      %62 = memref.load %arg1[%61] : memref<128xi32, #tpu.memory_space<smem>>
      %63 = arith.index_cast %62 : i32 to index
      %c0_31 = arith.constant 0 : index
      %64 = vector.load %arg6[%63, %c0_31] : memref<16x64xf32, #tpu.memory_space<vmem>>, vector<1x64xf32>
      %65 = arith.maximumf %59, %64 : vector<1x64xf32>
      %c3_i32_32 = arith.constant 3 : i32
      %66 = arith.addi %49, %c3_i32_32 : i32
      %67 = arith.index_cast %66 : i32 to index
      %68 = memref.load %arg1[%67] : memref<128xi32, #tpu.memory_space<smem>>
      %69 = arith.index_cast %68 : i32 to index
      %c0_33 = arith.constant 0 : index
      %70 = vector.load %arg6[%69, %c0_33] : memref<16x64xf32, #tpu.memory_space<vmem>>, vector<1x64xf32>
      %71 = arith.maximumf %65, %70 : vector<1x64xf32>
      %c2_i32_34 = arith.constant 2 : i32
      %72 = arith.addi %21, %c2_i32_34 : i32
      %c4_i32_35 = arith.constant 4 : i32
      %73 = arith.muli %72, %c4_i32_35 : i32
      %74 = arith.addi %11, %73 : i32
      %75 = arith.index_cast %74 : i32 to index
      %76 = memref.load %arg1[%75] : memref<128xi32, #tpu.memory_space<smem>>
      %77 = arith.index_cast %76 : i32 to index
      %c0_36 = arith.constant 0 : index
      %78 = vector.load %arg6[%77, %c0_36] : memref<16x64xf32, #tpu.memory_space<vmem>>, vector<1x64xf32>
      %c1_i32_37 = arith.constant 1 : i32
      %79 = arith.addi %74, %c1_i32_37 : i32
      %80 = arith.index_cast %79 : i32 to index
      %81 = memref.load %arg1[%80] : memref<128xi32, #tpu.memory_space<smem>>
      %82 = arith.index_cast %81 : i32 to index
      %c0_38 = arith.constant 0 : index
      %83 = vector.load %arg6[%82, %c0_38] : memref<16x64xf32, #tpu.memory_space<vmem>>, vector<1x64xf32>
      %84 = arith.maximumf %78, %83 : vector<1x64xf32>
      %c2_i32_39 = arith.constant 2 : i32
      %85 = arith.addi %74, %c2_i32_39 : i32
      %86 = arith.index_cast %85 : i32 to index
      %87 = memref.load %arg1[%86] : memref<128xi32, #tpu.memory_space<smem>>
      %88 = arith.index_cast %87 : i32 to index
      %c0_40 = arith.constant 0 : index
      %89 = vector.load %arg6[%88, %c0_40] : memref<16x64xf32, #tpu.memory_space<vmem>>, vector<1x64xf32>
      %90 = arith.maximumf %84, %89 : vector<1x64xf32>
      %c3_i32_41 = arith.constant 3 : i32
      %91 = arith.addi %74, %c3_i32_41 : i32
      %92 = arith.index_cast %91 : i32 to index
      %93 = memref.load %arg1[%92] : memref<128xi32, #tpu.memory_space<smem>>
      %94 = arith.index_cast %93 : i32 to index
      %c0_42 = arith.constant 0 : index
      %95 = vector.load %arg6[%94, %c0_42] : memref<16x64xf32, #tpu.memory_space<vmem>>, vector<1x64xf32>
      %96 = arith.maximumf %90, %95 : vector<1x64xf32>
      %c3_i32_43 = arith.constant 3 : i32
      %97 = arith.addi %21, %c3_i32_43 : i32
      %c4_i32_44 = arith.constant 4 : i32
      %98 = arith.muli %97, %c4_i32_44 : i32
      %99 = arith.addi %11, %98 : i32
      %100 = arith.index_cast %99 : i32 to index
      %101 = memref.load %arg1[%100] : memref<128xi32, #tpu.memory_space<smem>>
      %102 = arith.index_cast %101 : i32 to index
      %c0_45 = arith.constant 0 : index
      %103 = vector.load %arg6[%102, %c0_45] : memref<16x64xf32, #tpu.memory_space<vmem>>, vector<1x64xf32>
      %c1_i32_46 = arith.constant 1 : i32
      %104 = arith.addi %99, %c1_i32_46 : i32
      %105 = arith.index_cast %104 : i32 to index
      %106 = memref.load %arg1[%105] : memref<128xi32, #tpu.memory_space<smem>>
      %107 = arith.index_cast %106 : i32 to index
      %c0_47 = arith.constant 0 : index
      %108 = vector.load %arg6[%107, %c0_47] : memref<16x64xf32, #tpu.memory_space<vmem>>, vector<1x64xf32>
      %109 = arith.maximumf %103, %108 : vector<1x64xf32>
      %c2_i32_48 = arith.constant 2 : i32
      %110 = arith.addi %99, %c2_i32_48 : i32
      %111 = arith.index_cast %110 : i32 to index
      %112 = memref.load %arg1[%111] : memref<128xi32, #tpu.memory_space<smem>>
      %113 = arith.index_cast %112 : i32 to index
      %c0_49 = arith.constant 0 : index
      %114 = vector.load %arg6[%113, %c0_49] : memref<16x64xf32, #tpu.memory_space<vmem>>, vector<1x64xf32>
      %115 = arith.maximumf %109, %114 : vector<1x64xf32>
      %c3_i32_50 = arith.constant 3 : i32
      %116 = arith.addi %99, %c3_i32_50 : i32
      %117 = arith.index_cast %116 : i32 to index
      %118 = memref.load %arg1[%117] : memref<128xi32, #tpu.memory_space<smem>>
      %119 = arith.index_cast %118 : i32 to index
      %c0_51 = arith.constant 0 : index
      %120 = vector.load %arg6[%119, %c0_51] : memref<16x64xf32, #tpu.memory_space<vmem>>, vector<1x64xf32>
      %121 = arith.maximumf %115, %120 : vector<1x64xf32>
      %c4_i32_52 = arith.constant 4 : i32
      %122 = arith.addi %21, %c4_i32_52 : i32
      %c4_i32_53 = arith.constant 4 : i32
      %123 = arith.muli %122, %c4_i32_53 : i32
      %124 = arith.addi %11, %123 : i32
      %125 = arith.index_cast %124 : i32 to index
      %126 = memref.load %arg1[%125] : memref<128xi32, #tpu.memory_space<smem>>
      %127 = arith.index_cast %126 : i32 to index
      %c0_54 = arith.constant 0 : index
      %128 = vector.load %arg6[%127, %c0_54] : memref<16x64xf32, #tpu.memory_space<vmem>>, vector<1x64xf32>
      %c1_i32_55 = arith.constant 1 : i32
      %129 = arith.addi %124, %c1_i32_55 : i32
      %130 = arith.index_cast %129 : i32 to index
      %131 = memref.load %arg1[%130] : memref<128xi32, #tpu.memory_space<smem>>
      %132 = arith.index_cast %131 : i32 to index
      %c0_56 = arith.constant 0 : index
      %133 = vector.load %arg6[%132, %c0_56] : memref<16x64xf32, #tpu.memory_space<vmem>>, vector<1x64xf32>
      %134 = arith.maximumf %128, %133 : vector<1x64xf32>
      %c2_i32_57 = arith.constant 2 : i32
      %135 = arith.addi %124, %c2_i32_57 : i32
      %136 = arith.index_cast %135 : i32 to index
      %137 = memref.load %arg1[%136] : memref<128xi32, #tpu.memory_space<smem>>
      %138 = arith.index_cast %137 : i32 to index
      %c0_58 = arith.constant 0 : index
      %139 = vector.load %arg6[%138, %c0_58] : memref<16x64xf32, #tpu.memory_space<vmem>>, vector<1x64xf32>
      %140 = arith.maximumf %134, %139 : vector<1x64xf32>
      %c3_i32_59 = arith.constant 3 : i32
      %141 = arith.addi %124, %c3_i32_59 : i32
      %142 = arith.index_cast %141 : i32 to index
      %143 = memref.load %arg1[%142] : memref<128xi32, #tpu.memory_space<smem>>
      %144 = arith.index_cast %143 : i32 to index
      %c0_60 = arith.constant 0 : index
      %145 = vector.load %arg6[%144, %c0_60] : memref<16x64xf32, #tpu.memory_space<vmem>>, vector<1x64xf32>
      %146 = arith.maximumf %140, %145 : vector<1x64xf32>
      %c5_i32 = arith.constant 5 : i32
      %147 = arith.addi %21, %c5_i32 : i32
      %c4_i32_61 = arith.constant 4 : i32
      %148 = arith.muli %147, %c4_i32_61 : i32
      %149 = arith.addi %11, %148 : i32
      %150 = arith.index_cast %149 : i32 to index
      %151 = memref.load %arg1[%150] : memref<128xi32, #tpu.memory_space<smem>>
      %152 = arith.index_cast %151 : i32 to index
      %c0_62 = arith.constant 0 : index
      %153 = vector.load %arg6[%152, %c0_62] : memref<16x64xf32, #tpu.memory_space<vmem>>, vector<1x64xf32>
      %c1_i32_63 = arith.constant 1 : i32
      %154 = arith.addi %149, %c1_i32_63 : i32
      %155 = arith.index_cast %154 : i32 to index
      %156 = memref.load %arg1[%155] : memref<128xi32, #tpu.memory_space<smem>>
      %157 = arith.index_cast %156 : i32 to index
      %c0_64 = arith.constant 0 : index
      %158 = vector.load %arg6[%157, %c0_64] : memref<16x64xf32, #tpu.memory_space<vmem>>, vector<1x64xf32>
      %159 = arith.maximumf %153, %158 : vector<1x64xf32>
      %c2_i32_65 = arith.constant 2 : i32
      %160 = arith.addi %149, %c2_i32_65 : i32
      %161 = arith.index_cast %160 : i32 to index
      %162 = memref.load %arg1[%161] : memref<128xi32, #tpu.memory_space<smem>>
      %163 = arith.index_cast %162 : i32 to index
      %c0_66 = arith.constant 0 : index
      %164 = vector.load %arg6[%163, %c0_66] : memref<16x64xf32, #tpu.memory_space<vmem>>, vector<1x64xf32>
      %165 = arith.maximumf %159, %164 : vector<1x64xf32>
      %c3_i32_67 = arith.constant 3 : i32
      %166 = arith.addi %149, %c3_i32_67 : i32
      %167 = arith.index_cast %166 : i32 to index
      %168 = memref.load %arg1[%167] : memref<128xi32, #tpu.memory_space<smem>>
      %169 = arith.index_cast %168 : i32 to index
      %c0_68 = arith.constant 0 : index
      %170 = vector.load %arg6[%169, %c0_68] : memref<16x64xf32, #tpu.memory_space<vmem>>, vector<1x64xf32>
      %171 = arith.maximumf %165, %170 : vector<1x64xf32>
      %c6_i32 = arith.constant 6 : i32
      %172 = arith.addi %21, %c6_i32 : i32
      %c4_i32_69 = arith.constant 4 : i32
      %173 = arith.muli %172, %c4_i32_69 : i32
      %174 = arith.addi %11, %173 : i32
      %175 = arith.index_cast %174 : i32 to index
      %176 = memref.load %arg1[%175] : memref<128xi32, #tpu.memory_space<smem>>
      %177 = arith.index_cast %176 : i32 to index
      %c0_70 = arith.constant 0 : index
      %178 = vector.load %arg6[%177, %c0_70] : memref<16x64xf32, #tpu.memory_space<vmem>>, vector<1x64xf32>
      %c1_i32_71 = arith.constant 1 : i32
      %179 = arith.addi %174, %c1_i32_71 : i32
      %180 = arith.index_cast %179 : i32 to index
      %181 = memref.load %arg1[%180] : memref<128xi32, #tpu.memory_space<smem>>
      %182 = arith.index_cast %181 : i32 to index
      %c0_72 = arith.constant 0 : index
      %183 = vector.load %arg6[%182, %c0_72] : memref<16x64xf32, #tpu.memory_space<vmem>>, vector<1x64xf32>
      %184 = arith.maximumf %178, %183 : vector<1x64xf32>
      %c2_i32_73 = arith.constant 2 : i32
      %185 = arith.addi %174, %c2_i32_73 : i32
      %186 = arith.index_cast %185 : i32 to index
      %187 = memref.load %arg1[%186] : memref<128xi32, #tpu.memory_space<smem>>
      %188 = arith.index_cast %187 : i32 to index
      %c0_74 = arith.constant 0 : index
      %189 = vector.load %arg6[%188, %c0_74] : memref<16x64xf32, #tpu.memory_space<vmem>>, vector<1x64xf32>
      %190 = arith.maximumf %184, %189 : vector<1x64xf32>
      %c3_i32_75 = arith.constant 3 : i32
      %191 = arith.addi %174, %c3_i32_75 : i32
      %192 = arith.index_cast %191 : i32 to index
      %193 = memref.load %arg1[%192] : memref<128xi32, #tpu.memory_space<smem>>
      %194 = arith.index_cast %193 : i32 to index
      %c0_76 = arith.constant 0 : index
      %195 = vector.load %arg6[%194, %c0_76] : memref<16x64xf32, #tpu.memory_space<vmem>>, vector<1x64xf32>
      %196 = arith.maximumf %190, %195 : vector<1x64xf32>
      %c7_i32 = arith.constant 7 : i32
      %197 = arith.addi %21, %c7_i32 : i32
      %c4_i32_77 = arith.constant 4 : i32
      %198 = arith.muli %197, %c4_i32_77 : i32
      %199 = arith.addi %11, %198 : i32
      %200 = arith.index_cast %199 : i32 to index
      %201 = memref.load %arg1[%200] : memref<128xi32, #tpu.memory_space<smem>>
      %202 = arith.index_cast %201 : i32 to index
      %c0_78 = arith.constant 0 : index
      %203 = vector.load %arg6[%202, %c0_78] : memref<16x64xf32, #tpu.memory_space<vmem>>, vector<1x64xf32>
      %c1_i32_79 = arith.constant 1 : i32
      %204 = arith.addi %199, %c1_i32_79 : i32
      %205 = arith.index_cast %204 : i32 to index
      %206 = memref.load %arg1[%205] : memref<128xi32, #tpu.memory_space<smem>>
      %207 = arith.index_cast %206 : i32 to index
      %c0_80 = arith.constant 0 : index
      %208 = vector.load %arg6[%207, %c0_80] : memref<16x64xf32, #tpu.memory_space<vmem>>, vector<1x64xf32>
      %209 = arith.maximumf %203, %208 : vector<1x64xf32>
      %c2_i32_81 = arith.constant 2 : i32
      %210 = arith.addi %199, %c2_i32_81 : i32
      %211 = arith.index_cast %210 : i32 to index
      %212 = memref.load %arg1[%211] : memref<128xi32, #tpu.memory_space<smem>>
      %213 = arith.index_cast %212 : i32 to index
      %c0_82 = arith.constant 0 : index
      %214 = vector.load %arg6[%213, %c0_82] : memref<16x64xf32, #tpu.memory_space<vmem>>, vector<1x64xf32>
      %215 = arith.maximumf %209, %214 : vector<1x64xf32>
      %c3_i32_83 = arith.constant 3 : i32
      %216 = arith.addi %199, %c3_i32_83 : i32
      %217 = arith.index_cast %216 : i32 to index
      %218 = memref.load %arg1[%217] : memref<128xi32, #tpu.memory_space<smem>>
      %219 = arith.index_cast %218 : i32 to index
      %c0_84 = arith.constant 0 : index
      %220 = vector.load %arg6[%219, %c0_84] : memref<16x64xf32, #tpu.memory_space<vmem>>, vector<1x64xf32>
      %221 = arith.maximumf %215, %220 : vector<1x64xf32>
      %222 = tpu.concatenate %46, %71, %96, %121, %146, %171, %196, %221 in 0 : vector<1x64xf32>, vector<1x64xf32>, vector<1x64xf32>, vector<1x64xf32>, vector<1x64xf32>, vector<1x64xf32>, vector<1x64xf32>, vector<1x64xf32> -> vector<8x64xf32>
      %223 = arith.index_cast %21 : i32 to index
      %c0_85 = arith.constant 0 : index
      %224 = vector.load %arg7[%223, %c0_85] : memref<16x64xf32, #tpu.memory_space<vmem>>, vector<8x64xf32>
      %225 = arith.addf %222, %224 : vector<8x64xf32>
      %cst_86 = arith.constant 0.000000e+00 : f32
      %226 = vector.broadcast %cst_86 : f32 to vector<8x64xf32>
      %227 = arith.cmpf ogt, %225, %226 : vector<8x64xf32>
      %cst_87 = arith.constant 2.000000e-01 : f32
      %228 = vector.broadcast %cst_87 : f32 to vector<8x64xf32>
      %229 = arith.mulf %228, %225 : vector<8x64xf32>
      %230 = arith.select %227, %225, %229 : vector<8x64xi1>, vector<8x64xf32>
      %231 = arith.index_cast %21 : i32 to index
      %c0_88 = arith.constant 0 : index
      %232 = vector.load %arg8[%231, %c0_88] : memref<16x64xf32, #tpu.memory_space<vmem>>, vector<8x64xf32>
      tpu.vector_store %arg8[%231, %c0_88], %230 {strides = array<i32>} : memref<16x64xf32, #tpu.memory_space<vmem>>, vector<8x64xf32>,
    }
    %c2_i32_10 = arith.constant 2 : i32
    %c0_11 = arith.constant 0 : index
    %c0_12 = arith.constant 0 : index
    %13 = vector.load %arg8[%c0_11, %c0_12] : memref<16x64xf32, #tpu.memory_space<vmem>>, vector<16x64xf32>
    %14 = arith.truncf %13 : vector<16x64xf32> to vector<16x64xbf16>
    %c0_13 = arith.constant 0 : index
    %c0_14 = arith.constant 0 : index
    %c0_15 = arith.constant 0 : index
    %15 = vector.load %arg5[%c0_13, %c0_14, %c0_15] : memref<1x16x64xbf16, #tpu.memory_space<vmem>>, vector<1x16x64xbf16>
    %16 = vector.shape_cast %15 : vector<1x16x64xbf16> to vector<16x64xbf16>
    %17 = vector.shape_cast %14 : vector<16x64xbf16> to vector<1x16x64xbf16>
    tpu.vector_store %arg5[%c0_13, %c0_14, %c0_15], %17 {strides = array<i32>} : memref<1x16x64xbf16, #tpu.memory_space<vmem>>, vector<1x16x64xbf16>,
    return
  }
  func.func @transform_0(%arg0: i32, %arg1: memref<128xi32, #tpu.memory_space<smem>>) -> (i32, i32, i32) {
    %c0_i32 = arith.constant 0 : i32
    %c0_i32_0 = arith.constant 0 : i32
    %c0_i32_1 = arith.constant 0 : i32
    return %arg0, %c0_i32, %c0_i32_0 : i32, i32, i32
  }
  func.func @transform_1(%arg0: i32, %arg1: memref<128xi32, #tpu.memory_space<smem>>) -> (i32, i32) {
    %c0_i32 = arith.constant 0 : i32
    %c0_i32_0 = arith.constant 0 : i32
    %c0_i32_1 = arith.constant 0 : i32
    return %c0_i32, %c0_i32_0 : i32, i32
  }
  func.func @transform_2(%arg0: i32, %arg1: memref<128xi32, #tpu.memory_space<smem>>) -> (i32, i32) {
    %c0_i32 = arith.constant 0 : i32
    %c0_i32_0 = arith.constant 0 : i32
    %c0_i32_1 = arith.constant 0 : i32
    return %c0_i32, %c0_i32_0 : i32, i32
  }
  func.func @transform_3(%arg0: i32, %arg1: memref<128xi32, #tpu.memory_space<smem>>) -> (i32, i32, i32) {
    %c0_i32 = arith.constant 0 : i32
    %c0_i32_0 = arith.constant 0 : i32
    %c0_i32_1 = arith.constant 0 : i32
    return %arg0, %c0_i32, %c0_i32_0 : i32, i32, i32
  }
}

module attributes {stable_mosaic.version = 11 : i64} {
  func.func @_edgeconv_kernel(%arg0: i32, %arg1: memref<128xi32, #tpu.memory_space<smem>>, %arg2: memref<1x16x3xf32, #tpu.memory_space<vmem>>, %arg3: memref<3x128xf32, #tpu.memory_space<vmem>>, %arg4: memref<1x64xf32, #tpu.memory_space<vmem>>, %arg5: memref<1x16x64xbf16, #tpu.memory_space<vmem>>, %arg6: memref<16x64xf32, #tpu.memory_space<vmem>>, %arg7: memref<16x64xf32, #tpu.memory_space<vmem>>, %arg8: memref<16x64xf32, #tpu.memory_space<vmem>>) attributes {dimension_semantics = [#tpu.dimension_semantics<parallel>], iteration_bounds = array<i64: 2>, scalar_prefetch = 1 : i64, scratch_operands = 3 : i64, tpu.core_type = #tpu.core_type<tc>, window_params = [{transform_indices = @transform_0, window_bounds = array<i64: 1, 16, 3>}, {pipeline_mode = #tpu.pipeline_mode<synchronous>, transform_indices = @transform_1, window_bounds = array<i64: 3, 128>}, {pipeline_mode = #tpu.pipeline_mode<synchronous>, transform_indices = @transform_2, window_bounds = array<i64: 1, 64>}, {transform_indices = @transform_3, window_bounds = array<i64: 1, 16, 64>}]} {
    %c0 = arith.constant 0 : index
    %c0_0 = arith.constant 0 : index
    %c0_1 = arith.constant 0 : index
    %0 = vector.load %arg2[%c0, %c0_0, %c0_1] : memref<1x16x3xf32, #tpu.memory_space<vmem>>, vector<1x16x3xf32>
    %1 = vector.shape_cast %0 : vector<1x16x3xf32> to vector<16x3xf32>
    %c0_2 = arith.constant 0 : index
    %c0_3 = arith.constant 0 : index
    %2 = vector.load %arg3[%c0_2, %c0_3] : memref<3x128xf32, #tpu.memory_space<vmem>>, vector<3x128xf32>
    %cst = arith.constant dense<0.000000e+00> : vector<16x128xf32>
    %3 = tpu.matmul %1, %2, %cst {dimension_numbers = #tpu.dot_dimension_numbers<[1], [0], [0], [1], [0, 0, 1, 1], [], []>} : vector<16x3xf32>, vector<3x128xf32>, vector<16x128xf32> -> vector<16x128xf32>
    %4 = vector.extract_strided_slice %3 {offsets = [0, 0], sizes = [16, 64], strides = [1, 1]} : vector<16x128xf32> to vector<16x64xf32>
    %c0_4 = arith.constant 0 : index
    %c0_5 = arith.constant 0 : index
    %5 = vector.load %arg6[%c0_4, %c0_5] : memref<16x64xf32, #tpu.memory_space<vmem>>, vector<16x64xf32>
    tpu.vector_store %arg6[%c0_4, %c0_5], %4 {strides = array<i32>} : memref<16x64xf32, #tpu.memory_space<vmem>>, vector<16x64xf32>,
    %6 = vector.extract_strided_slice %3 {offsets = [0, 64], sizes = [16, 64], strides = [1, 1]} : vector<16x128xf32> to vector<16x64xf32>
    %c0_6 = arith.constant 0 : index
    %c0_7 = arith.constant 0 : index
    %7 = vector.load %arg4[%c0_6, %c0_7] : memref<1x64xf32, #tpu.memory_space<vmem>>, vector<1x64xf32>
    %8 = vector.broadcast %7 : vector<1x64xf32> to vector<16x64xf32>
    %9 = arith.addf %6, %8 : vector<16x64xf32>
    %c0_8 = arith.constant 0 : index
    %c0_9 = arith.constant 0 : index
    %10 = vector.load %arg7[%c0_8, %c0_9] : memref<16x64xf32, #tpu.memory_space<vmem>>, vector<16x64xf32>
    tpu.vector_store %arg7[%c0_8, %c0_9], %9 {strides = array<i32>} : memref<16x64xf32, #tpu.memory_space<vmem>>, vector<16x64xf32>,
    %c64_i32 = arith.constant 64 : i32
    %11 = arith.muli %arg0, %c64_i32 : i32
    %c0_i32 = arith.constant 0 : i32
    %c2_i32 = arith.constant 2 : i32
    %12 = arith.addi %c0_i32, %c2_i32 : i32
    %c1_i32 = arith.constant 1 : i32
    scf.for %arg9 = %c0_i32 to %12 step %c1_i32  : i32 {
      %c1_i32_16 = arith.constant 1 : i32
      %18 = arith.muli %arg9, %c1_i32_16 : i32
      %c0_i32_17 = arith.constant 0 : i32
      %19 = arith.addi %c0_i32_17, %18 : i32
      %c8_i32 = arith.constant 8 : i32
      %20 = arith.muli %19, %c8_i32 : i32
      %21 = tpu.assume_multiple %20, 8 : i32
      %c0_i32_18 = arith.constant 0 : i32
      %22 = arith.addi %21, %c0_i32_18 : i32
      %c4_i32 = arith.constant 4 : i32
      %23 = arith.muli %22, %c4_i32 : i32
      %24 = arith.addi %11, %23 : i32
      %25 = arith.index_cast %24 : i32 to index
      %26 = memref.load %arg1[%25] : memref<128xi32, #tpu.memory_space<smem>>
      %27 = arith.index_cast %26 : i32 to index
      %c0_19 = arith.constant 0 : index
      %28 = vector.load %arg6[%27, %c0_19] : memref<16x64xf32, #tpu.memory_space<vmem>>, vector<1x64xf32>
      %c1_i32_20 = arith.constant 1 : i32
      %29 = arith.addi %24, %c1_i32_20 : i32
      %30 = arith.index_cast %29 : i32 to index
      %31 = memref.load %arg1[%30] : memref<128xi32, #tpu.memory_space<smem>>
      %32 = arith.index_cast %31 : i32 to index
      %c0_21 = arith.constant 0 : index
      %33 = vector.load %arg6[%32, %c0_21] : memref<16x64xf32, #tpu.memory_space<vmem>>, vector<1x64xf32>
      %34 = arith.maximumf %28, %33 : vector<1x64xf32>
      %c2_i32_22 = arith.constant 2 : i32
      %35 = arith.addi %24, %c2_i32_22 : i32
      %36 = arith.index_cast %35 : i32 to index
      %37 = memref.load %arg1[%36] : memref<128xi32, #tpu.memory_space<smem>>
      %38 = arith.index_cast %37 : i32 to index
      %c0_23 = arith.constant 0 : index
      %39 = vector.load %arg6[%38, %c0_23] : memref<16x64xf32, #tpu.memory_space<vmem>>, vector<1x64xf32>
      %40 = arith.maximumf %34, %39 : vector<1x64xf32>
      %c3_i32 = arith.constant 3 : i32
      %41 = arith.addi %24, %c3_i32 : i32
      %42 = arith.index_cast %41 : i32 to index
      %43 = memref.load %arg1[%42] : memref<128xi32, #tpu.memory_space<smem>>
      %44 = arith.index_cast %43 : i32 to index
      %c0_24 = arith.constant 0 : index
      %45 = vector.load %arg6[%44, %c0_24] : memref<16x64xf32, #tpu.memory_space<vmem>>, vector<1x64xf32>
      %46 = arith.maximumf %40, %45 : vector<1x64xf32>
      %c1_i32_25 = arith.constant 1 : i32
      %47 = arith.addi %21, %c1_i32_25 : i32
      %c4_i32_26 = arith.constant 4 : i32
      %48 = arith.muli %47, %c4_i32_26 : i32
      %49 = arith.addi %11, %48 : i32
      %50 = arith.index_cast %49 : i32 to index
      %51 = memref.load %arg1[%50] : memref<128xi32, #tpu.memory_space<smem>>
      %52 = arith.index_cast %51 : i32 to index
      %c0_27 = arith.constant 0 : index
      %53 = vector.load %arg6[%52, %c0_27] : memref<16x64xf32, #tpu.memory_space<vmem>>, vector<1x64xf32>
      %c1_i32_28 = arith.constant 1 : i32
      %54 = arith.addi %49, %c1_i32_28 : i32
      %55 = arith.index_cast %54 : i32 to index
      %56 = memref.load %arg1[%55] : memref<128xi32, #tpu.memory_space<smem>>
      %57 = arith.index_cast %56 : i32 to index
      %c0_29 = arith.constant 0 : index
      %58 = vector.load %arg6[%57, %c0_29] : memref<16x64xf32, #tpu.memory_space<vmem>>, vector<1x64xf32>
      %59 = arith.maximumf %53, %58 : vector<1x64xf32>
      %c2_i32_30 = arith.constant 2 : i32
      %60 = arith.addi %49, %c2_i32_30 : i32
      %61 = arith.index_cast %60 : i32 to index
      %62 = memref.load %arg1[%61] : memref<128xi32, #tpu.memory_space<smem>>
      %63 = arith.index_cast %62 : i32 to index
      %c0_31 = arith.constant 0 : index
      %64 = vector.load %arg6[%63, %c0_31] : memref<16x64xf32, #tpu.memory_space<vmem>>, vector<1x64xf32>
      %65 = arith.maximumf %59, %64 : vector<1x64xf32>
      %c3_i32_32 = arith.constant 3 : i32
      %66 = arith.addi %49, %c3_i32_32 : i32
      %67 = arith.index_cast %66 : i32 to index
      %68 = memref.load %arg1[%67] : memref<128xi32, #tpu.memory_space<smem>>
      %69 = arith.index_cast %68 : i32 to index
      %c0_33 = arith.constant 0 : index
      %70 = vector.load %arg6[%69, %c0_33] : memref<16x64xf32, #tpu.memory_space<vmem>>, vector<1x64xf32>
      %71 = arith.maximumf %65, %70 : vector<1x64xf32>
      %c2_i32_34 = arith.constant 2 : i32
      %72 = arith.addi %21, %c2_i32_34 : i32
      %c4_i32_35 = arith.constant 4 : i32
      %73 = arith.muli %72, %c4_i32_35 : i32
      %74 = arith.addi %11, %73 : i32
      %75 = arith.index_cast %74 : i32 to index
      %76 = memref.load %arg1[%75] : memref<128xi32, #tpu.memory_space<smem>>
      %77 = arith.index_cast %76 : i32 to index
      %c0_36 = arith.constant 0 : index
      %78 = vector.load %arg6[%77, %c0_36] : memref<16x64xf32, #tpu.memory_space<vmem>>, vector<1x64xf32>
      %c1_i32_37 = arith.constant 1 : i32
      %79 = arith.addi %74, %c1_i32_37 : i32
      %80 = arith.index_cast %79 : i32 to index
      %81 = memref.load %arg1[%80] : memref<128xi32, #tpu.memory_space<smem>>
      %82 = arith.index_cast %81 : i32 to index
      %c0_38 = arith.constant 0 : index
      %83 = vector.load %arg6[%82, %c0_38] : memref<16x64xf32, #tpu.memory_space<vmem>>, vector<1x64xf32>
      %84 = arith.maximumf %78, %83 : vector<1x64xf32>
      %c2_i32_39 = arith.constant 2 : i32
      %85 = arith.addi %74, %c2_i32_39 : i32
      %86 = arith.index_cast %85 : i32 to index
      %87 = memref.load %arg1[%86] : memref<128xi32, #tpu.memory_space<smem>>
      %88 = arith.index_cast %87 : i32 to index
      %c0_40 = arith.constant 0 : index
      %89 = vector.load %arg6[%88, %c0_40] : memref<16x64xf32, #tpu.memory_space<vmem>>, vector<1x64xf32>
      %90 = arith.maximumf %84, %89 : vector<1x64xf32>
      %c3_i32_41 = arith.constant 3 : i32
      %91 = arith.addi %74, %c3_i32_41 : i32
      %92 = arith.index_cast %91 : i32 to index
      %93 = memref.load %arg1[%92] : memref<128xi32, #tpu.memory_space<smem>>
      %94 = arith.index_cast %93 : i32 to index
      %c0_42 = arith.constant 0 : index
      %95 = vector.load %arg6[%94, %c0_42] : memref<16x64xf32, #tpu.memory_space<vmem>>, vector<1x64xf32>
      %96 = arith.maximumf %90, %95 : vector<1x64xf32>
      %c3_i32_43 = arith.constant 3 : i32
      %97 = arith.addi %21, %c3_i32_43 : i32
      %c4_i32_44 = arith.constant 4 : i32
      %98 = arith.muli %97, %c4_i32_44 : i32
      %99 = arith.addi %11, %98 : i32
      %100 = arith.index_cast %99 : i32 to index
      %101 = memref.load %arg1[%100] : memref<128xi32, #tpu.memory_space<smem>>
      %102 = arith.index_cast %101 : i32 to index
      %c0_45 = arith.constant 0 : index
      %103 = vector.load %arg6[%102, %c0_45] : memref<16x64xf32, #tpu.memory_space<vmem>>, vector<1x64xf32>
      %c1_i32_46 = arith.constant 1 : i32
      %104 = arith.addi %99, %c1_i32_46 : i32
      %105 = arith.index_cast %104 : i32 to index
      %106 = memref.load %arg1[%105] : memref<128xi32, #tpu.memory_space<smem>>
      %107 = arith.index_cast %106 : i32 to index
      %c0_47 = arith.constant 0 : index
      %108 = vector.load %arg6[%107, %c0_47] : memref<16x64xf32, #tpu.memory_space<vmem>>, vector<1x64xf32>
      %109 = arith.maximumf %103, %108 : vector<1x64xf32>
      %c2_i32_48 = arith.constant 2 : i32
      %110 = arith.addi %99, %c2_i32_48 : i32
      %111 = arith.index_cast %110 : i32 to index
      %112 = memref.load %arg1[%111] : memref<128xi32, #tpu.memory_space<smem>>
      %113 = arith.index_cast %112 : i32 to index
      %c0_49 = arith.constant 0 : index
      %114 = vector.load %arg6[%113, %c0_49] : memref<16x64xf32, #tpu.memory_space<vmem>>, vector<1x64xf32>
      %115 = arith.maximumf %109, %114 : vector<1x64xf32>
      %c3_i32_50 = arith.constant 3 : i32
      %116 = arith.addi %99, %c3_i32_50 : i32
      %117 = arith.index_cast %116 : i32 to index
      %118 = memref.load %arg1[%117] : memref<128xi32, #tpu.memory_space<smem>>
      %119 = arith.index_cast %118 : i32 to index
      %c0_51 = arith.constant 0 : index
      %120 = vector.load %arg6[%119, %c0_51] : memref<16x64xf32, #tpu.memory_space<vmem>>, vector<1x64xf32>
      %121 = arith.maximumf %115, %120 : vector<1x64xf32>
      %c4_i32_52 = arith.constant 4 : i32
      %122 = arith.addi %21, %c4_i32_52 : i32
      %c4_i32_53 = arith.constant 4 : i32
      %123 = arith.muli %122, %c4_i32_53 : i32
      %124 = arith.addi %11, %123 : i32
      %125 = arith.index_cast %124 : i32 to index
      %126 = memref.load %arg1[%125] : memref<128xi32, #tpu.memory_space<smem>>
      %127 = arith.index_cast %126 : i32 to index
      %c0_54 = arith.constant 0 : index
      %128 = vector.load %arg6[%127, %c0_54] : memref<16x64xf32, #tpu.memory_space<vmem>>, vector<1x64xf32>
      %c1_i32_55 = arith.constant 1 : i32
      %129 = arith.addi %124, %c1_i32_55 : i32
      %130 = arith.index_cast %129 : i32 to index
      %131 = memref.load %arg1[%130] : memref<128xi32, #tpu.memory_space<smem>>
      %132 = arith.index_cast %131 : i32 to index
      %c0_56 = arith.constant 0 : index
      %133 = vector.load %arg6[%132, %c0_56] : memref<16x64xf32, #tpu.memory_space<vmem>>, vector<1x64xf32>
      %134 = arith.maximumf %128, %133 : vector<1x64xf32>
      %c2_i32_57 = arith.constant 2 : i32
      %135 = arith.addi %124, %c2_i32_57 : i32
      %136 = arith.index_cast %135 : i32 to index
      %137 = memref.load %arg1[%136] : memref<128xi32, #tpu.memory_space<smem>>
      %138 = arith.index_cast %137 : i32 to index
      %c0_58 = arith.constant 0 : index
      %139 = vector.load %arg6[%138, %c0_58] : memref<16x64xf32, #tpu.memory_space<vmem>>, vector<1x64xf32>
      %140 = arith.maximumf %134, %139 : vector<1x64xf32>
      %c3_i32_59 = arith.constant 3 : i32
      %141 = arith.addi %124, %c3_i32_59 : i32
      %142 = arith.index_cast %141 : i32 to index
      %143 = memref.load %arg1[%142] : memref<128xi32, #tpu.memory_space<smem>>
      %144 = arith.index_cast %143 : i32 to index
      %c0_60 = arith.constant 0 : index
      %145 = vector.load %arg6[%144, %c0_60] : memref<16x64xf32, #tpu.memory_space<vmem>>, vector<1x64xf32>
      %146 = arith.maximumf %140, %145 : vector<1x64xf32>
      %c5_i32 = arith.constant 5 : i32
      %147 = arith.addi %21, %c5_i32 : i32
      %c4_i32_61 = arith.constant 4 : i32
      %148 = arith.muli %147, %c4_i32_61 : i32
      %149 = arith.addi %11, %148 : i32
      %150 = arith.index_cast %149 : i32 to index
      %151 = memref.load %arg1[%150] : memref<128xi32, #tpu.memory_space<smem>>
      %152 = arith.index_cast %151 : i32 to index
      %c0_62 = arith.constant 0 : index
      %153 = vector.load %arg6[%152, %c0_62] : memref<16x64xf32, #tpu.memory_space<vmem>>, vector<1x64xf32>
      %c1_i32_63 = arith.constant 1 : i32
      %154 = arith.addi %149, %c1_i32_63 : i32
      %155 = arith.index_cast %154 : i32 to index
      %156 = memref.load %arg1[%155] : memref<128xi32, #tpu.memory_space<smem>>
      %157 = arith.index_cast %156 : i32 to index
      %c0_64 = arith.constant 0 : index
      %158 = vector.load %arg6[%157, %c0_64] : memref<16x64xf32, #tpu.memory_space<vmem>>, vector<1x64xf32>
      %159 = arith.maximumf %153, %158 : vector<1x64xf32>
      %c2_i32_65 = arith.constant 2 : i32
      %160 = arith.addi %149, %c2_i32_65 : i32
      %161 = arith.index_cast %160 : i32 to index
      %162 = memref.load %arg1[%161] : memref<128xi32, #tpu.memory_space<smem>>
      %163 = arith.index_cast %162 : i32 to index
      %c0_66 = arith.constant 0 : index
      %164 = vector.load %arg6[%163, %c0_66] : memref<16x64xf32, #tpu.memory_space<vmem>>, vector<1x64xf32>
      %165 = arith.maximumf %159, %164 : vector<1x64xf32>
      %c3_i32_67 = arith.constant 3 : i32
      %166 = arith.addi %149, %c3_i32_67 : i32
      %167 = arith.index_cast %166 : i32 to index
      %168 = memref.load %arg1[%167] : memref<128xi32, #tpu.memory_space<smem>>
      %169 = arith.index_cast %168 : i32 to index
      %c0_68 = arith.constant 0 : index
      %170 = vector.load %arg6[%169, %c0_68] : memref<16x64xf32, #tpu.memory_space<vmem>>, vector<1x64xf32>
      %171 = arith.maximumf %165, %170 : vector<1x64xf32>
      %c6_i32 = arith.constant 6 : i32
      %172 = arith.addi %21, %c6_i32 : i32
      %c4_i32_69 = arith.constant 4 : i32
      %173 = arith.muli %172, %c4_i32_69 : i32
      %174 = arith.addi %11, %173 : i32
      %175 = arith.index_cast %174 : i32 to index
      %176 = memref.load %arg1[%175] : memref<128xi32, #tpu.memory_space<smem>>
      %177 = arith.index_cast %176 : i32 to index
      %c0_70 = arith.constant 0 : index
      %178 = vector.load %arg6[%177, %c0_70] : memref<16x64xf32, #tpu.memory_space<vmem>>, vector<1x64xf32>
      %c1_i32_71 = arith.constant 1 : i32
      %179 = arith.addi %174, %c1_i32_71 : i32
      %180 = arith.index_cast %179 : i32 to index
      %181 = memref.load %arg1[%180] : memref<128xi32, #tpu.memory_space<smem>>
      %182 = arith.index_cast %181 : i32 to index
      %c0_72 = arith.constant 0 : index
      %183 = vector.load %arg6[%182, %c0_72] : memref<16x64xf32, #tpu.memory_space<vmem>>, vector<1x64xf32>
      %184 = arith.maximumf %178, %183 : vector<1x64xf32>
      %c2_i32_73 = arith.constant 2 : i32
      %185 = arith.addi %174, %c2_i32_73 : i32
      %186 = arith.index_cast %185 : i32 to index
      %187 = memref.load %arg1[%186] : memref<128xi32, #tpu.memory_space<smem>>
      %188 = arith.index_cast %187 : i32 to index
      %c0_74 = arith.constant 0 : index
      %189 = vector.load %arg6[%188, %c0_74] : memref<16x64xf32, #tpu.memory_space<vmem>>, vector<1x64xf32>
      %190 = arith.maximumf %184, %189 : vector<1x64xf32>
      %c3_i32_75 = arith.constant 3 : i32
      %191 = arith.addi %174, %c3_i32_75 : i32
      %192 = arith.index_cast %191 : i32 to index
      %193 = memref.load %arg1[%192] : memref<128xi32, #tpu.memory_space<smem>>
      %194 = arith.index_cast %193 : i32 to index
      %c0_76 = arith.constant 0 : index
      %195 = vector.load %arg6[%194, %c0_76] : memref<16x64xf32, #tpu.memory_space<vmem>>, vector<1x64xf32>
      %196 = arith.maximumf %190, %195 : vector<1x64xf32>
      %c7_i32 = arith.constant 7 : i32
      %197 = arith.addi %21, %c7_i32 : i32
      %c4_i32_77 = arith.constant 4 : i32
      %198 = arith.muli %197, %c4_i32_77 : i32
      %199 = arith.addi %11, %198 : i32
      %200 = arith.index_cast %199 : i32 to index
      %201 = memref.load %arg1[%200] : memref<128xi32, #tpu.memory_space<smem>>
      %202 = arith.index_cast %201 : i32 to index
      %c0_78 = arith.constant 0 : index
      %203 = vector.load %arg6[%202, %c0_78] : memref<16x64xf32, #tpu.memory_space<vmem>>, vector<1x64xf32>
      %c1_i32_79 = arith.constant 1 : i32
      %204 = arith.addi %199, %c1_i32_79 : i32
      %205 = arith.index_cast %204 : i32 to index
      %206 = memref.load %arg1[%205] : memref<128xi32, #tpu.memory_space<smem>>
      %207 = arith.index_cast %206 : i32 to index
      %c0_80 = arith.constant 0 : index
      %208 = vector.load %arg6[%207, %c0_80] : memref<16x64xf32, #tpu.memory_space<vmem>>, vector<1x64xf32>
      %209 = arith.maximumf %203, %208 : vector<1x64xf32>
      %c2_i32_81 = arith.constant 2 : i32
      %210 = arith.addi %199, %c2_i32_81 : i32
      %211 = arith.index_cast %210 : i32 to index
      %212 = memref.load %arg1[%211] : memref<128xi32, #tpu.memory_space<smem>>
      %213 = arith.index_cast %212 : i32 to index
      %c0_82 = arith.constant 0 : index
      %214 = vector.load %arg6[%213, %c0_82] : memref<16x64xf32, #tpu.memory_space<vmem>>, vector<1x64xf32>
      %215 = arith.maximumf %209, %214 : vector<1x64xf32>
      %c3_i32_83 = arith.constant 3 : i32
      %216 = arith.addi %199, %c3_i32_83 : i32
      %217 = arith.index_cast %216 : i32 to index
      %218 = memref.load %arg1[%217] : memref<128xi32, #tpu.memory_space<smem>>
      %219 = arith.index_cast %218 : i32 to index
      %c0_84 = arith.constant 0 : index
      %220 = vector.load %arg6[%219, %c0_84] : memref<16x64xf32, #tpu.memory_space<vmem>>, vector<1x64xf32>
      %221 = arith.maximumf %215, %220 : vector<1x64xf32>
      %222 = tpu.concatenate %46, %71, %96, %121, %146, %171, %196, %221 in 0 : vector<1x64xf32>, vector<1x64xf32>, vector<1x64xf32>, vector<1x64xf32>, vector<1x64xf32>, vector<1x64xf32>, vector<1x64xf32>, vector<1x64xf32> -> vector<8x64xf32>
      %223 = arith.index_cast %21 : i32 to index
      %c0_85 = arith.constant 0 : index
      %224 = vector.load %arg7[%223, %c0_85] : memref<16x64xf32, #tpu.memory_space<vmem>>, vector<8x64xf32>
      %225 = arith.addf %222, %224 : vector<8x64xf32>
      %cst_86 = arith.constant 0.000000e+00 : f32
      %226 = vector.broadcast %cst_86 : f32 to vector<8x64xf32>
      %227 = arith.cmpf ogt, %225, %226 : vector<8x64xf32>
      %cst_87 = arith.constant 2.000000e-01 : f32
      %228 = vector.broadcast %cst_87 : f32 to vector<8x64xf32>
      %229 = arith.mulf %228, %225 : vector<8x64xf32>
      %230 = arith.select %227, %225, %229 : vector<8x64xi1>, vector<8x64xf32>
      %231 = arith.index_cast %21 : i32 to index
      %c0_88 = arith.constant 0 : index
      %232 = vector.load %arg8[%231, %c0_88] : memref<16x64xf32, #tpu.memory_space<vmem>>, vector<8x64xf32>
      tpu.vector_store %arg8[%231, %c0_88], %230 {strides = array<i32>} : memref<16x64xf32, #tpu.memory_space<vmem>>, vector<8x64xf32>,
    }
    %c2_i32_10 = arith.constant 2 : i32
    %c0_11 = arith.constant 0 : index
    %c0_12 = arith.constant 0 : index
    %13 = vector.load %arg8[%c0_11, %c0_12] : memref<16x64xf32, #tpu.memory_space<vmem>>, vector<16x64xf32>
    %14 = arith.truncf %13 : vector<16x64xf32> to vector<16x64xbf16>
    %c0_13 = arith.constant 0 : index
    %c0_14 = arith.constant 0 : index
    %c0_15 = arith.constant 0 : index
    %15 = vector.load %arg5[%c0_13, %c0_14, %c0_15] : memref<1x16x64xbf16, #tpu.memory_space<vmem>>, vector<1x16x64xbf16>
    %16 = vector.shape_cast %15 : vector<1x16x64xbf16> to vector<16x64xbf16>
    %17 = vector.shape_cast %14 : vector<16x64xbf16> to vector<1x16x64xbf16>
    tpu.vector_store %arg5[%c0_13, %c0_14, %c0_15], %17 {strides = array<i32>} : memref<1x16x64xbf16, #tpu.memory_space<vmem>>, vector<1x16x64xbf16>,
    return
  }
  func.func @transform_0(%arg0: i32, %arg1: memref<128xi32, #tpu.memory_space<smem>>) -> (i32, i32, i32) {
    %c0_i32 = arith.constant 0 : i32
    %c0_i32_0 = arith.constant 0 : i32
    %c0_i32_1 = arith.constant 0 : i32
    return %arg0, %c0_i32, %c0_i32_0 : i32, i32, i32
  }
  func.func @transform_1(%arg0: i32, %arg1: memref<128xi32, #tpu.memory_space<smem>>) -> (i32, i32) {
    %c0_i32 = arith.constant 0 : i32
    %c0_i32_0 = arith.constant 0 : i32
    %c0_i32_1 = arith.constant 0 : i32
    return %c0_i32, %c0_i32_0 : i32, i32
  }
  func.func @transform_2(%arg0: i32, %arg1: memref<128xi32, #tpu.memory_space<smem>>) -> (i32, i32) {
    %c0_i32 = arith.constant 0 : i32
    %c0_i32_0 = arith.constant 0 : i32
    %c0_i32_1 = arith.constant 0 : i32
    return %c0_i32, %c0_i32_0 : i32, i32
  }
  func.func @transform_3(%arg0: i32, %arg1: memref<128xi32, #tpu.memory_space<smem>>) -> (i32, i32, i32) {
    %c0_i32 = arith.constant 0 : i32
    %c0_i32_0 = arith.constant 0 : i32
    %c0_i32_1 = arith.constant 0 : i32
    return %arg0, %c0_i32, %c0_i32_0 : i32, i32, i32
  }
}

module attributes {stable_mosaic.version = 11 : i64} {
  func.func @_edgeconv_kernel(%arg0: i32, %arg1: memref<128xi32, #tpu.memory_space<smem>>, %arg2: memref<1x16x64xbf16, #tpu.memory_space<vmem>>, %arg3: memref<64x256xbf16, #tpu.memory_space<vmem>>, %arg4: memref<1x128xf32, #tpu.memory_space<vmem>>, %arg5: memref<1x16x128xbf16, #tpu.memory_space<vmem>>, %arg6: memref<16x128xf32, #tpu.memory_space<vmem>>, %arg7: memref<16x128xf32, #tpu.memory_space<vmem>>, %arg8: memref<16x128xf32, #tpu.memory_space<vmem>>) attributes {dimension_semantics = [#tpu.dimension_semantics<parallel>], iteration_bounds = array<i64: 2>, scalar_prefetch = 1 : i64, scratch_operands = 3 : i64, tpu.core_type = #tpu.core_type<tc>, window_params = [{transform_indices = @transform_0, window_bounds = array<i64: 1, 16, 64>}, {pipeline_mode = #tpu.pipeline_mode<synchronous>, transform_indices = @transform_1, window_bounds = array<i64: 64, 256>}, {pipeline_mode = #tpu.pipeline_mode<synchronous>, transform_indices = @transform_2, window_bounds = array<i64: 1, 128>}, {transform_indices = @transform_3, window_bounds = array<i64: 1, 16, 128>}]} {
    %c0 = arith.constant 0 : index
    %c0_0 = arith.constant 0 : index
    %c0_1 = arith.constant 0 : index
    %0 = vector.load %arg2[%c0, %c0_0, %c0_1] : memref<1x16x64xbf16, #tpu.memory_space<vmem>>, vector<1x16x64xbf16>
    %1 = vector.shape_cast %0 : vector<1x16x64xbf16> to vector<16x64xbf16>
    %c0_2 = arith.constant 0 : index
    %c0_3 = arith.constant 0 : index
    %2 = vector.load %arg3[%c0_2, %c0_3] : memref<64x256xbf16, #tpu.memory_space<vmem>>, vector<64x256xbf16>
    %cst = arith.constant dense<0.000000e+00> : vector<16x256xf32>
    %3 = tpu.matmul %1, %2, %cst {dimension_numbers = #tpu.dot_dimension_numbers<[1], [0], [0], [1], [0, 0, 1, 1], [], []>} : vector<16x64xbf16>, vector<64x256xbf16>, vector<16x256xf32> -> vector<16x256xf32>
    %4 = vector.extract_strided_slice %3 {offsets = [0, 0], sizes = [16, 128], strides = [1, 1]} : vector<16x256xf32> to vector<16x128xf32>
    %c0_4 = arith.constant 0 : index
    %c0_5 = arith.constant 0 : index
    %5 = vector.load %arg6[%c0_4, %c0_5] : memref<16x128xf32, #tpu.memory_space<vmem>>, vector<16x128xf32>
    tpu.vector_store %arg6[%c0_4, %c0_5], %4 {strides = array<i32>} : memref<16x128xf32, #tpu.memory_space<vmem>>, vector<16x128xf32>,
    %6 = vector.extract_strided_slice %3 {offsets = [0, 128], sizes = [16, 128], strides = [1, 1]} : vector<16x256xf32> to vector<16x128xf32>
    %c0_6 = arith.constant 0 : index
    %c0_7 = arith.constant 0 : index
    %7 = vector.load %arg4[%c0_6, %c0_7] : memref<1x128xf32, #tpu.memory_space<vmem>>, vector<1x128xf32>
    %8 = vector.broadcast %7 : vector<1x128xf32> to vector<16x128xf32>
    %9 = arith.addf %6, %8 : vector<16x128xf32>
    %c0_8 = arith.constant 0 : index
    %c0_9 = arith.constant 0 : index
    %10 = vector.load %arg7[%c0_8, %c0_9] : memref<16x128xf32, #tpu.memory_space<vmem>>, vector<16x128xf32>
    tpu.vector_store %arg7[%c0_8, %c0_9], %9 {strides = array<i32>} : memref<16x128xf32, #tpu.memory_space<vmem>>, vector<16x128xf32>,
    %c64_i32 = arith.constant 64 : i32
    %11 = arith.muli %arg0, %c64_i32 : i32
    %c0_i32 = arith.constant 0 : i32
    %c2_i32 = arith.constant 2 : i32
    %12 = arith.addi %c0_i32, %c2_i32 : i32
    %c1_i32 = arith.constant 1 : i32
    scf.for %arg9 = %c0_i32 to %12 step %c1_i32  : i32 {
      %c1_i32_16 = arith.constant 1 : i32
      %18 = arith.muli %arg9, %c1_i32_16 : i32
      %c0_i32_17 = arith.constant 0 : i32
      %19 = arith.addi %c0_i32_17, %18 : i32
      %c8_i32 = arith.constant 8 : i32
      %20 = arith.muli %19, %c8_i32 : i32
      %21 = tpu.assume_multiple %20, 8 : i32
      %c0_i32_18 = arith.constant 0 : i32
      %22 = arith.addi %21, %c0_i32_18 : i32
      %c4_i32 = arith.constant 4 : i32
      %23 = arith.muli %22, %c4_i32 : i32
      %24 = arith.addi %11, %23 : i32
      %25 = arith.index_cast %24 : i32 to index
      %26 = memref.load %arg1[%25] : memref<128xi32, #tpu.memory_space<smem>>
      %27 = arith.index_cast %26 : i32 to index
      %c0_19 = arith.constant 0 : index
      %28 = vector.load %arg6[%27, %c0_19] : memref<16x128xf32, #tpu.memory_space<vmem>>, vector<1x128xf32>
      %c1_i32_20 = arith.constant 1 : i32
      %29 = arith.addi %24, %c1_i32_20 : i32
      %30 = arith.index_cast %29 : i32 to index
      %31 = memref.load %arg1[%30] : memref<128xi32, #tpu.memory_space<smem>>
      %32 = arith.index_cast %31 : i32 to index
      %c0_21 = arith.constant 0 : index
      %33 = vector.load %arg6[%32, %c0_21] : memref<16x128xf32, #tpu.memory_space<vmem>>, vector<1x128xf32>
      %34 = arith.maximumf %28, %33 : vector<1x128xf32>
      %c2_i32_22 = arith.constant 2 : i32
      %35 = arith.addi %24, %c2_i32_22 : i32
      %36 = arith.index_cast %35 : i32 to index
      %37 = memref.load %arg1[%36] : memref<128xi32, #tpu.memory_space<smem>>
      %38 = arith.index_cast %37 : i32 to index
      %c0_23 = arith.constant 0 : index
      %39 = vector.load %arg6[%38, %c0_23] : memref<16x128xf32, #tpu.memory_space<vmem>>, vector<1x128xf32>
      %40 = arith.maximumf %34, %39 : vector<1x128xf32>
      %c3_i32 = arith.constant 3 : i32
      %41 = arith.addi %24, %c3_i32 : i32
      %42 = arith.index_cast %41 : i32 to index
      %43 = memref.load %arg1[%42] : memref<128xi32, #tpu.memory_space<smem>>
      %44 = arith.index_cast %43 : i32 to index
      %c0_24 = arith.constant 0 : index
      %45 = vector.load %arg6[%44, %c0_24] : memref<16x128xf32, #tpu.memory_space<vmem>>, vector<1x128xf32>
      %46 = arith.maximumf %40, %45 : vector<1x128xf32>
      %c1_i32_25 = arith.constant 1 : i32
      %47 = arith.addi %21, %c1_i32_25 : i32
      %c4_i32_26 = arith.constant 4 : i32
      %48 = arith.muli %47, %c4_i32_26 : i32
      %49 = arith.addi %11, %48 : i32
      %50 = arith.index_cast %49 : i32 to index
      %51 = memref.load %arg1[%50] : memref<128xi32, #tpu.memory_space<smem>>
      %52 = arith.index_cast %51 : i32 to index
      %c0_27 = arith.constant 0 : index
      %53 = vector.load %arg6[%52, %c0_27] : memref<16x128xf32, #tpu.memory_space<vmem>>, vector<1x128xf32>
      %c1_i32_28 = arith.constant 1 : i32
      %54 = arith.addi %49, %c1_i32_28 : i32
      %55 = arith.index_cast %54 : i32 to index
      %56 = memref.load %arg1[%55] : memref<128xi32, #tpu.memory_space<smem>>
      %57 = arith.index_cast %56 : i32 to index
      %c0_29 = arith.constant 0 : index
      %58 = vector.load %arg6[%57, %c0_29] : memref<16x128xf32, #tpu.memory_space<vmem>>, vector<1x128xf32>
      %59 = arith.maximumf %53, %58 : vector<1x128xf32>
      %c2_i32_30 = arith.constant 2 : i32
      %60 = arith.addi %49, %c2_i32_30 : i32
      %61 = arith.index_cast %60 : i32 to index
      %62 = memref.load %arg1[%61] : memref<128xi32, #tpu.memory_space<smem>>
      %63 = arith.index_cast %62 : i32 to index
      %c0_31 = arith.constant 0 : index
      %64 = vector.load %arg6[%63, %c0_31] : memref<16x128xf32, #tpu.memory_space<vmem>>, vector<1x128xf32>
      %65 = arith.maximumf %59, %64 : vector<1x128xf32>
      %c3_i32_32 = arith.constant 3 : i32
      %66 = arith.addi %49, %c3_i32_32 : i32
      %67 = arith.index_cast %66 : i32 to index
      %68 = memref.load %arg1[%67] : memref<128xi32, #tpu.memory_space<smem>>
      %69 = arith.index_cast %68 : i32 to index
      %c0_33 = arith.constant 0 : index
      %70 = vector.load %arg6[%69, %c0_33] : memref<16x128xf32, #tpu.memory_space<vmem>>, vector<1x128xf32>
      %71 = arith.maximumf %65, %70 : vector<1x128xf32>
      %c2_i32_34 = arith.constant 2 : i32
      %72 = arith.addi %21, %c2_i32_34 : i32
      %c4_i32_35 = arith.constant 4 : i32
      %73 = arith.muli %72, %c4_i32_35 : i32
      %74 = arith.addi %11, %73 : i32
      %75 = arith.index_cast %74 : i32 to index
      %76 = memref.load %arg1[%75] : memref<128xi32, #tpu.memory_space<smem>>
      %77 = arith.index_cast %76 : i32 to index
      %c0_36 = arith.constant 0 : index
      %78 = vector.load %arg6[%77, %c0_36] : memref<16x128xf32, #tpu.memory_space<vmem>>, vector<1x128xf32>
      %c1_i32_37 = arith.constant 1 : i32
      %79 = arith.addi %74, %c1_i32_37 : i32
      %80 = arith.index_cast %79 : i32 to index
      %81 = memref.load %arg1[%80] : memref<128xi32, #tpu.memory_space<smem>>
      %82 = arith.index_cast %81 : i32 to index
      %c0_38 = arith.constant 0 : index
      %83 = vector.load %arg6[%82, %c0_38] : memref<16x128xf32, #tpu.memory_space<vmem>>, vector<1x128xf32>
      %84 = arith.maximumf %78, %83 : vector<1x128xf32>
      %c2_i32_39 = arith.constant 2 : i32
      %85 = arith.addi %74, %c2_i32_39 : i32
      %86 = arith.index_cast %85 : i32 to index
      %87 = memref.load %arg1[%86] : memref<128xi32, #tpu.memory_space<smem>>
      %88 = arith.index_cast %87 : i32 to index
      %c0_40 = arith.constant 0 : index
      %89 = vector.load %arg6[%88, %c0_40] : memref<16x128xf32, #tpu.memory_space<vmem>>, vector<1x128xf32>
      %90 = arith.maximumf %84, %89 : vector<1x128xf32>
      %c3_i32_41 = arith.constant 3 : i32
      %91 = arith.addi %74, %c3_i32_41 : i32
      %92 = arith.index_cast %91 : i32 to index
      %93 = memref.load %arg1[%92] : memref<128xi32, #tpu.memory_space<smem>>
      %94 = arith.index_cast %93 : i32 to index
      %c0_42 = arith.constant 0 : index
      %95 = vector.load %arg6[%94, %c0_42] : memref<16x128xf32, #tpu.memory_space<vmem>>, vector<1x128xf32>
      %96 = arith.maximumf %90, %95 : vector<1x128xf32>
      %c3_i32_43 = arith.constant 3 : i32
      %97 = arith.addi %21, %c3_i32_43 : i32
      %c4_i32_44 = arith.constant 4 : i32
      %98 = arith.muli %97, %c4_i32_44 : i32
      %99 = arith.addi %11, %98 : i32
      %100 = arith.index_cast %99 : i32 to index
      %101 = memref.load %arg1[%100] : memref<128xi32, #tpu.memory_space<smem>>
      %102 = arith.index_cast %101 : i32 to index
      %c0_45 = arith.constant 0 : index
      %103 = vector.load %arg6[%102, %c0_45] : memref<16x128xf32, #tpu.memory_space<vmem>>, vector<1x128xf32>
      %c1_i32_46 = arith.constant 1 : i32
      %104 = arith.addi %99, %c1_i32_46 : i32
      %105 = arith.index_cast %104 : i32 to index
      %106 = memref.load %arg1[%105] : memref<128xi32, #tpu.memory_space<smem>>
      %107 = arith.index_cast %106 : i32 to index
      %c0_47 = arith.constant 0 : index
      %108 = vector.load %arg6[%107, %c0_47] : memref<16x128xf32, #tpu.memory_space<vmem>>, vector<1x128xf32>
      %109 = arith.maximumf %103, %108 : vector<1x128xf32>
      %c2_i32_48 = arith.constant 2 : i32
      %110 = arith.addi %99, %c2_i32_48 : i32
      %111 = arith.index_cast %110 : i32 to index
      %112 = memref.load %arg1[%111] : memref<128xi32, #tpu.memory_space<smem>>
      %113 = arith.index_cast %112 : i32 to index
      %c0_49 = arith.constant 0 : index
      %114 = vector.load %arg6[%113, %c0_49] : memref<16x128xf32, #tpu.memory_space<vmem>>, vector<1x128xf32>
      %115 = arith.maximumf %109, %114 : vector<1x128xf32>
      %c3_i32_50 = arith.constant 3 : i32
      %116 = arith.addi %99, %c3_i32_50 : i32
      %117 = arith.index_cast %116 : i32 to index
      %118 = memref.load %arg1[%117] : memref<128xi32, #tpu.memory_space<smem>>
      %119 = arith.index_cast %118 : i32 to index
      %c0_51 = arith.constant 0 : index
      %120 = vector.load %arg6[%119, %c0_51] : memref<16x128xf32, #tpu.memory_space<vmem>>, vector<1x128xf32>
      %121 = arith.maximumf %115, %120 : vector<1x128xf32>
      %c4_i32_52 = arith.constant 4 : i32
      %122 = arith.addi %21, %c4_i32_52 : i32
      %c4_i32_53 = arith.constant 4 : i32
      %123 = arith.muli %122, %c4_i32_53 : i32
      %124 = arith.addi %11, %123 : i32
      %125 = arith.index_cast %124 : i32 to index
      %126 = memref.load %arg1[%125] : memref<128xi32, #tpu.memory_space<smem>>
      %127 = arith.index_cast %126 : i32 to index
      %c0_54 = arith.constant 0 : index
      %128 = vector.load %arg6[%127, %c0_54] : memref<16x128xf32, #tpu.memory_space<vmem>>, vector<1x128xf32>
      %c1_i32_55 = arith.constant 1 : i32
      %129 = arith.addi %124, %c1_i32_55 : i32
      %130 = arith.index_cast %129 : i32 to index
      %131 = memref.load %arg1[%130] : memref<128xi32, #tpu.memory_space<smem>>
      %132 = arith.index_cast %131 : i32 to index
      %c0_56 = arith.constant 0 : index
      %133 = vector.load %arg6[%132, %c0_56] : memref<16x128xf32, #tpu.memory_space<vmem>>, vector<1x128xf32>
      %134 = arith.maximumf %128, %133 : vector<1x128xf32>
      %c2_i32_57 = arith.constant 2 : i32
      %135 = arith.addi %124, %c2_i32_57 : i32
      %136 = arith.index_cast %135 : i32 to index
      %137 = memref.load %arg1[%136] : memref<128xi32, #tpu.memory_space<smem>>
      %138 = arith.index_cast %137 : i32 to index
      %c0_58 = arith.constant 0 : index
      %139 = vector.load %arg6[%138, %c0_58] : memref<16x128xf32, #tpu.memory_space<vmem>>, vector<1x128xf32>
      %140 = arith.maximumf %134, %139 : vector<1x128xf32>
      %c3_i32_59 = arith.constant 3 : i32
      %141 = arith.addi %124, %c3_i32_59 : i32
      %142 = arith.index_cast %141 : i32 to index
      %143 = memref.load %arg1[%142] : memref<128xi32, #tpu.memory_space<smem>>
      %144 = arith.index_cast %143 : i32 to index
      %c0_60 = arith.constant 0 : index
      %145 = vector.load %arg6[%144, %c0_60] : memref<16x128xf32, #tpu.memory_space<vmem>>, vector<1x128xf32>
      %146 = arith.maximumf %140, %145 : vector<1x128xf32>
      %c5_i32 = arith.constant 5 : i32
      %147 = arith.addi %21, %c5_i32 : i32
      %c4_i32_61 = arith.constant 4 : i32
      %148 = arith.muli %147, %c4_i32_61 : i32
      %149 = arith.addi %11, %148 : i32
      %150 = arith.index_cast %149 : i32 to index
      %151 = memref.load %arg1[%150] : memref<128xi32, #tpu.memory_space<smem>>
      %152 = arith.index_cast %151 : i32 to index
      %c0_62 = arith.constant 0 : index
      %153 = vector.load %arg6[%152, %c0_62] : memref<16x128xf32, #tpu.memory_space<vmem>>, vector<1x128xf32>
      %c1_i32_63 = arith.constant 1 : i32
      %154 = arith.addi %149, %c1_i32_63 : i32
      %155 = arith.index_cast %154 : i32 to index
      %156 = memref.load %arg1[%155] : memref<128xi32, #tpu.memory_space<smem>>
      %157 = arith.index_cast %156 : i32 to index
      %c0_64 = arith.constant 0 : index
      %158 = vector.load %arg6[%157, %c0_64] : memref<16x128xf32, #tpu.memory_space<vmem>>, vector<1x128xf32>
      %159 = arith.maximumf %153, %158 : vector<1x128xf32>
      %c2_i32_65 = arith.constant 2 : i32
      %160 = arith.addi %149, %c2_i32_65 : i32
      %161 = arith.index_cast %160 : i32 to index
      %162 = memref.load %arg1[%161] : memref<128xi32, #tpu.memory_space<smem>>
      %163 = arith.index_cast %162 : i32 to index
      %c0_66 = arith.constant 0 : index
      %164 = vector.load %arg6[%163, %c0_66] : memref<16x128xf32, #tpu.memory_space<vmem>>, vector<1x128xf32>
      %165 = arith.maximumf %159, %164 : vector<1x128xf32>
      %c3_i32_67 = arith.constant 3 : i32
      %166 = arith.addi %149, %c3_i32_67 : i32
      %167 = arith.index_cast %166 : i32 to index
      %168 = memref.load %arg1[%167] : memref<128xi32, #tpu.memory_space<smem>>
      %169 = arith.index_cast %168 : i32 to index
      %c0_68 = arith.constant 0 : index
      %170 = vector.load %arg6[%169, %c0_68] : memref<16x128xf32, #tpu.memory_space<vmem>>, vector<1x128xf32>
      %171 = arith.maximumf %165, %170 : vector<1x128xf32>
      %c6_i32 = arith.constant 6 : i32
      %172 = arith.addi %21, %c6_i32 : i32
      %c4_i32_69 = arith.constant 4 : i32
      %173 = arith.muli %172, %c4_i32_69 : i32
      %174 = arith.addi %11, %173 : i32
      %175 = arith.index_cast %174 : i32 to index
      %176 = memref.load %arg1[%175] : memref<128xi32, #tpu.memory_space<smem>>
      %177 = arith.index_cast %176 : i32 to index
      %c0_70 = arith.constant 0 : index
      %178 = vector.load %arg6[%177, %c0_70] : memref<16x128xf32, #tpu.memory_space<vmem>>, vector<1x128xf32>
      %c1_i32_71 = arith.constant 1 : i32
      %179 = arith.addi %174, %c1_i32_71 : i32
      %180 = arith.index_cast %179 : i32 to index
      %181 = memref.load %arg1[%180] : memref<128xi32, #tpu.memory_space<smem>>
      %182 = arith.index_cast %181 : i32 to index
      %c0_72 = arith.constant 0 : index
      %183 = vector.load %arg6[%182, %c0_72] : memref<16x128xf32, #tpu.memory_space<vmem>>, vector<1x128xf32>
      %184 = arith.maximumf %178, %183 : vector<1x128xf32>
      %c2_i32_73 = arith.constant 2 : i32
      %185 = arith.addi %174, %c2_i32_73 : i32
      %186 = arith.index_cast %185 : i32 to index
      %187 = memref.load %arg1[%186] : memref<128xi32, #tpu.memory_space<smem>>
      %188 = arith.index_cast %187 : i32 to index
      %c0_74 = arith.constant 0 : index
      %189 = vector.load %arg6[%188, %c0_74] : memref<16x128xf32, #tpu.memory_space<vmem>>, vector<1x128xf32>
      %190 = arith.maximumf %184, %189 : vector<1x128xf32>
      %c3_i32_75 = arith.constant 3 : i32
      %191 = arith.addi %174, %c3_i32_75 : i32
      %192 = arith.index_cast %191 : i32 to index
      %193 = memref.load %arg1[%192] : memref<128xi32, #tpu.memory_space<smem>>
      %194 = arith.index_cast %193 : i32 to index
      %c0_76 = arith.constant 0 : index
      %195 = vector.load %arg6[%194, %c0_76] : memref<16x128xf32, #tpu.memory_space<vmem>>, vector<1x128xf32>
      %196 = arith.maximumf %190, %195 : vector<1x128xf32>
      %c7_i32 = arith.constant 7 : i32
      %197 = arith.addi %21, %c7_i32 : i32
      %c4_i32_77 = arith.constant 4 : i32
      %198 = arith.muli %197, %c4_i32_77 : i32
      %199 = arith.addi %11, %198 : i32
      %200 = arith.index_cast %199 : i32 to index
      %201 = memref.load %arg1[%200] : memref<128xi32, #tpu.memory_space<smem>>
      %202 = arith.index_cast %201 : i32 to index
      %c0_78 = arith.constant 0 : index
      %203 = vector.load %arg6[%202, %c0_78] : memref<16x128xf32, #tpu.memory_space<vmem>>, vector<1x128xf32>
      %c1_i32_79 = arith.constant 1 : i32
      %204 = arith.addi %199, %c1_i32_79 : i32
      %205 = arith.index_cast %204 : i32 to index
      %206 = memref.load %arg1[%205] : memref<128xi32, #tpu.memory_space<smem>>
      %207 = arith.index_cast %206 : i32 to index
      %c0_80 = arith.constant 0 : index
      %208 = vector.load %arg6[%207, %c0_80] : memref<16x128xf32, #tpu.memory_space<vmem>>, vector<1x128xf32>
      %209 = arith.maximumf %203, %208 : vector<1x128xf32>
      %c2_i32_81 = arith.constant 2 : i32
      %210 = arith.addi %199, %c2_i32_81 : i32
      %211 = arith.index_cast %210 : i32 to index
      %212 = memref.load %arg1[%211] : memref<128xi32, #tpu.memory_space<smem>>
      %213 = arith.index_cast %212 : i32 to index
      %c0_82 = arith.constant 0 : index
      %214 = vector.load %arg6[%213, %c0_82] : memref<16x128xf32, #tpu.memory_space<vmem>>, vector<1x128xf32>
      %215 = arith.maximumf %209, %214 : vector<1x128xf32>
      %c3_i32_83 = arith.constant 3 : i32
      %216 = arith.addi %199, %c3_i32_83 : i32
      %217 = arith.index_cast %216 : i32 to index
      %218 = memref.load %arg1[%217] : memref<128xi32, #tpu.memory_space<smem>>
      %219 = arith.index_cast %218 : i32 to index
      %c0_84 = arith.constant 0 : index
      %220 = vector.load %arg6[%219, %c0_84] : memref<16x128xf32, #tpu.memory_space<vmem>>, vector<1x128xf32>
      %221 = arith.maximumf %215, %220 : vector<1x128xf32>
      %222 = tpu.concatenate %46, %71, %96, %121, %146, %171, %196, %221 in 0 : vector<1x128xf32>, vector<1x128xf32>, vector<1x128xf32>, vector<1x128xf32>, vector<1x128xf32>, vector<1x128xf32>, vector<1x128xf32>, vector<1x128xf32> -> vector<8x128xf32>
      %223 = arith.index_cast %21 : i32 to index
      %c0_85 = arith.constant 0 : index
      %224 = vector.load %arg7[%223, %c0_85] : memref<16x128xf32, #tpu.memory_space<vmem>>, vector<8x128xf32>
      %225 = arith.addf %222, %224 : vector<8x128xf32>
      %cst_86 = arith.constant 0.000000e+00 : f32
      %226 = vector.broadcast %cst_86 : f32 to vector<8x128xf32>
      %227 = arith.cmpf ogt, %225, %226 : vector<8x128xf32>
      %cst_87 = arith.constant 2.000000e-01 : f32
      %228 = vector.broadcast %cst_87 : f32 to vector<8x128xf32>
      %229 = arith.mulf %228, %225 : vector<8x128xf32>
      %230 = arith.select %227, %225, %229 : vector<8x128xi1>, vector<8x128xf32>
      %231 = arith.index_cast %21 : i32 to index
      %c0_88 = arith.constant 0 : index
      %232 = vector.load %arg8[%231, %c0_88] : memref<16x128xf32, #tpu.memory_space<vmem>>, vector<8x128xf32>
      tpu.vector_store %arg8[%231, %c0_88], %230 {strides = array<i32>} : memref<16x128xf32, #tpu.memory_space<vmem>>, vector<8x128xf32>,
    }
    %c2_i32_10 = arith.constant 2 : i32
    %c0_11 = arith.constant 0 : index
    %c0_12 = arith.constant 0 : index
    %13 = vector.load %arg8[%c0_11, %c0_12] : memref<16x128xf32, #tpu.memory_space<vmem>>, vector<16x128xf32>
    %14 = arith.truncf %13 : vector<16x128xf32> to vector<16x128xbf16>
    %c0_13 = arith.constant 0 : index
    %c0_14 = arith.constant 0 : index
    %c0_15 = arith.constant 0 : index
    %15 = vector.load %arg5[%c0_13, %c0_14, %c0_15] : memref<1x16x128xbf16, #tpu.memory_space<vmem>>, vector<1x16x128xbf16>
    %16 = vector.shape_cast %15 : vector<1x16x128xbf16> to vector<16x128xbf16>
    %17 = vector.shape_cast %14 : vector<16x128xbf16> to vector<1x16x128xbf16>
    tpu.vector_store %arg5[%c0_13, %c0_14, %c0_15], %17 {strides = array<i32>} : memref<1x16x128xbf16, #tpu.memory_space<vmem>>, vector<1x16x128xbf16>,
    return
  }
  func.func @transform_0(%arg0: i32, %arg1: memref<128xi32, #tpu.memory_space<smem>>) -> (i32, i32, i32) {
    %c0_i32 = arith.constant 0 : i32
    %c0_i32_0 = arith.constant 0 : i32
    %c0_i32_1 = arith.constant 0 : i32
    return %arg0, %c0_i32, %c0_i32_0 : i32, i32, i32
  }
  func.func @transform_1(%arg0: i32, %arg1: memref<128xi32, #tpu.memory_space<smem>>) -> (i32, i32) {
    %c0_i32 = arith.constant 0 : i32
    %c0_i32_0 = arith.constant 0 : i32
    %c0_i32_1 = arith.constant 0 : i32
    return %c0_i32, %c0_i32_0 : i32, i32
  }
  func.func @transform_2(%arg0: i32, %arg1: memref<128xi32, #tpu.memory_space<smem>>) -> (i32, i32) {
    %c0_i32 = arith.constant 0 : i32
    %c0_i32_0 = arith.constant 0 : i32
    %c0_i32_1 = arith.constant 0 : i32
    return %c0_i32, %c0_i32_0 : i32, i32
  }
  func.func @transform_3(%arg0: i32, %arg1: memref<128xi32, #tpu.memory_space<smem>>) -> (i32, i32, i32) {
    %c0_i32 = arith.constant 0 : i32
    %c0_i32_0 = arith.constant 0 : i32
    %c0_i32_1 = arith.constant 0 : i32
    return %arg0, %c0_i32, %c0_i32_0 : i32, i32, i32
  }
}

module attributes {stable_mosaic.version = 11 : i64} {
  func.func @_edgeconv_kernel(%arg0: i32, %arg1: memref<128xi32, #tpu.memory_space<smem>>, %arg2: memref<1x16x128xbf16, #tpu.memory_space<vmem>>, %arg3: memref<128x512xbf16, #tpu.memory_space<vmem>>, %arg4: memref<1x256xf32, #tpu.memory_space<vmem>>, %arg5: memref<1x16x256xbf16, #tpu.memory_space<vmem>>, %arg6: memref<16x256xf32, #tpu.memory_space<vmem>>, %arg7: memref<16x256xf32, #tpu.memory_space<vmem>>, %arg8: memref<16x256xf32, #tpu.memory_space<vmem>>) attributes {dimension_semantics = [#tpu.dimension_semantics<parallel>], iteration_bounds = array<i64: 2>, scalar_prefetch = 1 : i64, scratch_operands = 3 : i64, tpu.core_type = #tpu.core_type<tc>, window_params = [{transform_indices = @transform_0, window_bounds = array<i64: 1, 16, 128>}, {pipeline_mode = #tpu.pipeline_mode<synchronous>, transform_indices = @transform_1, window_bounds = array<i64: 128, 512>}, {pipeline_mode = #tpu.pipeline_mode<synchronous>, transform_indices = @transform_2, window_bounds = array<i64: 1, 256>}, {transform_indices = @transform_3, window_bounds = array<i64: 1, 16, 256>}]} {
    %c0 = arith.constant 0 : index
    %c0_0 = arith.constant 0 : index
    %c0_1 = arith.constant 0 : index
    %0 = vector.load %arg2[%c0, %c0_0, %c0_1] : memref<1x16x128xbf16, #tpu.memory_space<vmem>>, vector<1x16x128xbf16>
    %1 = vector.shape_cast %0 : vector<1x16x128xbf16> to vector<16x128xbf16>
    %c0_2 = arith.constant 0 : index
    %c0_3 = arith.constant 0 : index
    %2 = vector.load %arg3[%c0_2, %c0_3] : memref<128x512xbf16, #tpu.memory_space<vmem>>, vector<128x512xbf16>
    %cst = arith.constant dense<0.000000e+00> : vector<16x512xf32>
    %3 = tpu.matmul %1, %2, %cst {dimension_numbers = #tpu.dot_dimension_numbers<[1], [0], [0], [1], [0, 0, 1, 1], [], []>} : vector<16x128xbf16>, vector<128x512xbf16>, vector<16x512xf32> -> vector<16x512xf32>
    %4 = vector.extract_strided_slice %3 {offsets = [0, 0], sizes = [16, 256], strides = [1, 1]} : vector<16x512xf32> to vector<16x256xf32>
    %c0_4 = arith.constant 0 : index
    %c0_5 = arith.constant 0 : index
    %5 = vector.load %arg6[%c0_4, %c0_5] : memref<16x256xf32, #tpu.memory_space<vmem>>, vector<16x256xf32>
    tpu.vector_store %arg6[%c0_4, %c0_5], %4 {strides = array<i32>} : memref<16x256xf32, #tpu.memory_space<vmem>>, vector<16x256xf32>,
    %6 = vector.extract_strided_slice %3 {offsets = [0, 256], sizes = [16, 256], strides = [1, 1]} : vector<16x512xf32> to vector<16x256xf32>
    %c0_6 = arith.constant 0 : index
    %c0_7 = arith.constant 0 : index
    %7 = vector.load %arg4[%c0_6, %c0_7] : memref<1x256xf32, #tpu.memory_space<vmem>>, vector<1x256xf32>
    %8 = vector.broadcast %7 : vector<1x256xf32> to vector<16x256xf32>
    %9 = arith.addf %6, %8 : vector<16x256xf32>
    %c0_8 = arith.constant 0 : index
    %c0_9 = arith.constant 0 : index
    %10 = vector.load %arg7[%c0_8, %c0_9] : memref<16x256xf32, #tpu.memory_space<vmem>>, vector<16x256xf32>
    tpu.vector_store %arg7[%c0_8, %c0_9], %9 {strides = array<i32>} : memref<16x256xf32, #tpu.memory_space<vmem>>, vector<16x256xf32>,
    %c64_i32 = arith.constant 64 : i32
    %11 = arith.muli %arg0, %c64_i32 : i32
    %c0_i32 = arith.constant 0 : i32
    %c2_i32 = arith.constant 2 : i32
    %12 = arith.addi %c0_i32, %c2_i32 : i32
    %c1_i32 = arith.constant 1 : i32
    scf.for %arg9 = %c0_i32 to %12 step %c1_i32  : i32 {
      %c1_i32_16 = arith.constant 1 : i32
      %18 = arith.muli %arg9, %c1_i32_16 : i32
      %c0_i32_17 = arith.constant 0 : i32
      %19 = arith.addi %c0_i32_17, %18 : i32
      %c8_i32 = arith.constant 8 : i32
      %20 = arith.muli %19, %c8_i32 : i32
      %21 = tpu.assume_multiple %20, 8 : i32
      %c0_i32_18 = arith.constant 0 : i32
      %22 = arith.addi %21, %c0_i32_18 : i32
      %c4_i32 = arith.constant 4 : i32
      %23 = arith.muli %22, %c4_i32 : i32
      %24 = arith.addi %11, %23 : i32
      %25 = arith.index_cast %24 : i32 to index
      %26 = memref.load %arg1[%25] : memref<128xi32, #tpu.memory_space<smem>>
      %27 = arith.index_cast %26 : i32 to index
      %c0_19 = arith.constant 0 : index
      %28 = vector.load %arg6[%27, %c0_19] : memref<16x256xf32, #tpu.memory_space<vmem>>, vector<1x256xf32>
      %c1_i32_20 = arith.constant 1 : i32
      %29 = arith.addi %24, %c1_i32_20 : i32
      %30 = arith.index_cast %29 : i32 to index
      %31 = memref.load %arg1[%30] : memref<128xi32, #tpu.memory_space<smem>>
      %32 = arith.index_cast %31 : i32 to index
      %c0_21 = arith.constant 0 : index
      %33 = vector.load %arg6[%32, %c0_21] : memref<16x256xf32, #tpu.memory_space<vmem>>, vector<1x256xf32>
      %34 = arith.maximumf %28, %33 : vector<1x256xf32>
      %c2_i32_22 = arith.constant 2 : i32
      %35 = arith.addi %24, %c2_i32_22 : i32
      %36 = arith.index_cast %35 : i32 to index
      %37 = memref.load %arg1[%36] : memref<128xi32, #tpu.memory_space<smem>>
      %38 = arith.index_cast %37 : i32 to index
      %c0_23 = arith.constant 0 : index
      %39 = vector.load %arg6[%38, %c0_23] : memref<16x256xf32, #tpu.memory_space<vmem>>, vector<1x256xf32>
      %40 = arith.maximumf %34, %39 : vector<1x256xf32>
      %c3_i32 = arith.constant 3 : i32
      %41 = arith.addi %24, %c3_i32 : i32
      %42 = arith.index_cast %41 : i32 to index
      %43 = memref.load %arg1[%42] : memref<128xi32, #tpu.memory_space<smem>>
      %44 = arith.index_cast %43 : i32 to index
      %c0_24 = arith.constant 0 : index
      %45 = vector.load %arg6[%44, %c0_24] : memref<16x256xf32, #tpu.memory_space<vmem>>, vector<1x256xf32>
      %46 = arith.maximumf %40, %45 : vector<1x256xf32>
      %c1_i32_25 = arith.constant 1 : i32
      %47 = arith.addi %21, %c1_i32_25 : i32
      %c4_i32_26 = arith.constant 4 : i32
      %48 = arith.muli %47, %c4_i32_26 : i32
      %49 = arith.addi %11, %48 : i32
      %50 = arith.index_cast %49 : i32 to index
      %51 = memref.load %arg1[%50] : memref<128xi32, #tpu.memory_space<smem>>
      %52 = arith.index_cast %51 : i32 to index
      %c0_27 = arith.constant 0 : index
      %53 = vector.load %arg6[%52, %c0_27] : memref<16x256xf32, #tpu.memory_space<vmem>>, vector<1x256xf32>
      %c1_i32_28 = arith.constant 1 : i32
      %54 = arith.addi %49, %c1_i32_28 : i32
      %55 = arith.index_cast %54 : i32 to index
      %56 = memref.load %arg1[%55] : memref<128xi32, #tpu.memory_space<smem>>
      %57 = arith.index_cast %56 : i32 to index
      %c0_29 = arith.constant 0 : index
      %58 = vector.load %arg6[%57, %c0_29] : memref<16x256xf32, #tpu.memory_space<vmem>>, vector<1x256xf32>
      %59 = arith.maximumf %53, %58 : vector<1x256xf32>
      %c2_i32_30 = arith.constant 2 : i32
      %60 = arith.addi %49, %c2_i32_30 : i32
      %61 = arith.index_cast %60 : i32 to index
      %62 = memref.load %arg1[%61] : memref<128xi32, #tpu.memory_space<smem>>
      %63 = arith.index_cast %62 : i32 to index
      %c0_31 = arith.constant 0 : index
      %64 = vector.load %arg6[%63, %c0_31] : memref<16x256xf32, #tpu.memory_space<vmem>>, vector<1x256xf32>
      %65 = arith.maximumf %59, %64 : vector<1x256xf32>
      %c3_i32_32 = arith.constant 3 : i32
      %66 = arith.addi %49, %c3_i32_32 : i32
      %67 = arith.index_cast %66 : i32 to index
      %68 = memref.load %arg1[%67] : memref<128xi32, #tpu.memory_space<smem>>
      %69 = arith.index_cast %68 : i32 to index
      %c0_33 = arith.constant 0 : index
      %70 = vector.load %arg6[%69, %c0_33] : memref<16x256xf32, #tpu.memory_space<vmem>>, vector<1x256xf32>
      %71 = arith.maximumf %65, %70 : vector<1x256xf32>
      %c2_i32_34 = arith.constant 2 : i32
      %72 = arith.addi %21, %c2_i32_34 : i32
      %c4_i32_35 = arith.constant 4 : i32
      %73 = arith.muli %72, %c4_i32_35 : i32
      %74 = arith.addi %11, %73 : i32
      %75 = arith.index_cast %74 : i32 to index
      %76 = memref.load %arg1[%75] : memref<128xi32, #tpu.memory_space<smem>>
      %77 = arith.index_cast %76 : i32 to index
      %c0_36 = arith.constant 0 : index
      %78 = vector.load %arg6[%77, %c0_36] : memref<16x256xf32, #tpu.memory_space<vmem>>, vector<1x256xf32>
      %c1_i32_37 = arith.constant 1 : i32
      %79 = arith.addi %74, %c1_i32_37 : i32
      %80 = arith.index_cast %79 : i32 to index
      %81 = memref.load %arg1[%80] : memref<128xi32, #tpu.memory_space<smem>>
      %82 = arith.index_cast %81 : i32 to index
      %c0_38 = arith.constant 0 : index
      %83 = vector.load %arg6[%82, %c0_38] : memref<16x256xf32, #tpu.memory_space<vmem>>, vector<1x256xf32>
      %84 = arith.maximumf %78, %83 : vector<1x256xf32>
      %c2_i32_39 = arith.constant 2 : i32
      %85 = arith.addi %74, %c2_i32_39 : i32
      %86 = arith.index_cast %85 : i32 to index
      %87 = memref.load %arg1[%86] : memref<128xi32, #tpu.memory_space<smem>>
      %88 = arith.index_cast %87 : i32 to index
      %c0_40 = arith.constant 0 : index
      %89 = vector.load %arg6[%88, %c0_40] : memref<16x256xf32, #tpu.memory_space<vmem>>, vector<1x256xf32>
      %90 = arith.maximumf %84, %89 : vector<1x256xf32>
      %c3_i32_41 = arith.constant 3 : i32
      %91 = arith.addi %74, %c3_i32_41 : i32
      %92 = arith.index_cast %91 : i32 to index
      %93 = memref.load %arg1[%92] : memref<128xi32, #tpu.memory_space<smem>>
      %94 = arith.index_cast %93 : i32 to index
      %c0_42 = arith.constant 0 : index
      %95 = vector.load %arg6[%94, %c0_42] : memref<16x256xf32, #tpu.memory_space<vmem>>, vector<1x256xf32>
      %96 = arith.maximumf %90, %95 : vector<1x256xf32>
      %c3_i32_43 = arith.constant 3 : i32
      %97 = arith.addi %21, %c3_i32_43 : i32
      %c4_i32_44 = arith.constant 4 : i32
      %98 = arith.muli %97, %c4_i32_44 : i32
      %99 = arith.addi %11, %98 : i32
      %100 = arith.index_cast %99 : i32 to index
      %101 = memref.load %arg1[%100] : memref<128xi32, #tpu.memory_space<smem>>
      %102 = arith.index_cast %101 : i32 to index
      %c0_45 = arith.constant 0 : index
      %103 = vector.load %arg6[%102, %c0_45] : memref<16x256xf32, #tpu.memory_space<vmem>>, vector<1x256xf32>
      %c1_i32_46 = arith.constant 1 : i32
      %104 = arith.addi %99, %c1_i32_46 : i32
      %105 = arith.index_cast %104 : i32 to index
      %106 = memref.load %arg1[%105] : memref<128xi32, #tpu.memory_space<smem>>
      %107 = arith.index_cast %106 : i32 to index
      %c0_47 = arith.constant 0 : index
      %108 = vector.load %arg6[%107, %c0_47] : memref<16x256xf32, #tpu.memory_space<vmem>>, vector<1x256xf32>
      %109 = arith.maximumf %103, %108 : vector<1x256xf32>
      %c2_i32_48 = arith.constant 2 : i32
      %110 = arith.addi %99, %c2_i32_48 : i32
      %111 = arith.index_cast %110 : i32 to index
      %112 = memref.load %arg1[%111] : memref<128xi32, #tpu.memory_space<smem>>
      %113 = arith.index_cast %112 : i32 to index
      %c0_49 = arith.constant 0 : index
      %114 = vector.load %arg6[%113, %c0_49] : memref<16x256xf32, #tpu.memory_space<vmem>>, vector<1x256xf32>
      %115 = arith.maximumf %109, %114 : vector<1x256xf32>
      %c3_i32_50 = arith.constant 3 : i32
      %116 = arith.addi %99, %c3_i32_50 : i32
      %117 = arith.index_cast %116 : i32 to index
      %118 = memref.load %arg1[%117] : memref<128xi32, #tpu.memory_space<smem>>
      %119 = arith.index_cast %118 : i32 to index
      %c0_51 = arith.constant 0 : index
      %120 = vector.load %arg6[%119, %c0_51] : memref<16x256xf32, #tpu.memory_space<vmem>>, vector<1x256xf32>
      %121 = arith.maximumf %115, %120 : vector<1x256xf32>
      %c4_i32_52 = arith.constant 4 : i32
      %122 = arith.addi %21, %c4_i32_52 : i32
      %c4_i32_53 = arith.constant 4 : i32
      %123 = arith.muli %122, %c4_i32_53 : i32
      %124 = arith.addi %11, %123 : i32
      %125 = arith.index_cast %124 : i32 to index
      %126 = memref.load %arg1[%125] : memref<128xi32, #tpu.memory_space<smem>>
      %127 = arith.index_cast %126 : i32 to index
      %c0_54 = arith.constant 0 : index
      %128 = vector.load %arg6[%127, %c0_54] : memref<16x256xf32, #tpu.memory_space<vmem>>, vector<1x256xf32>
      %c1_i32_55 = arith.constant 1 : i32
      %129 = arith.addi %124, %c1_i32_55 : i32
      %130 = arith.index_cast %129 : i32 to index
      %131 = memref.load %arg1[%130] : memref<128xi32, #tpu.memory_space<smem>>
      %132 = arith.index_cast %131 : i32 to index
      %c0_56 = arith.constant 0 : index
      %133 = vector.load %arg6[%132, %c0_56] : memref<16x256xf32, #tpu.memory_space<vmem>>, vector<1x256xf32>
      %134 = arith.maximumf %128, %133 : vector<1x256xf32>
      %c2_i32_57 = arith.constant 2 : i32
      %135 = arith.addi %124, %c2_i32_57 : i32
      %136 = arith.index_cast %135 : i32 to index
      %137 = memref.load %arg1[%136] : memref<128xi32, #tpu.memory_space<smem>>
      %138 = arith.index_cast %137 : i32 to index
      %c0_58 = arith.constant 0 : index
      %139 = vector.load %arg6[%138, %c0_58] : memref<16x256xf32, #tpu.memory_space<vmem>>, vector<1x256xf32>
      %140 = arith.maximumf %134, %139 : vector<1x256xf32>
      %c3_i32_59 = arith.constant 3 : i32
      %141 = arith.addi %124, %c3_i32_59 : i32
      %142 = arith.index_cast %141 : i32 to index
      %143 = memref.load %arg1[%142] : memref<128xi32, #tpu.memory_space<smem>>
      %144 = arith.index_cast %143 : i32 to index
      %c0_60 = arith.constant 0 : index
      %145 = vector.load %arg6[%144, %c0_60] : memref<16x256xf32, #tpu.memory_space<vmem>>, vector<1x256xf32>
      %146 = arith.maximumf %140, %145 : vector<1x256xf32>
      %c5_i32 = arith.constant 5 : i32
      %147 = arith.addi %21, %c5_i32 : i32
      %c4_i32_61 = arith.constant 4 : i32
      %148 = arith.muli %147, %c4_i32_61 : i32
      %149 = arith.addi %11, %148 : i32
      %150 = arith.index_cast %149 : i32 to index
      %151 = memref.load %arg1[%150] : memref<128xi32, #tpu.memory_space<smem>>
      %152 = arith.index_cast %151 : i32 to index
      %c0_62 = arith.constant 0 : index
      %153 = vector.load %arg6[%152, %c0_62] : memref<16x256xf32, #tpu.memory_space<vmem>>, vector<1x256xf32>
      %c1_i32_63 = arith.constant 1 : i32
      %154 = arith.addi %149, %c1_i32_63 : i32
      %155 = arith.index_cast %154 : i32 to index
      %156 = memref.load %arg1[%155] : memref<128xi32, #tpu.memory_space<smem>>
      %157 = arith.index_cast %156 : i32 to index
      %c0_64 = arith.constant 0 : index
      %158 = vector.load %arg6[%157, %c0_64] : memref<16x256xf32, #tpu.memory_space<vmem>>, vector<1x256xf32>
      %159 = arith.maximumf %153, %158 : vector<1x256xf32>
      %c2_i32_65 = arith.constant 2 : i32
      %160 = arith.addi %149, %c2_i32_65 : i32
      %161 = arith.index_cast %160 : i32 to index
      %162 = memref.load %arg1[%161] : memref<128xi32, #tpu.memory_space<smem>>
      %163 = arith.index_cast %162 : i32 to index
      %c0_66 = arith.constant 0 : index
      %164 = vector.load %arg6[%163, %c0_66] : memref<16x256xf32, #tpu.memory_space<vmem>>, vector<1x256xf32>
      %165 = arith.maximumf %159, %164 : vector<1x256xf32>
      %c3_i32_67 = arith.constant 3 : i32
      %166 = arith.addi %149, %c3_i32_67 : i32
      %167 = arith.index_cast %166 : i32 to index
      %168 = memref.load %arg1[%167] : memref<128xi32, #tpu.memory_space<smem>>
      %169 = arith.index_cast %168 : i32 to index
      %c0_68 = arith.constant 0 : index
      %170 = vector.load %arg6[%169, %c0_68] : memref<16x256xf32, #tpu.memory_space<vmem>>, vector<1x256xf32>
      %171 = arith.maximumf %165, %170 : vector<1x256xf32>
      %c6_i32 = arith.constant 6 : i32
      %172 = arith.addi %21, %c6_i32 : i32
      %c4_i32_69 = arith.constant 4 : i32
      %173 = arith.muli %172, %c4_i32_69 : i32
      %174 = arith.addi %11, %173 : i32
      %175 = arith.index_cast %174 : i32 to index
      %176 = memref.load %arg1[%175] : memref<128xi32, #tpu.memory_space<smem>>
      %177 = arith.index_cast %176 : i32 to index
      %c0_70 = arith.constant 0 : index
      %178 = vector.load %arg6[%177, %c0_70] : memref<16x256xf32, #tpu.memory_space<vmem>>, vector<1x256xf32>
      %c1_i32_71 = arith.constant 1 : i32
      %179 = arith.addi %174, %c1_i32_71 : i32
      %180 = arith.index_cast %179 : i32 to index
      %181 = memref.load %arg1[%180] : memref<128xi32, #tpu.memory_space<smem>>
      %182 = arith.index_cast %181 : i32 to index
      %c0_72 = arith.constant 0 : index
      %183 = vector.load %arg6[%182, %c0_72] : memref<16x256xf32, #tpu.memory_space<vmem>>, vector<1x256xf32>
      %184 = arith.maximumf %178, %183 : vector<1x256xf32>
      %c2_i32_73 = arith.constant 2 : i32
      %185 = arith.addi %174, %c2_i32_73 : i32
      %186 = arith.index_cast %185 : i32 to index
      %187 = memref.load %arg1[%186] : memref<128xi32, #tpu.memory_space<smem>>
      %188 = arith.index_cast %187 : i32 to index
      %c0_74 = arith.constant 0 : index
      %189 = vector.load %arg6[%188, %c0_74] : memref<16x256xf32, #tpu.memory_space<vmem>>, vector<1x256xf32>
      %190 = arith.maximumf %184, %189 : vector<1x256xf32>
      %c3_i32_75 = arith.constant 3 : i32
      %191 = arith.addi %174, %c3_i32_75 : i32
      %192 = arith.index_cast %191 : i32 to index
      %193 = memref.load %arg1[%192] : memref<128xi32, #tpu.memory_space<smem>>
      %194 = arith.index_cast %193 : i32 to index
      %c0_76 = arith.constant 0 : index
      %195 = vector.load %arg6[%194, %c0_76] : memref<16x256xf32, #tpu.memory_space<vmem>>, vector<1x256xf32>
      %196 = arith.maximumf %190, %195 : vector<1x256xf32>
      %c7_i32 = arith.constant 7 : i32
      %197 = arith.addi %21, %c7_i32 : i32
      %c4_i32_77 = arith.constant 4 : i32
      %198 = arith.muli %197, %c4_i32_77 : i32
      %199 = arith.addi %11, %198 : i32
      %200 = arith.index_cast %199 : i32 to index
      %201 = memref.load %arg1[%200] : memref<128xi32, #tpu.memory_space<smem>>
      %202 = arith.index_cast %201 : i32 to index
      %c0_78 = arith.constant 0 : index
      %203 = vector.load %arg6[%202, %c0_78] : memref<16x256xf32, #tpu.memory_space<vmem>>, vector<1x256xf32>
      %c1_i32_79 = arith.constant 1 : i32
      %204 = arith.addi %199, %c1_i32_79 : i32
      %205 = arith.index_cast %204 : i32 to index
      %206 = memref.load %arg1[%205] : memref<128xi32, #tpu.memory_space<smem>>
      %207 = arith.index_cast %206 : i32 to index
      %c0_80 = arith.constant 0 : index
      %208 = vector.load %arg6[%207, %c0_80] : memref<16x256xf32, #tpu.memory_space<vmem>>, vector<1x256xf32>
      %209 = arith.maximumf %203, %208 : vector<1x256xf32>
      %c2_i32_81 = arith.constant 2 : i32
      %210 = arith.addi %199, %c2_i32_81 : i32
      %211 = arith.index_cast %210 : i32 to index
      %212 = memref.load %arg1[%211] : memref<128xi32, #tpu.memory_space<smem>>
      %213 = arith.index_cast %212 : i32 to index
      %c0_82 = arith.constant 0 : index
      %214 = vector.load %arg6[%213, %c0_82] : memref<16x256xf32, #tpu.memory_space<vmem>>, vector<1x256xf32>
      %215 = arith.maximumf %209, %214 : vector<1x256xf32>
      %c3_i32_83 = arith.constant 3 : i32
      %216 = arith.addi %199, %c3_i32_83 : i32
      %217 = arith.index_cast %216 : i32 to index
      %218 = memref.load %arg1[%217] : memref<128xi32, #tpu.memory_space<smem>>
      %219 = arith.index_cast %218 : i32 to index
      %c0_84 = arith.constant 0 : index
      %220 = vector.load %arg6[%219, %c0_84] : memref<16x256xf32, #tpu.memory_space<vmem>>, vector<1x256xf32>
      %221 = arith.maximumf %215, %220 : vector<1x256xf32>
      %222 = tpu.concatenate %46, %71, %96, %121, %146, %171, %196, %221 in 0 : vector<1x256xf32>, vector<1x256xf32>, vector<1x256xf32>, vector<1x256xf32>, vector<1x256xf32>, vector<1x256xf32>, vector<1x256xf32>, vector<1x256xf32> -> vector<8x256xf32>
      %223 = arith.index_cast %21 : i32 to index
      %c0_85 = arith.constant 0 : index
      %224 = vector.load %arg7[%223, %c0_85] : memref<16x256xf32, #tpu.memory_space<vmem>>, vector<8x256xf32>
      %225 = arith.addf %222, %224 : vector<8x256xf32>
      %cst_86 = arith.constant 0.000000e+00 : f32
      %226 = vector.broadcast %cst_86 : f32 to vector<8x256xf32>
      %227 = arith.cmpf ogt, %225, %226 : vector<8x256xf32>
      %cst_87 = arith.constant 2.000000e-01 : f32
      %228 = vector.broadcast %cst_87 : f32 to vector<8x256xf32>
      %229 = arith.mulf %228, %225 : vector<8x256xf32>
      %230 = arith.select %227, %225, %229 : vector<8x256xi1>, vector<8x256xf32>
      %231 = arith.index_cast %21 : i32 to index
      %c0_88 = arith.constant 0 : index
      %232 = vector.load %arg8[%231, %c0_88] : memref<16x256xf32, #tpu.memory_space<vmem>>, vector<8x256xf32>
      tpu.vector_store %arg8[%231, %c0_88], %230 {strides = array<i32>} : memref<16x256xf32, #tpu.memory_space<vmem>>, vector<8x256xf32>,
    }
    %c2_i32_10 = arith.constant 2 : i32
    %c0_11 = arith.constant 0 : index
    %c0_12 = arith.constant 0 : index
    %13 = vector.load %arg8[%c0_11, %c0_12] : memref<16x256xf32, #tpu.memory_space<vmem>>, vector<16x256xf32>
    %14 = arith.truncf %13 : vector<16x256xf32> to vector<16x256xbf16>
    %c0_13 = arith.constant 0 : index
    %c0_14 = arith.constant 0 : index
    %c0_15 = arith.constant 0 : index
    %15 = vector.load %arg5[%c0_13, %c0_14, %c0_15] : memref<1x16x256xbf16, #tpu.memory_space<vmem>>, vector<1x16x256xbf16>
    %16 = vector.shape_cast %15 : vector<1x16x256xbf16> to vector<16x256xbf16>
    %17 = vector.shape_cast %14 : vector<16x256xbf16> to vector<1x16x256xbf16>
    tpu.vector_store %arg5[%c0_13, %c0_14, %c0_15], %17 {strides = array<i32>} : memref<1x16x256xbf16, #tpu.memory_space<vmem>>, vector<1x16x256xbf16>,
    return
  }
  func.func @transform_0(%arg0: i32, %arg1: memref<128xi32, #tpu.memory_space<smem>>) -> (i32, i32, i32) {
    %c0_i32 = arith.constant 0 : i32
    %c0_i32_0 = arith.constant 0 : i32
    %c0_i32_1 = arith.constant 0 : i32
    return %arg0, %c0_i32, %c0_i32_0 : i32, i32, i32
  }
  func.func @transform_1(%arg0: i32, %arg1: memref<128xi32, #tpu.memory_space<smem>>) -> (i32, i32) {
    %c0_i32 = arith.constant 0 : i32
    %c0_i32_0 = arith.constant 0 : i32
    %c0_i32_1 = arith.constant 0 : i32
    return %c0_i32, %c0_i32_0 : i32, i32
  }
  func.func @transform_2(%arg0: i32, %arg1: memref<128xi32, #tpu.memory_space<smem>>) -> (i32, i32) {
    %c0_i32 = arith.constant 0 : i32
    %c0_i32_0 = arith.constant 0 : i32
    %c0_i32_1 = arith.constant 0 : i32
    return %c0_i32, %c0_i32_0 : i32, i32
  }
  func.func @transform_3(%arg0: i32, %arg1: memref<128xi32, #tpu.memory_space<smem>>) -> (i32, i32, i32) {
    %c0_i32 = arith.constant 0 : i32
    %c0_i32_0 = arith.constant 0 : i32
    %c0_i32_1 = arith.constant 0 : i32
    return %arg0, %c0_i32, %c0_i32_0 : i32, i32, i32
  }
}

module attributes {stable_mosaic.version = 11 : i64} {
  func.func @_conv5_pool_kernel(%arg0: i32, %arg1: i32, %arg2: memref<1x16x64xbf16, #tpu.memory_space<vmem>>, %arg3: memref<1x16x64xbf16, #tpu.memory_space<vmem>>, %arg4: memref<1x16x128xbf16, #tpu.memory_space<vmem>>, %arg5: memref<1x16x256xbf16, #tpu.memory_space<vmem>>, %arg6: memref<64x64xbf16, #tpu.memory_space<vmem>>, %arg7: memref<64x64xbf16, #tpu.memory_space<vmem>>, %arg8: memref<128x64xbf16, #tpu.memory_space<vmem>>, %arg9: memref<256x64xbf16, #tpu.memory_space<vmem>>, %arg10: memref<1x64xf32, #tpu.memory_space<vmem>>, %arg11: memref<1x64xf32, #tpu.memory_space<vmem>>, %arg12: memref<1x1x128xf32, #tpu.memory_space<vmem>>, %arg13: memref<1x64xf32, #tpu.memory_space<vmem>>, %arg14: memref<1x64xf32, #tpu.memory_space<vmem>>) attributes {dimension_semantics = [#tpu.dimension_semantics<parallel>, #tpu.dimension_semantics<arbitrary>], iteration_bounds = array<i64: 2, 1>, scalar_prefetch = 0 : i64, scratch_operands = 2 : i64, tpu.core_type = #tpu.core_type<tc>, window_params = [{transform_indices = @transform_0, window_bounds = array<i64: 1, 16, 64>}, {transform_indices = @transform_1, window_bounds = array<i64: 1, 16, 64>}, {transform_indices = @transform_2, window_bounds = array<i64: 1, 16, 128>}, {transform_indices = @transform_3, window_bounds = array<i64: 1, 16, 256>}, {pipeline_mode = #tpu.pipeline_mode<synchronous>, transform_indices = @transform_4, window_bounds = array<i64: 64, 64>}, {pipeline_mode = #tpu.pipeline_mode<synchronous>, transform_indices = @transform_5, window_bounds = array<i64: 64, 64>}, {pipeline_mode = #tpu.pipeline_mode<synchronous>, transform_indices = @transform_6, window_bounds = array<i64: 128, 64>}, {pipeline_mode = #tpu.pipeline_mode<synchronous>, transform_indices = @transform_7, window_bounds = array<i64: 256, 64>}, {pipeline_mode = #tpu.pipeline_mode<synchronous>, transform_indices = @transform_8, window_bounds = array<i64: 1, 64>}, {pipeline_mode = #tpu.pipeline_mode<synchronous>, transform_indices = @transform_9, window_bounds = array<i64: 1, 64>}, {transform_indices = @transform_10, window_bounds = array<i64: 1, 1, 128>}]} {
    %c0 = arith.constant 0 : index
    %c0_0 = arith.constant 0 : index
    %c0_1 = arith.constant 0 : index
    %0 = vector.load %arg2[%c0, %c0_0, %c0_1] : memref<1x16x64xbf16, #tpu.memory_space<vmem>>, vector<1x16x64xbf16>
    %1 = vector.shape_cast %0 : vector<1x16x64xbf16> to vector<16x64xbf16>
    %c0_2 = arith.constant 0 : index
    %c0_3 = arith.constant 0 : index
    %2 = vector.load %arg6[%c0_2, %c0_3] : memref<64x64xbf16, #tpu.memory_space<vmem>>, vector<64x64xbf16>
    %cst = arith.constant dense<0.000000e+00> : vector<16x64xf32>
    %3 = tpu.matmul %1, %2, %cst {dimension_numbers = #tpu.dot_dimension_numbers<[1], [0], [0], [1], [0, 0, 1, 1], [], []>} : vector<16x64xbf16>, vector<64x64xbf16>, vector<16x64xf32> -> vector<16x64xf32>
    %c0_4 = arith.constant 0 : index
    %c0_5 = arith.constant 0 : index
    %c0_6 = arith.constant 0 : index
    %4 = vector.load %arg3[%c0_4, %c0_5, %c0_6] : memref<1x16x64xbf16, #tpu.memory_space<vmem>>, vector<1x16x64xbf16>
    %5 = vector.shape_cast %4 : vector<1x16x64xbf16> to vector<16x64xbf16>
    %c0_7 = arith.constant 0 : index
    %c0_8 = arith.constant 0 : index
    %6 = vector.load %arg7[%c0_7, %c0_8] : memref<64x64xbf16, #tpu.memory_space<vmem>>, vector<64x64xbf16>
    %cst_9 = arith.constant dense<0.000000e+00> : vector<16x64xf32>
    %7 = tpu.matmul %5, %6, %cst_9 {dimension_numbers = #tpu.dot_dimension_numbers<[1], [0], [0], [1], [0, 0, 1, 1], [], []>} : vector<16x64xbf16>, vector<64x64xbf16>, vector<16x64xf32> -> vector<16x64xf32>
    %8 = arith.addf %3, %7 : vector<16x64xf32>
    %c0_10 = arith.constant 0 : index
    %c0_11 = arith.constant 0 : index
    %c0_12 = arith.constant 0 : index
    %9 = vector.load %arg4[%c0_10, %c0_11, %c0_12] : memref<1x16x128xbf16, #tpu.memory_space<vmem>>, vector<1x16x128xbf16>
    %10 = vector.shape_cast %9 : vector<1x16x128xbf16> to vector<16x128xbf16>
    %c0_13 = arith.constant 0 : index
    %c0_14 = arith.constant 0 : index
    %11 = vector.load %arg8[%c0_13, %c0_14] : memref<128x64xbf16, #tpu.memory_space<vmem>>, vector<128x64xbf16>
    %cst_15 = arith.constant dense<0.000000e+00> : vector<16x64xf32>
    %12 = tpu.matmul %10, %11, %cst_15 {dimension_numbers = #tpu.dot_dimension_numbers<[1], [0], [0], [1], [0, 0, 1, 1], [], []>} : vector<16x128xbf16>, vector<128x64xbf16>, vector<16x64xf32> -> vector<16x64xf32>
    %13 = arith.addf %8, %12 : vector<16x64xf32>
    %c0_16 = arith.constant 0 : index
    %c0_17 = arith.constant 0 : index
    %c0_18 = arith.constant 0 : index
    %14 = vector.load %arg5[%c0_16, %c0_17, %c0_18] : memref<1x16x256xbf16, #tpu.memory_space<vmem>>, vector<1x16x256xbf16>
    %15 = vector.shape_cast %14 : vector<1x16x256xbf16> to vector<16x256xbf16>
    %c0_19 = arith.constant 0 : index
    %c0_20 = arith.constant 0 : index
    %16 = vector.load %arg9[%c0_19, %c0_20] : memref<256x64xbf16, #tpu.memory_space<vmem>>, vector<256x64xbf16>
    %cst_21 = arith.constant dense<0.000000e+00> : vector<16x64xf32>
    %17 = tpu.matmul %15, %16, %cst_21 {dimension_numbers = #tpu.dot_dimension_numbers<[1], [0], [0], [1], [0, 0, 1, 1], [], []>} : vector<16x256xbf16>, vector<256x64xbf16>, vector<16x64xf32> -> vector<16x64xf32>
    %18 = arith.addf %13, %17 : vector<16x64xf32>
    %c0_22 = arith.constant 0 : index
    %c0_23 = arith.constant 0 : index
    %19 = vector.load %arg10[%c0_22, %c0_23] : memref<1x64xf32, #tpu.memory_space<vmem>>, vector<1x64xf32>
    %20 = vector.broadcast %19 : vector<1x64xf32> to vector<16x64xf32>
    %21 = arith.mulf %18, %20 : vector<16x64xf32>
    %c0_24 = arith.constant 0 : index
    %c0_25 = arith.constant 0 : index
    %22 = vector.load %arg11[%c0_24, %c0_25] : memref<1x64xf32, #tpu.memory_space<vmem>>, vector<1x64xf32>
    %23 = vector.broadcast %22 : vector<1x64xf32> to vector<16x64xf32>
    %24 = arith.addf %21, %23 : vector<16x64xf32>
    %cst_26 = arith.constant 0.000000e+00 : f32
    %25 = vector.broadcast %cst_26 : f32 to vector<16x64xf32>
    %26 = arith.cmpf ogt, %24, %25 : vector<16x64xf32>
    %cst_27 = arith.constant 2.000000e-01 : f32
    %27 = vector.broadcast %cst_27 : f32 to vector<16x64xf32>
    %28 = arith.mulf %27, %24 : vector<16x64xf32>
    %29 = arith.select %26, %24, %28 : vector<16x64xi1>, vector<16x64xf32>
    %cst_28 = arith.constant dense<0xFF800000> : vector<64xf32>
    %30 = vector.multi_reduction <maximumf>, %29, %cst_28 [0] : vector<16x64xf32> to vector<64xf32>
    %31 = vector.shape_cast %30 : vector<64xf32> to vector<1x64xf32>
    %cst_29 = arith.constant dense<0.000000e+00> : vector<64xf32>
    %32 = vector.multi_reduction <add>, %29, %cst_29 [0] : vector<16x64xf32> to vector<64xf32>
    %33 = vector.shape_cast %32 : vector<64xf32> to vector<1x64xf32>
    %c0_i32 = arith.constant 0 : i32
    %34 = arith.cmpi eq, %arg1, %c0_i32 : i32
    %35 = arith.extui %34 : i1 to i32
    %c0_i32_30 = arith.constant 0 : i32
    %36 = arith.cmpi ne, %35, %c0_i32_30 : i32
    scf.if %36 {
      %c0_35 = arith.constant 0 : index
      %c0_36 = arith.constant 0 : index
      %43 = vector.load %arg13[%c0_35, %c0_36] : memref<1x64xf32, #tpu.memory_space<vmem>>, vector<1x64xf32>
      tpu.vector_store %arg13[%c0_35, %c0_36], %31 {strides = array<i32>} : memref<1x64xf32, #tpu.memory_space<vmem>>, vector<1x64xf32>,
      %c0_37 = arith.constant 0 : index
      %c0_38 = arith.constant 0 : index
      %44 = vector.load %arg14[%c0_37, %c0_38] : memref<1x64xf32, #tpu.memory_space<vmem>>, vector<1x64xf32>
      tpu.vector_store %arg14[%c0_37, %c0_38], %33 {strides = array<i32>} : memref<1x64xf32, #tpu.memory_space<vmem>>, vector<1x64xf32>,
    } else {
    }
    %c0_i32_31 = arith.constant 0 : i32
    %37 = arith.cmpi sgt, %arg1, %c0_i32_31 : i32
    %38 = arith.extui %37 : i1 to i32
    %c0_i32_32 = arith.constant 0 : i32
    %39 = arith.cmpi ne, %38, %c0_i32_32 : i32
    scf.if %39 {
      %c0_35 = arith.constant 0 : index
      %c0_36 = arith.constant 0 : index
      %43 = vector.load %arg13[%c0_35, %c0_36] : memref<1x64xf32, #tpu.memory_space<vmem>>, vector<1x64xf32>
      %44 = arith.maximumf %43, %31 : vector<1x64xf32>
      %c0_37 = arith.constant 0 : index
      %c0_38 = arith.constant 0 : index
      %45 = vector.load %arg13[%c0_37, %c0_38] : memref<1x64xf32, #tpu.memory_space<vmem>>, vector<1x64xf32>
      tpu.vector_store %arg13[%c0_37, %c0_38], %44 {strides = array<i32>} : memref<1x64xf32, #tpu.memory_space<vmem>>, vector<1x64xf32>,
      %c0_39 = arith.constant 0 : index
      %c0_40 = arith.constant 0 : index
      %46 = vector.load %arg14[%c0_39, %c0_40] : memref<1x64xf32, #tpu.memory_space<vmem>>, vector<1x64xf32>
      %47 = arith.addf %46, %33 : vector<1x64xf32>
      %c0_41 = arith.constant 0 : index
      %c0_42 = arith.constant 0 : index
      %48 = vector.load %arg14[%c0_41, %c0_42] : memref<1x64xf32, #tpu.memory_space<vmem>>, vector<1x64xf32>
      tpu.vector_store %arg14[%c0_41, %c0_42], %47 {strides = array<i32>} : memref<1x64xf32, #tpu.memory_space<vmem>>, vector<1x64xf32>,
    } else {
    }
    %c0_i32_33 = arith.constant 0 : i32
    %40 = arith.cmpi eq, %arg1, %c0_i32_33 : i32
    %41 = arith.extui %40 : i1 to i32
    %c0_i32_34 = arith.constant 0 : i32
    %42 = arith.cmpi ne, %41, %c0_i32_34 : i32
    scf.if %42 {
      %c0_35 = arith.constant 0 : index
      %c0_36 = arith.constant 0 : index
      %43 = vector.load %arg13[%c0_35, %c0_36] : memref<1x64xf32, #tpu.memory_space<vmem>>, vector<1x64xf32>
      %c0_37 = arith.constant 0 : index
      %c0_38 = arith.constant 0 : index
      %44 = vector.load %arg14[%c0_37, %c0_38] : memref<1x64xf32, #tpu.memory_space<vmem>>, vector<1x64xf32>
      %cst_39 = arith.constant 6.250000e-02 : f32
      %45 = vector.broadcast %cst_39 : f32 to vector<1x64xf32>
      %46 = arith.mulf %44, %45 : vector<1x64xf32>
      %47 = tpu.concatenate %43, %46 in 1 : vector<1x64xf32>, vector<1x64xf32> -> vector<1x128xf32>
      %48 = vector.shape_cast %47 : vector<1x128xf32> to vector<1x1x128xf32>
      %c0_40 = arith.constant 0 : index
      %c0_41 = arith.constant 0 : index
      %c0_42 = arith.constant 0 : index
      %49 = vector.load %arg12[%c0_40, %c0_41, %c0_42] : memref<1x1x128xf32, #tpu.memory_space<vmem>>, vector<1x1x128xf32>
      tpu.vector_store %arg12[%c0_40, %c0_41, %c0_42], %48 {strides = array<i32>} : memref<1x1x128xf32, #tpu.memory_space<vmem>>, vector<1x1x128xf32>,
    } else {
    }
    return
  }
  func.func @transform_0(%arg0: i32, %arg1: i32) -> (i32, i32, i32) {
    %c0_i32 = arith.constant 0 : i32
    %c0_i32_0 = arith.constant 0 : i32
    return %arg0, %arg1, %c0_i32 : i32, i32, i32
  }
  func.func @transform_1(%arg0: i32, %arg1: i32) -> (i32, i32, i32) {
    %c0_i32 = arith.constant 0 : i32
    %c0_i32_0 = arith.constant 0 : i32
    return %arg0, %arg1, %c0_i32 : i32, i32, i32
  }
  func.func @transform_2(%arg0: i32, %arg1: i32) -> (i32, i32, i32) {
    %c0_i32 = arith.constant 0 : i32
    %c0_i32_0 = arith.constant 0 : i32
    return %arg0, %arg1, %c0_i32 : i32, i32, i32
  }
  func.func @transform_3(%arg0: i32, %arg1: i32) -> (i32, i32, i32) {
    %c0_i32 = arith.constant 0 : i32
    %c0_i32_0 = arith.constant 0 : i32
    return %arg0, %arg1, %c0_i32 : i32, i32, i32
  }
  func.func @transform_4(%arg0: i32, %arg1: i32) -> (i32, i32) {
    %c0_i32 = arith.constant 0 : i32
    %c0_i32_0 = arith.constant 0 : i32
    %c0_i32_1 = arith.constant 0 : i32
    return %c0_i32, %c0_i32_0 : i32, i32
  }
  func.func @transform_5(%arg0: i32, %arg1: i32) -> (i32, i32) {
    %c0_i32 = arith.constant 0 : i32
    %c0_i32_0 = arith.constant 0 : i32
    %c0_i32_1 = arith.constant 0 : i32
    return %c0_i32, %c0_i32_0 : i32, i32
  }
  func.func @transform_6(%arg0: i32, %arg1: i32) -> (i32, i32) {
    %c0_i32 = arith.constant 0 : i32
    %c0_i32_0 = arith.constant 0 : i32
    %c0_i32_1 = arith.constant 0 : i32
    return %c0_i32, %c0_i32_0 : i32, i32
  }
  func.func @transform_7(%arg0: i32, %arg1: i32) -> (i32, i32) {
    %c0_i32 = arith.constant 0 : i32
    %c0_i32_0 = arith.constant 0 : i32
    %c0_i32_1 = arith.constant 0 : i32
    return %c0_i32, %c0_i32_0 : i32, i32
  }
  func.func @transform_8(%arg0: i32, %arg1: i32) -> (i32, i32) {
    %c0_i32 = arith.constant 0 : i32
    %c0_i32_0 = arith.constant 0 : i32
    %c0_i32_1 = arith.constant 0 : i32
    return %c0_i32, %c0_i32_0 : i32, i32
  }
  func.func @transform_9(%arg0: i32, %arg1: i32) -> (i32, i32) {
    %c0_i32 = arith.constant 0 : i32
    %c0_i32_0 = arith.constant 0 : i32
    %c0_i32_1 = arith.constant 0 : i32
    return %c0_i32, %c0_i32_0 : i32, i32
  }
  func.func @transform_10(%arg0: i32, %arg1: i32) -> (i32, i32, i32) {
    %c0_i32 = arith.constant 0 : i32
    %c0_i32_0 = arith.constant 0 : i32
    %c0_i32_1 = arith.constant 0 : i32
    return %arg0, %c0_i32, %c0_i32_0 : i32, i32, i32
  }
}

module attributes {stable_mosaic.version = 11 : i64} {
  func.func @_head_kernel(%arg0: memref<2x128xf32, #tpu.memory_space<vmem>>, %arg1: memref<128x512xf32, #tpu.memory_space<vmem>>, %arg2: memref<1x512xf32, #tpu.memory_space<vmem>>, %arg3: memref<1x512xf32, #tpu.memory_space<vmem>>, %arg4: memref<512x256xf32, #tpu.memory_space<vmem>>, %arg5: memref<1x256xf32, #tpu.memory_space<vmem>>, %arg6: memref<1x256xf32, #tpu.memory_space<vmem>>, %arg7: memref<256x40xf32, #tpu.memory_space<vmem>>, %arg8: memref<1x40xf32, #tpu.memory_space<vmem>>, %arg9: memref<2x40xf32, #tpu.memory_space<vmem>>) attributes {dimension_semantics = [], scalar_prefetch = 0 : i64, scratch_operands = 0 : i64, tpu.core_type = #tpu.core_type<tc>} {
    %c0 = arith.constant 0 : index
    %c0_0 = arith.constant 0 : index
    %0 = vector.load %arg0[%c0, %c0_0] : memref<2x128xf32, #tpu.memory_space<vmem>>, vector<2x128xf32>
    %c0_1 = arith.constant 0 : index
    %c0_2 = arith.constant 0 : index
    %1 = vector.load %arg1[%c0_1, %c0_2] : memref<128x512xf32, #tpu.memory_space<vmem>>, vector<128x512xf32>
    %cst = arith.constant dense<0.000000e+00> : vector<2x512xf32>
    %2 = tpu.matmul %0, %1, %cst {dimension_numbers = #tpu.dot_dimension_numbers<[1], [0], [0], [1], [0, 0, 1, 1], [], []>} : vector<2x128xf32>, vector<128x512xf32>, vector<2x512xf32> -> vector<2x512xf32>
    %c0_3 = arith.constant 0 : index
    %c0_4 = arith.constant 0 : index
    %3 = vector.load %arg2[%c0_3, %c0_4] : memref<1x512xf32, #tpu.memory_space<vmem>>, vector<1x512xf32>
    %4 = vector.broadcast %3 : vector<1x512xf32> to vector<2x512xf32>
    %5 = arith.mulf %2, %4 : vector<2x512xf32>
    %c0_5 = arith.constant 0 : index
    %c0_6 = arith.constant 0 : index
    %6 = vector.load %arg3[%c0_5, %c0_6] : memref<1x512xf32, #tpu.memory_space<vmem>>, vector<1x512xf32>
    %7 = vector.broadcast %6 : vector<1x512xf32> to vector<2x512xf32>
    %8 = arith.addf %5, %7 : vector<2x512xf32>
    %cst_7 = arith.constant 0.000000e+00 : f32
    %9 = vector.broadcast %cst_7 : f32 to vector<2x512xf32>
    %10 = arith.cmpf ogt, %8, %9 : vector<2x512xf32>
    %cst_8 = arith.constant 2.000000e-01 : f32
    %11 = vector.broadcast %cst_8 : f32 to vector<2x512xf32>
    %12 = arith.mulf %11, %8 : vector<2x512xf32>
    %13 = arith.select %10, %8, %12 : vector<2x512xi1>, vector<2x512xf32>
    %c0_9 = arith.constant 0 : index
    %c0_10 = arith.constant 0 : index
    %14 = vector.load %arg4[%c0_9, %c0_10] : memref<512x256xf32, #tpu.memory_space<vmem>>, vector<512x256xf32>
    %cst_11 = arith.constant dense<0.000000e+00> : vector<2x256xf32>
    %15 = tpu.matmul %13, %14, %cst_11 {dimension_numbers = #tpu.dot_dimension_numbers<[1], [0], [0], [1], [0, 0, 1, 1], [], []>} : vector<2x512xf32>, vector<512x256xf32>, vector<2x256xf32> -> vector<2x256xf32>
    %c0_12 = arith.constant 0 : index
    %c0_13 = arith.constant 0 : index
    %16 = vector.load %arg5[%c0_12, %c0_13] : memref<1x256xf32, #tpu.memory_space<vmem>>, vector<1x256xf32>
    %17 = vector.broadcast %16 : vector<1x256xf32> to vector<2x256xf32>
    %18 = arith.mulf %15, %17 : vector<2x256xf32>
    %c0_14 = arith.constant 0 : index
    %c0_15 = arith.constant 0 : index
    %19 = vector.load %arg6[%c0_14, %c0_15] : memref<1x256xf32, #tpu.memory_space<vmem>>, vector<1x256xf32>
    %20 = vector.broadcast %19 : vector<1x256xf32> to vector<2x256xf32>
    %21 = arith.addf %18, %20 : vector<2x256xf32>
    %cst_16 = arith.constant 0.000000e+00 : f32
    %22 = vector.broadcast %cst_16 : f32 to vector<2x256xf32>
    %23 = arith.cmpf ogt, %21, %22 : vector<2x256xf32>
    %cst_17 = arith.constant 2.000000e-01 : f32
    %24 = vector.broadcast %cst_17 : f32 to vector<2x256xf32>
    %25 = arith.mulf %24, %21 : vector<2x256xf32>
    %26 = arith.select %23, %21, %25 : vector<2x256xi1>, vector<2x256xf32>
    %c0_18 = arith.constant 0 : index
    %c0_19 = arith.constant 0 : index
    %27 = vector.load %arg7[%c0_18, %c0_19] : memref<256x40xf32, #tpu.memory_space<vmem>>, vector<256x40xf32>
    %cst_20 = arith.constant dense<0.000000e+00> : vector<2x40xf32>
    %28 = tpu.matmul %26, %27, %cst_20 {dimension_numbers = #tpu.dot_dimension_numbers<[1], [0], [0], [1], [0, 0, 1, 1], [], []>} : vector<2x256xf32>, vector<256x40xf32>, vector<2x40xf32> -> vector<2x40xf32>
    %c0_21 = arith.constant 0 : index
    %c0_22 = arith.constant 0 : index
    %29 = vector.load %arg8[%c0_21, %c0_22] : memref<1x40xf32, #tpu.memory_space<vmem>>, vector<1x40xf32>
    %30 = vector.broadcast %29 : vector<1x40xf32> to vector<2x40xf32>
    %31 = arith.addf %28, %30 : vector<2x40xf32>
    %c0_23 = arith.constant 0 : index
    %c0_24 = arith.constant 0 : index
    %32 = vector.load %arg9[%c0_23, %c0_24] : memref<2x40xf32, #tpu.memory_space<vmem>>, vector<2x40xf32>
    tpu.vector_store %arg9[%c0_23, %c0_24], %31 {strides = array<i32>} : memref<2x40xf32, #tpu.memory_space<vmem>>, vector<2x40xf32>,
    return
  }
}

</mosaic_0001>

<bundles_post_ra>
// kernel: dgcnn_forward.6
= control target key start
LH: loop header
LB: loop body
LE: loop exit
PB: predicated region body
PF: predicated region fallthrough
CT: control target
= control target key end

     0   :  { %s914_s0 = inlined_call_operand.vmem [shape: s32[128], index: 0, kind: input, shape index: {}]   ;;  %s915_s1 = inlined_call_operand.vmem [shape: f32[2,16,3], index: 1, kind: input, shape index: {}]   ;;  %s916_s2 = inlined_call_operand.vmem [shape: f32[3,128], index: 2, kind: input, shape index: {}]   ;;  %s917_s3 = inlined_call_operand.vmem [shape: f32[1,64], index: 3, kind: input, shape index: {}]   ;;  %s918_s4 = inlined_call_operand.vmem [shape: bf16[2,16,64], index: 4, kind: output, shape index: {}]  }
   0x1   :  { %919 = sst [smem:[#allocation8_spill]] %s915_s1  ;;  %s9_s17 = sshll.u32 %s914_s0, 4  ;;  %s10_s17 = int_to_ptr.vmem [resolvable:$true] %s9_s17 }
   0x2   :  { %920 = sst [smem:[#allocation9_spill]] %s916_s2  ;;  %s696_s18 = scalar_lea.vmem %s10_s17, 16 }
   0x3   :  { %921 = sst [smem:[#allocation10_spill]] %s917_s3  ;;  %p697_p0 = scmp.ne.s32.totalorder %s10_s17, %s696_s18 }
   0x4   :  { %922 = sst [smem:[#allocation11_spill]] %s918_s4  ;;  %p701_p1 = scmp.lt.s32.totalorder %s10_s17, %s10_s17 }
   0x5   :  { %p702_p2 = scmp.lt.s32.totalorder %s696_s18, %s696_s18 }
   0x7   :  { %p703_p3 = por %p702_p2, %p701_p1 }
   0x9   :  { %p704_p4 = pnand %p703_p3, %p697_p0 }
   0xb   :  { %707 = shalt.err (!%p704_p4)  }
   0xc   :  { %s726_s19 = smov [#allocation6]  }
   0xd   :  { %12 = dma.vmem_to_smem %s10_s17, 16, %s726_s19, [#allocation5] }
   0xe   :  { %716 = dma.done.wait [#allocation5], 16 }
   0xf   :  { %717 = vsyncadd [#allocation5], 4294967280 }
  0x10   :  { %14 = sfence }
  0x11   :  { %s756_s20 = smov 0  }
  0x12 LB: > { %s617_s0 = sadd.s32 4294967295, %s720_s20   ;;  %p621_p5 = scmp.ge.s32.totalorder %s720_s20, 1  ;;  %s720_s20 = sphi %s756_s20, %s20_s20  }
  0x13   : > { %p144_p6 = scmp.lt.s32.totalorder %s720_s20, 3 }
  0x15   : > { %p145_p7 = pnand %p621_p5, %p144_p6 }
  0x16   : > { %s923_s2 = sld [smem:[#allocation9_spill]] (!%p145_p7)  ;;  %p168_p8 = scmp.lt.s32.totalorder (!%p145_p7), %s617_s0, 1 }
  0x17   : > { %148 = sbr.rel (%p145_p7) target bundleno = 427 (0x1ab), region = 32  ;;  %s924_s3 = sld [smem:[#allocation10_spill]] (!%p145_p7) }
  0x18   : > { %s727_s26 = smov (!%p145_p7), 64   ;;  %s925_s1 = sld [smem:[#allocation8_spill]] (!%p145_p7) }
  0x19   : > { %s926_s4 = sld [smem:[#allocation11_spill]] (!%p145_p7)  ;;  %s780_s9 = sshll.u32 (!%p145_p7), %s617_s0, 6 }
  0x1a   : > { %s786_s10 = smov (!%p145_p7), 0  }
  0x1c   : > { %v180_v0 = vld [vmem:[%s923_s2] sm:$0x7]  ;;  %vm188_vm0 = vcmask 1042432   ;;  %s169_s25 = scalar_select %p168_p8, %s617_s0, 1  ;;  %vm181_vm1 = vcmask 23552   ;;  %vm267_vm2 = vcmask 523264  }
  0x1d   : > { %673 = vmatprep.subr.msk.mxu0 %vm188_vm0, %v180_v0  ;;  %v629_v1 = vld [vmem:[%s924_s3] ss:$0 sm:$0xff] }
  0x1e   : > { %674 = vmatpush3.msk.msra.mxu0 %vm188_vm0, %v180_v0  ;;  %276 = vrot.lane.b32.xlu0 %v629_v1, %s727_s26  ;;  %s644_s27 = sshll.u32 %s169_s25, 4  ;;  %s645_s28 = sshll.u32 %s169_s25, 3 }
  0x1f   : > { %s172_s5 = scalar_lea.vmem %s925_s1, %s644_s27  ;;  %s778_s8 = scalar_lea.vmem %s926_s4, %s645_s28 }
  0x20   : > { %v178_v2 = vld [vmem:[%s172_s5] sm:$0xff]  ;;  %v179_v3 = vld [vmem:[%s172_s5 + $0x8] sm:$0xff] }
  0x21   : > { %675 = vmatprep.mubr.msk.f32.mxu0 %vm181_vm1, %v178_v2 }
  0x22   : > { %676 = vmatmul.mubr.msk.f32.vlgmr.msra.gmra.mxu0 %vm181_vm1, %v179_v3 }
  0x90   : > { %v277_v4 = vpop.permute.xlu0 %276 }
  0xe2   : > { %v677_v5 = vpop.f32.mrf.mxu0 }
  0xe3   : > { %269 = vst.msk [vmem:[#allocation2 + $0x8] sm:$0xff] %vm267_vm2, %v677_v5  ;;  %v280_v6 = vadd.f32 %v677_v5, %v277_v4 }
  0xe4   : > { %v258_v7 = vpop.f32.mrf.mxu0 }
  0xe5   : > { %268 = vst.msk [vmem:[#allocation2] sm:$0xff] %vm267_vm2, %v258_v7  ;;  %v279_v8 = vadd.f32 %v277_v4, %v258_v7  ;;  %285 = vrot.lane.b32.xlu1 %v280_v6, %s727_s26 }
  0xe7   : > { %283 = vrot.lane.b32.xlu0 %v279_v8, %s727_s26 }
 0x157   : > { %v286_v9 = vpop.permute.xlu1 %285 }
 0x158   : > { %290 = vst.msk [vmem:[#allocation3 + $0x8] sm:$0xff] %vm267_vm2, %v286_v9 }
 0x159   : > { %v284_v10 = vpop.permute.xlu0 %283 }
 0x15a   : > { %289 = vst.msk [vmem:[#allocation3] sm:$0xff] %vm267_vm2, %v284_v10 }
 0x15b LB: >> { %s792_s11 = sshll.u32 %s724_s10, 5  ;;  %vm487_vm3 = vcmask 1040384   ;;  %vm489_vm4 = vcmask 1041408   ;;  %vm492_vm5 = vcmask 1043456   ;;  %vm494_vm6 = vcmask 1044480   ;;  %s724_s10 = sphi %s786_s10, %s297_s10  }
 0x15c   : >> { %s300_s12 = sadd.s32 %s792_s11, %s780_s9  ;;  %s648_s13 = sadd.s32 4, %s792_s11  ;;  %vm496_vm7 = vcmask 1045504   ;;  %vm498_vm8 = vcmask 1046528  }
 0x15d   : >> { %s797_s14 = sld [smem:[#allocation6 + %s300_s12]]  ;;  %s304_s15 = sadd.s32 1, %s300_s12 }
 0x15e   : >> { %s799_s16 = sld [smem:[#allocation6 + %s304_s15]]  ;;  %s309_s17 = sadd.s32 2, %s300_s12 }
 0x15f   : >> { %s801_s18 = sld [smem:[#allocation6 + %s309_s17]]  ;;  %s314_s19 = sadd.s32 3, %s300_s12 }
 0x160   : >> { %s803_s0 = sld [smem:[#allocation6 + %s314_s19]]  ;;  %s321_s21 = sadd.s32 %s648_s13, %s780_s9 }
 0x161   : >> { %s322_s22 = sld [smem:[#allocation6 + %s321_s21]]  ;;  %s325_s23 = sadd.s32 1, %s321_s21 }
 0x162   : >> { %s326_s24 = sld [smem:[#allocation6 + %s325_s23]]  ;;  %s330_s25 = sadd.s32 2, %s321_s21 }
 0x163   : >> { %s806_s26 = sld [smem:[#allocation6 + %s330_s25]]  ;;  %s335_s27 = sadd.s32 3, %s321_s21 }
 0x164   : >> { %s808_s28 = sld [smem:[#allocation6 + %s335_s27]]  ;;  %s650_s29 = sadd.s32 8, %s792_s11 }
 0x165   : >> { %s342_s30 = sadd.s32 %s650_s29, %s780_s9  ;;  %s652_s17 = sadd.s32 12, %s792_s11 }
 0x166   : >> { %s812_s5 = sld [smem:[#allocation6 + %s342_s30]]  ;;  %s346_s6 = sadd.s32 1, %s342_s30 }
 0x167   : >> { %s814_s7 = sld [smem:[#allocation6 + %s346_s6]]  ;;  %s351_s12 = sadd.s32 2, %s342_s30 }
 0x168   : >> { %s816_s13 = sld [smem:[#allocation6 + %s351_s12]]  ;;  %s356_s15 = sadd.s32 3, %s342_s30 }
 0x169   : >> { %s819_s19 = sld [smem:[#allocation6 + %s356_s15]]  ;;  %s363_s23 = sadd.s32 %s652_s17, %s780_s9 }
 0x16a   : >> { %s822_s21 = sld [smem:[#allocation6 + %s363_s23]]  ;;  %s367_s25 = sadd.s32 1, %s363_s23 }
 0x16b   : >> { %s372_s27 = sadd.s32 2, %s363_s23  ;;  %s824_s29 = sld [smem:[#allocation6 + %s367_s25]] }
 0x16c   : >> { %s826_s1 = sld [smem:[#allocation6 + %s372_s27]]  ;;  %s377_s6 = sadd.s32 3, %s363_s23 }
 0x16d   : >> { %s654_s2 = sadd.s32 16, %s792_s11  ;;  %s829_s12 = sld [smem:[#allocation6 + %s377_s6]] }
 0x16e   : >> { %s384_s30 = sadd.s32 %s654_s2, %s780_s9  ;;  %s323_s3 = scalar_lea.vmem [#allocation2], %s322_s22 }
 0x16f   : >> { %v324_v11 = vld [vmem:[%s323_s3] sm:$0x1]  ;;  %s327_s15 = scalar_lea.vmem [#allocation2], %s326_s24  ;;  %s832_s17 = sld [smem:[#allocation6 + %s384_s30]] }
 0x170   : >> { %v328_v12 = vld [vmem:[%s327_s15] sm:$0x1]  ;;  %s388_s4 = sadd.s32 1, %s384_s30  ;;  %s302_s27 = scalar_lea.vmem [#allocation2], %s797_s14 }
 0x171   : >> { %s834_s25 = sld [smem:[#allocation6 + %s388_s4]]  ;;  %v303_v13 = vld [vmem:[%s302_s27] sm:$0x1]  ;;  %s393_s23 = sadd.s32 2, %s384_s30  ;;  %v329_v14 = vmax.f32 %v324_v11, %v328_v12 }
 0x172   : >> { %s344_s6 = scalar_lea.vmem [#allocation2], %s812_s5  ;;  %s348_s2 = scalar_lea.vmem [#allocation2], %s814_s7 }
 0x173   : >> { %v345_v15 = vld [vmem:[%s344_s6] sm:$0x1]  ;;  %s839_s3 = sld [smem:[#allocation6 + %s393_s23]]  ;;  %s398_s22 = sadd.s32 3, %s384_s30 }
 0x174   : >> { %v349_v16 = vld [vmem:[%s348_s2] sm:$0x1]  ;;  %s306_s24 = scalar_lea.vmem [#allocation2], %s799_s16  ;;  %s332_s4 = scalar_lea.vmem [#allocation2], %s806_s26 }
 0x175   : >> { %v307_v17 = vld [vmem:[%s306_s24] sm:$0x1]  ;;  %s843_s14 = sld [smem:[#allocation6 + %s398_s22]]  ;;  %s656_s15 = sadd.s32 20, %s792_s11  ;;  %v350_v19 = vmax.f32 %v345_v15, %v349_v16 }
 0x176   : >> { %v333_v18 = vld [vmem:[%s332_s4] sm:$0x1]  ;;  %s658_s27 = sadd.s32 24, %s792_s11  ;;  %s365_s5 = scalar_lea.vmem [#allocation2], %s822_s21  ;;  %v308_v22 = vmax.f32 %v303_v13, %v307_v17 }
 0x177   : >> { %v366_v20 = vld [vmem:[%s365_s5] sm:$0x1]  ;;  %s369_s7 = scalar_lea.vmem [#allocation2], %s824_s29  ;;  %s850_s23 = sadd.s32 %s656_s15, %s780_s9  ;;  %v334_v23 = vmax.f32 %v329_v14, %v333_v18 }
 0x178   : >> { %v370_v21 = vld [vmem:[%s369_s7] sm:$0x1]  ;;  %s353_s16 = scalar_lea.vmem [#allocation2], %s816_s13  ;;  %s854_s26 = sld [smem:[#allocation6 + %s850_s23]] }
 0x179   : >> { %v354_v24 = vld [vmem:[%s353_s16] sm:$0x1]  ;;  %s311_s30 = scalar_lea.vmem [#allocation2], %s801_s18  ;;  %s337_s21 = scalar_lea.vmem [#allocation2], %s808_s28  ;;  %v371_v27 = vmax.f32 %v366_v20, %v370_v21 }
 0x17a   : >> { %v312_v25 = vld [vmem:[%s311_s30] sm:$0x1]  ;;  %s409_s29 = sadd.s32 1, %s850_s23  ;;  %s414_s6 = sadd.s32 2, %s850_s23  ;;  %v355_v30 = vmax.f32 %v350_v19, %v354_v24 }
 0x17b   : >> { %v338_v26 = vld [vmem:[%s337_s21] sm:$0x1]  ;;  %s386_s2 = scalar_lea.vmem [#allocation2], %s832_s17  ;;  %s390_s22 = scalar_lea.vmem [#allocation2], %s834_s25  ;;  %v313_v32 = vmax.f32 %v308_v22, %v312_v25 }
 0x17c   : >> { %v387_v28 = vld [vmem:[%s386_s2] sm:$0x1]  ;;  %s862_s13 = sld [smem:[#allocation6 + %s409_s29]]  ;;  %s374_s18 = scalar_lea.vmem [#allocation2], %s826_s1  ;;  %v339_v33 = vmax.f32 %v334_v23, %v338_v26 }
 0x17d   : >> { %v391_v29 = vld [vmem:[%s390_s22] sm:$0x1]  ;;  %s865_s28 = sld [smem:[#allocation6 + %s414_s6]]  ;;  %s358_s24 = scalar_lea.vmem [#allocation2], %s819_s19 }
 0x17e   : >> { %v375_v31 = vld [vmem:[%s374_s18] sm:$0x1]  ;;  %s419_s4 = sadd.s32 3, %s850_s23  ;;  %s872_s17 = sadd.s32 %s658_s27, %s780_s9  ;;  %v392_v36 = vmax.f32 %v387_v28, %v391_v29  ;;  %v467_v43 = vrot.slane %v339_v33, 7 }
 0x17f   : >> { %v359_v34 = vld [vmem:[%s358_s24] sm:$0x1]  ;;  %s316_s25 = scalar_lea.vmem [#allocation2], %s803_s0  ;;  %s875_s1 = sld [smem:[#allocation6 + %s419_s4]]  ;;  %v376_v37 = vmax.f32 %v371_v27, %v375_v31 }
 0x180   : >> { %v317_v35 = vld [vmem:[%s316_s25] sm:$0x1]  ;;  %s430_s15 = sadd.s32 1, %s872_s17  ;;  %s395_s5 = scalar_lea.vmem [#allocation2], %s839_s3  ;;  %v360_v39 = vmax.f32 %v355_v30, %v359_v34 }
 0x181   : >> { %v396_v38 = vld [vmem:[%s395_s5] sm:$0x1]  ;;  %s880_s19 = sld [smem:[#allocation6 + %s872_s17]]  ;;  %s379_s27 = scalar_lea.vmem [#allocation2], %s829_s12  ;;  %v318_v42 = vmax.f32 %v313_v32, %v317_v35 }
 0x182   : >> { %v380_v40 = vld [vmem:[%s379_s27] sm:$0x1]  ;;  %s407_s7 = scalar_lea.vmem [#allocation2], %s854_s26  ;;  %s884_s0 = sld [smem:[#allocation6 + %s430_s15]]  ;;  %v397_v44 = vmax.f32 %v392_v36, %v396_v38  ;;  %v470_v50 = vrot.slane %v360_v39, 6 }
 0x183   : >> { %v408_v41 = vld [vmem:[%s407_s7] sm:$0x1]  ;;  %s435_s23 = sadd.s32 2, %s872_s17  ;;  %s411_s3 = scalar_lea.vmem [#allocation2], %s862_s13  ;;  %v381_v46 = vmax.f32 %v376_v37, %v380_v40  ;;  %v488_v52 = vsel %vm487_vm3, %v318_v42, %v467_v43 }
 0x184   : >> { %s887_s16 = sld [smem:[#allocation6 + %s435_s23]]  ;;  %v412_v45 = vld [vmem:[%s411_s3] sm:$0x1]  ;;  %s440_s30 = sadd.s32 3, %s872_s17  ;;  %v490_v60 = vsel %vm489_vm4, %v488_v52, %v470_v50 }
 0x185   : >> { %s400_s12 = scalar_lea.vmem [#allocation2], %s843_s14  ;;  %v413_v48 = vmax.f32 %v408_v41, %v412_v45  ;;  %s416_s26 = scalar_lea.vmem [#allocation2], %s865_s28  ;;  %v473_v57 = vrot.slane %v381_v46, 5 }
 0x186   : >> { %v401_v47 = vld [vmem:[%s400_s12] sm:$0x1]  ;;  %s441_s21 = sld [smem:[#allocation6 + %s440_s30]]  ;;  %s660_s29 = sadd.s32 28, %s792_s11 }
 0x187   : >> { %v417_v49 = vld [vmem:[%s416_s26] sm:$0x1]  ;;  %s447_s6 = sadd.s32 %s660_s29, %s780_s9  ;;  %v402_v53 = vmax.f32 %v397_v44, %v401_v47  ;;  %s421_s22 = scalar_lea.vmem [#allocation2], %s875_s1  ;;  %v491_v1 = vsel %vm188_vm0, %v490_v60, %v473_v57 }
 0x188   : >> { %v418_v51 = vmax.f32 %v413_v48, %v417_v49  ;;  %s895_s2 = sld [smem:[#allocation6 + %s447_s6]]  ;;  %v422_v54 = vld [vmem:[%s421_s22] sm:$0x1]  ;;  %s428_s14 = scalar_lea.vmem [#allocation2], %s880_s19 }
 0x189   : >> { %v429_v55 = vld [vmem:[%s428_s14] sm:$0x1]  ;;  %s451_s13 = sadd.s32 1, %s447_s6  ;;  %s432_s18 = scalar_lea.vmem [#allocation2], %s884_s0  ;;  %v476_v0 = vrot.slane %v402_v53, 4 }
 0x18a   : >> { %v433_v56 = vld [vmem:[%s432_s18] sm:$0x1]  ;;  %s452_s28 = sld [smem:[#allocation6 + %s451_s13]]  ;;  %s437_s11 = scalar_lea.vmem [#allocation2], %s887_s16  ;;  %v423_v61 = vmax.f32 %v418_v51, %v422_v54 }
 0x18b   : >> { %v434_v58 = vmax.f32 %v429_v55, %v433_v56  ;;  %v438_v59 = vld [vmem:[%s437_s11] sm:$0x1]  ;;  %s456_s24 = sadd.s32 2, %s447_s6  ;;  %s461_s4 = sadd.s32 3, %s447_s6  ;;  %v493_v6 = vsel %vm492_vm5, %v491_v1, %v476_v0 }
 0x18c   : >> { %s457_s17 = sld [smem:[#allocation6 + %s456_s24]]  ;;  %s442_s25 = scalar_lea.vmem [#allocation2], %s441_s21  ;;  %v479_v4 = vrot.slane %v423_v61, 3 }
 0x18d   : >> { %v439_v62 = vmax.f32 %v434_v58, %v438_v59  ;;  %v443_v63 = vld [vmem:[%s442_s25] sm:$0x1]  ;;  %s462_s1 = sld [smem:[#allocation6 + %s461_s4]]  ;;  %s631_s19 = sshll.u32 %s724_s10, 3 }
 0x18e   : >> { %s449_s15 = scalar_lea.vmem [#allocation2], %s895_s2  ;;  %v495_v12 = vsel %vm494_vm6, %v493_v6, %v479_v4  ;;  %s500_s0 = scalar_lea.vmem [#allocation3], %s631_s19 }
 0x18f   : >> { %v444_v2 = vmax.f32 %v439_v62, %v443_v63  ;;  %v450_v3 = vld [vmem:[%s449_s15] sm:$0x1]  ;;  %s506_s23 = scalar_lea.vmem [#allocation4], %s631_s19  ;;  %s297_s10 = sadd.s32 1, %s724_s10  }
 0x190   : >> { %s453_s5 = scalar_lea.vmem [#allocation2], %s452_s28  ;;  %v501_v16 = vld [vmem:[%s500_s0] sm:$0xff]  ;;  %p294_p9 = scmp.ge.s32.totalorder %s297_s10, 2  }
 0x191   : >> { %v454_v5 = vld [vmem:[%s453_s5] sm:$0x1]  ;;  %v482_v9 = vrot.slane %v444_v2, 2  ;;  %vm518_vm10 = vcmask (%p294_p9), 519168  }
 0x192   : >> { %v455_v7 = vmax.f32 %v450_v3, %v454_v5  ;;  %s458_s27 = scalar_lea.vmem [#allocation2], %s457_s17 }
 0x193   : >> { %v459_v8 = vld [vmem:[%s458_s27] sm:$0x1]  ;;  %s463_s7 = scalar_lea.vmem [#allocation2], %s462_s1  ;;  %v497_v14 = vsel %vm496_vm7, %v495_v12, %v482_v9 }
 0x194   : >> { %v460_v10 = vmax.f32 %v455_v7, %v459_v8  ;;  %v464_v11 = vld [vmem:[%s463_s7] sm:$0x1] }
 0x196   : >> { %v465_v13 = vmax.f32 %v460_v10, %v464_v11 }
 0x198   : >> { %v485_v15 = vrot.slane %v465_v13, 1 }
 0x19a   : >> { %v499_v17 = vsel %vm498_vm8, %v497_v14, %v485_v15 }
 0x19b   : >> { %v502_v18 = vadd.f32 %v501_v16, %v499_v17 }
 0x19c   : > { %296 = sbr.rel (!%p294_p9) target bundleno = 347 (0x15b), region = 103 }
 0x19d   : >> { %vm503_vm9 = vcmp.gt.f32.partialorder %v502_v18, 0.0  ;;  %v504_v19 = vmul.f32 0.2, %v502_v18 }
 0x19f   : >> { %v505_v20 = vsel %vm503_vm9, %v502_v18, %v504_v19 }
 0x1a0   : >> { %507 = vst.msk [vmem:[%s506_s23] sm:$0xff] %vm267_vm2, %v505_v20 }
 0x1a7   : > { %v508_v21 = vld [vmem:[#allocation4] sm:$0xff]  ;;  %v509_v22 = vld [vmem:[#allocation4 + $0x8] sm:$0xff] }
 0x1a8   : > { %v661_v23 = vpack.c.bf16 %v508_v21, %v508_v21  ;;  %v662_v24 = vpack.c.bf16 %v509_v22, %v509_v22 }
 0x1aa   : > { %519 = vst.msk [vmem:[%s778_s8] sm:$0xf] %vm518_vm10, %v661_v23  ;;  %520 = vst.msk [vmem:[%s778_s8 + $0x4] sm:$0xf] %vm518_vm10, %v662_v24 }
 0x1ab PF: > { %s20_s20 = sadd.s32 1, %s720_s20  }
 0x1ac   : > { %p17_p10 = scmp.ge.s32.totalorder %s20_s20, 4  }
 0x1ae   :  { %19 = sbr.rel (!%p17_p10) target bundleno = 18 (0x12), region = 114 }

// kernel: dgcnn_forward.7
= control target key start
LH: loop header
LB: loop body
LE: loop exit
PB: predicated region body
PF: predicated region fallthrough
CT: control target
= control target key end

     0   :  { %s946_s0 = inlined_call_operand.vmem [shape: s32[128], index: 0, kind: input, shape index: {}]   ;;  %s947_s1 = inlined_call_operand.vmem [shape: bf16[2,16,64], index: 1, kind: input, shape index: {}]   ;;  %s948_s2 = inlined_call_operand.vmem [shape: bf16[64,128], index: 2, kind: input, shape index: {}]   ;;  %s949_s3 = inlined_call_operand.vmem [shape: f32[1,64], index: 3, kind: input, shape index: {}]   ;;  %s950_s4 = inlined_call_operand.vmem [shape: bf16[2,16,64], index: 4, kind: output, shape index: {}]  }
   0x1   :  { %951 = sst [smem:[#allocation8_spill]] %s947_s1  ;;  %s9_s17 = sshll.u32 %s946_s0, 4  ;;  %s10_s17 = int_to_ptr.vmem [resolvable:$true] %s9_s17 }
   0x2   :  { %952 = sst [smem:[#allocation9_spill]] %s948_s2  ;;  %s711_s18 = scalar_lea.vmem %s10_s17, 16 }
   0x3   :  { %953 = sst [smem:[#allocation10_spill]] %s949_s3  ;;  %p712_p0 = scmp.ne.s32.totalorder %s10_s17, %s711_s18 }
   0x4   :  { %954 = sst [smem:[#allocation11_spill]] %s950_s4  ;;  %p716_p1 = scmp.lt.s32.totalorder %s10_s17, %s10_s17 }
   0x5   :  { %p717_p2 = scmp.lt.s32.totalorder %s711_s18, %s711_s18 }
   0x7   :  { %p718_p3 = por %p717_p2, %p716_p1 }
   0x9   :  { %p719_p4 = pnand %p718_p3, %p712_p0 }
   0xb   :  { %722 = shalt.err (!%p719_p4)  }
   0xc   :  { %s741_s19 = smov [#allocation6]  }
   0xd   :  { %12 = dma.vmem_to_smem %s10_s17, 16, %s741_s19, [#allocation5] }
   0xe   :  { %731 = dma.done.wait [#allocation5], 16 }
   0xf   :  { %732 = vsyncadd [#allocation5], 4294967280 }
  0x10   :  { %14 = sfence }
  0x11   :  { %s773_s20 = smov 0  }
  0x12 LB: > { %s779_s0 = sadd.s32 4294967295, %s735_s20   ;;  %p617_p5 = scmp.ge.s32.totalorder %s735_s20, 1  ;;  %s735_s20 = sphi %s773_s20, %s20_s20  }
  0x13   : > { %p144_p6 = scmp.lt.s32.totalorder %s735_s20, 3 }
  0x15   : > { %p145_p7 = pnand %p617_p5, %p144_p6 }
  0x16   : > { %s955_s2 = sld [smem:[#allocation9_spill]] (!%p145_p7)  ;;  %p168_p8 = scmp.lt.s32.totalorder (!%p145_p7), %s779_s0, 1 }
  0x17   : > { %148 = sbr.rel (%p145_p7) target bundleno = 440 (0x1b8), region = 32  ;;  %s956_s3 = sld [smem:[#allocation10_spill]] (!%p145_p7) }
  0x18   : > { %s744_s5 = smov (!%p145_p7), 64   ;;  %s957_s1 = sld [smem:[#allocation8_spill]] (!%p145_p7) }
  0x19   : > { %s958_s4 = sld [smem:[#allocation11_spill]] (!%p145_p7)  ;;  %s810_s14 = sshll.u32 (!%p145_p7), %s779_s0, 6 }
  0x1a   : > { %s816_s15 = smov (!%p145_p7), 0  }
  0x1c   : > { %v706_v0 = vld [vmem:[%s955_s2 + $0x18] sm:$0xff]   ;;  %v742_v1 = vmov 0.0   ;;  %v707_v2 = vld [vmem:[%s955_s2 + $0x10] sm:$0xff]   ;;  %vm743_vm0 = vmmov 0   ;;  %s169_s25 = scalar_select %p168_p8, %s779_s0, 1  ;;  %v708_v4 = vld [vmem:[%s955_s2 + $0x8] sm:$0xff]  }
  0x1d   : > { %674 = vmatprep.subr.bf16.mxu0 %v742_v1  ;;  %682 = vmatprep.mubr.msk.bf16.mxu0 %vm743_vm0, %v742_v1  ;;  %v628_v3 = vld [vmem:[%s956_s3] ss:$0 sm:$0xff]  ;;  %vm218_vm1 = vcmask 523264  }
  0x1e   : > { %675 = vmatpush3.bf16.msra.mxu0 %v706_v0  ;;  %s643_s30 = sshll.u32 %s169_s25, 3  ;;  %271 = vrot.lane.b32.xlu0 %v628_v3, %s744_s5  ;;  %v709_v5 = vld [vmem:[%s955_s2] sm:$0xff]  }
  0x1f   : > { %676 = vmatprep.subr.bf16.mxu0 %v742_v1  ;;  %s172_s8 = scalar_lea.vmem %s957_s1, %s643_s30  ;;  %s803_s11 = scalar_lea.vmem %s958_s4, %s643_s30 }
  0x20   : > { %v710_v6 = vld [vmem:[%s172_s8] sm:$0xff]  }
  0x22   : > { %677 = vmatpush3.bf16.msra.mxu0 %v707_v2 }
  0x23   : > { %678 = vmatprep.subr.bf16.mxu0 %v742_v1 }
  0x26   : > { %679 = vmatpush3.bf16.msra.mxu0 %v708_v4 }
  0x27   : > { %680 = vmatprep.subr.bf16.mxu0 %v742_v1 }
  0x2a   : > { %681 = vmatpush3.bf16.msra.mxu0 %v709_v5 }
  0x2d   : > { %683 = vmatmul.mubr.msk.bf16.vlgmr.msra.gmra.mxu0 %vm218_vm1, %v710_v6 }
  0x90   : > { %v272_v7 = vpop.permute.xlu0 %271 }
  0xed   : > { %v256_v8 = vpop.f32.mrf.mxu0 }
  0xee   : > { %263 = vst.msk [vmem:[#allocation2] sm:$0xff] %vm218_vm1, %v256_v8  ;;  %v274_v9 = vadd.f32 %v272_v7, %v256_v8 }
  0xef   : > { %v684_v10 = vpop.f32.mrf.mxu0 }
  0xf0   : > { %278 = vrot.lane.b32.xlu0 %v274_v9, %s744_s5 }
  0xf1   : > { %v259_v11 = vpop.f32.mrf.mxu0 }
  0xf2   : > { %264 = vst.msk [vmem:[#allocation2 + $0x8] sm:$0xff] %vm218_vm1, %v259_v11  ;;  %v275_v12 = vadd.f32 %v272_v7, %v259_v11 }
  0xf3   : > { %v685_v13 = vpop.f32.mrf.mxu0 }
  0xf4   : > { %280 = vrot.lane.b32.xlu1 %v275_v12, %s744_s5 }
 0x162   : > { %v279_v14 = vpop.permute.xlu0 %278 }
 0x163   : > { %284 = vst.msk [vmem:[#allocation3] sm:$0xff] %vm218_vm1, %v279_v14 }
 0x166   : > { %v281_v15 = vpop.permute.xlu1 %280 }
 0x167   : > { %285 = vst.msk [vmem:[#allocation3 + $0x8] sm:$0xff] %vm218_vm1, %v281_v15 }
 0x168 LB: >> { %s822_s16 = sshll.u32 %s739_s15, 5  ;;  %vm482_vm2 = vcmask 1040384   ;;  %vm484_vm3 = vcmask 1041408   ;;  %vm486_vm4 = vcmask 1042432   ;;  %vm488_vm5 = vcmask 1043456   ;;  %s739_s15 = sphi %s816_s15, %s292_s15  }
 0x169   : >> { %s295_s17 = sadd.s32 %s822_s16, %s810_s14  ;;  %s647_s18 = sadd.s32 4, %s822_s16  ;;  %vm490_vm6 = vcmask 1044480   ;;  %vm492_vm7 = vcmask 1045504   ;;  %vm494_vm8 = vcmask 1046528  }
 0x16a   : >> { %s827_s19 = sld [smem:[#allocation6 + %s295_s17]]  ;;  %s299_s0 = sadd.s32 1, %s295_s17 }
 0x16b   : >> { %s829_s21 = sld [smem:[#allocation6 + %s299_s0]]  ;;  %s304_s22 = sadd.s32 2, %s295_s17 }
 0x16c   : >> { %s831_s23 = sld [smem:[#allocation6 + %s304_s22]]  ;;  %s309_s24 = sadd.s32 3, %s295_s17 }
 0x16d   : >> { %s833_s25 = sld [smem:[#allocation6 + %s309_s24]]  ;;  %s316_s26 = sadd.s32 %s647_s18, %s810_s14 }
 0x16e   : >> { %s317_s27 = sld [smem:[#allocation6 + %s316_s26]]  ;;  %s320_s28 = sadd.s32 1, %s316_s26 }
 0x16f   : >> { %s321_s29 = sld [smem:[#allocation6 + %s320_s28]]  ;;  %s325_s30 = sadd.s32 2, %s316_s26 }
 0x170   : >> { %s836_s5 = sld [smem:[#allocation6 + %s325_s30]]  ;;  %s330_s6 = sadd.s32 3, %s316_s26 }
 0x171   : >> { %s838_s7 = sld [smem:[#allocation6 + %s330_s6]]  ;;  %s649_s8 = sadd.s32 8, %s822_s16 }
 0x172   : >> { %s337_s9 = sadd.s32 %s649_s8, %s810_s14  ;;  %s651_s22 = sadd.s32 12, %s822_s16 }
 0x173   : >> { %s842_s10 = sld [smem:[#allocation6 + %s337_s9]]  ;;  %s341_s12 = sadd.s32 1, %s337_s9 }
 0x174   : >> { %s844_s13 = sld [smem:[#allocation6 + %s341_s12]]  ;;  %s346_s17 = sadd.s32 2, %s337_s9 }
 0x175   : >> { %s846_s18 = sld [smem:[#allocation6 + %s346_s17]]  ;;  %s351_s0 = sadd.s32 3, %s337_s9 }
 0x176   : >> { %s849_s24 = sld [smem:[#allocation6 + %s351_s0]]  ;;  %s358_s28 = sadd.s32 %s651_s22, %s810_s14 }
 0x177   : >> { %s852_s26 = sld [smem:[#allocation6 + %s358_s28]]  ;;  %s362_s30 = sadd.s32 1, %s358_s28 }
 0x178   : >> { %s367_s6 = sadd.s32 2, %s358_s28  ;;  %s854_s8 = sld [smem:[#allocation6 + %s362_s30]] }
 0x179   : >> { %s856_s1 = sld [smem:[#allocation6 + %s367_s6]]  ;;  %s372_s12 = sadd.s32 3, %s358_s28 }
 0x17a   : >> { %s653_s2 = sadd.s32 16, %s822_s16  ;;  %s859_s17 = sld [smem:[#allocation6 + %s372_s12]] }
 0x17b   : >> { %s379_s9 = sadd.s32 %s653_s2, %s810_s14  ;;  %s318_s3 = scalar_lea.vmem [#allocation2], %s317_s27 }
 0x17c   : >> { %v319_v16 = vld [vmem:[%s318_s3] sm:$0x1]  ;;  %s322_s0 = scalar_lea.vmem [#allocation2], %s321_s29  ;;  %s862_s22 = sld [smem:[#allocation6 + %s379_s9]] }
 0x17d   : >> { %v323_v17 = vld [vmem:[%s322_s0] sm:$0x1]  ;;  %s383_s4 = sadd.s32 1, %s379_s9  ;;  %s297_s6 = scalar_lea.vmem [#allocation2], %s827_s19 }
 0x17e   : >> { %s864_s30 = sld [smem:[#allocation6 + %s383_s4]]  ;;  %v298_v18 = vld [vmem:[%s297_s6] sm:$0x1]  ;;  %s388_s28 = sadd.s32 2, %s379_s9  ;;  %v324_v19 = vmax.f32 %v319_v16, %v323_v17 }
 0x17f   : >> { %s339_s12 = scalar_lea.vmem [#allocation2], %s842_s10  ;;  %s343_s2 = scalar_lea.vmem [#allocation2], %s844_s13 }
 0x180   : >> { %v340_v20 = vld [vmem:[%s339_s12] sm:$0x1]  ;;  %s869_s3 = sld [smem:[#allocation6 + %s388_s28]]  ;;  %s393_s27 = sadd.s32 3, %s379_s9 }
 0x181   : >> { %v344_v21 = vld [vmem:[%s343_s2] sm:$0x1]  ;;  %s301_s29 = scalar_lea.vmem [#allocation2], %s829_s21  ;;  %s327_s4 = scalar_lea.vmem [#allocation2], %s836_s5 }
 0x182   : >> { %v302_v22 = vld [vmem:[%s301_s29] sm:$0x1]  ;;  %s873_s19 = sld [smem:[#allocation6 + %s393_s27]]  ;;  %s655_s0 = sadd.s32 20, %s822_s16  ;;  %v345_v24 = vmax.f32 %v340_v20, %v344_v21 }
 0x183   : >> { %v328_v23 = vld [vmem:[%s327_s4] sm:$0x1]  ;;  %s657_s6 = sadd.s32 24, %s822_s16  ;;  %s360_s10 = scalar_lea.vmem [#allocation2], %s852_s26  ;;  %v303_v27 = vmax.f32 %v298_v18, %v302_v22 }
 0x184   : >> { %v361_v25 = vld [vmem:[%s360_s10] sm:$0x1]  ;;  %s364_s13 = scalar_lea.vmem [#allocation2], %s854_s8  ;;  %s880_s28 = sadd.s32 %s655_s0, %s810_s14  ;;  %v329_v28 = vmax.f32 %v324_v19, %v328_v23 }
 0x185   : >> { %v365_v26 = vld [vmem:[%s364_s13] sm:$0x1]  ;;  %s348_s21 = scalar_lea.vmem [#allocation2], %s846_s18  ;;  %s884_s5 = sld [smem:[#allocation6 + %s880_s28]] }
 0x186   : >> { %v349_v29 = vld [vmem:[%s348_s21] sm:$0x1]  ;;  %s306_s9 = scalar_lea.vmem [#allocation2], %s831_s23  ;;  %s332_s26 = scalar_lea.vmem [#allocation2], %s838_s7  ;;  %v366_v32 = vmax.f32 %v361_v25, %v365_v26 }
 0x187   : >> { %v307_v30 = vld [vmem:[%s306_s9] sm:$0x1]  ;;  %s404_s8 = sadd.s32 1, %s880_s28  ;;  %s409_s12 = sadd.s32 2, %s880_s28  ;;  %v350_v35 = vmax.f32 %v345_v24, %v349_v29 }
 0x188   : >> { %v333_v31 = vld [vmem:[%s332_s26] sm:$0x1]  ;;  %s381_s2 = scalar_lea.vmem [#allocation2], %s862_s22  ;;  %s385_s27 = scalar_lea.vmem [#allocation2], %s864_s30  ;;  %v308_v37 = vmax.f32 %v303_v27, %v307_v30 }
 0x189   : >> { %v382_v33 = vld [vmem:[%s381_s2] sm:$0x1]  ;;  %s892_s18 = sld [smem:[#allocation6 + %s404_s8]]  ;;  %s369_s23 = scalar_lea.vmem [#allocation2], %s856_s1  ;;  %v334_v38 = vmax.f32 %v329_v28, %v333_v31 }
 0x18a   : >> { %v386_v34 = vld [vmem:[%s385_s27] sm:$0x1]  ;;  %s895_s7 = sld [smem:[#allocation6 + %s409_s12]]  ;;  %s353_s29 = scalar_lea.vmem [#allocation2], %s849_s24 }
 0x18b   : >> { %v370_v36 = vld [vmem:[%s369_s23] sm:$0x1]  ;;  %s414_s4 = sadd.s32 3, %s880_s28  ;;  %s902_s22 = sadd.s32 %s657_s6, %s810_s14  ;;  %v387_v41 = vmax.f32 %v382_v33, %v386_v34  ;;  %v462_v48 = vrot.slane %v334_v38, 7 }
 0x18c   : >> { %v354_v39 = vld [vmem:[%s353_s29] sm:$0x1]  ;;  %s311_s30 = scalar_lea.vmem [#allocation2], %s833_s25  ;;  %s905_s1 = sld [smem:[#allocation6 + %s414_s4]]  ;;  %v371_v42 = vmax.f32 %v366_v32, %v370_v36 }
 0x18d   : >> { %v312_v40 = vld [vmem:[%s311_s30] sm:$0x1]  ;;  %s425_s0 = sadd.s32 1, %s902_s22  ;;  %s390_s10 = scalar_lea.vmem [#allocation2], %s869_s3  ;;  %v355_v44 = vmax.f32 %v350_v35, %v354_v39 }
 0x18e   : >> { %v391_v43 = vld [vmem:[%s390_s10] sm:$0x1]  ;;  %s910_s24 = sld [smem:[#allocation6 + %s902_s22]]  ;;  %s374_s6 = scalar_lea.vmem [#allocation2], %s859_s17  ;;  %v313_v47 = vmax.f32 %v308_v37, %v312_v40 }
 0x18f   : >> { %v375_v45 = vld [vmem:[%s374_s6] sm:$0x1]  ;;  %s402_s13 = scalar_lea.vmem [#allocation2], %s884_s5  ;;  %s914_s25 = sld [smem:[#allocation6 + %s425_s0]]  ;;  %v392_v49 = vmax.f32 %v387_v41, %v391_v43  ;;  %v465_v55 = vrot.slane %v355_v44, 6 }
 0x190   : >> { %v403_v46 = vld [vmem:[%s402_s13] sm:$0x1]  ;;  %s430_s28 = sadd.s32 2, %s902_s22  ;;  %s406_s3 = scalar_lea.vmem [#allocation2], %s892_s18  ;;  %v376_v51 = vmax.f32 %v371_v42, %v375_v45  ;;  %v483_v57 = vsel %vm482_vm2, %v313_v47, %v462_v48 }
 0x191   : >> { %s917_s21 = sld [smem:[#allocation6 + %s430_s28]]  ;;  %v407_v50 = vld [vmem:[%s406_s3] sm:$0x1]  ;;  %s435_s9 = sadd.s32 3, %s902_s22  ;;  %v485_v1 = vsel %vm484_vm3, %v483_v57, %v465_v55 }
 0x192   : >> { %s395_s17 = scalar_lea.vmem [#allocation2], %s873_s19  ;;  %v408_v53 = vmax.f32 %v403_v46, %v407_v50  ;;  %s411_s5 = scalar_lea.vmem [#allocation2], %s895_s7  ;;  %v468_v62 = vrot.slane %v376_v51, 5 }
 0x193   : >> { %v396_v52 = vld [vmem:[%s395_s17] sm:$0x1]  ;;  %s923_s26 = sld [smem:[#allocation6 + %s435_s9]]  ;;  %s659_s8 = sadd.s32 28, %s822_s16 }
 0x194   : >> { %v412_v54 = vld [vmem:[%s411_s5] sm:$0x1]  ;;  %s442_s12 = sadd.s32 %s659_s8, %s810_s14  ;;  %v397_v58 = vmax.f32 %v392_v49, %v396_v52  ;;  %s416_s27 = scalar_lea.vmem [#allocation2], %s905_s1  ;;  %v487_v6 = vsel %vm486_vm4, %v485_v1, %v468_v62 }
 0x195   : >> { %v413_v56 = vmax.f32 %v408_v53, %v412_v54  ;;  %s927_s2 = sld [smem:[#allocation6 + %s442_s12]]  ;;  %v417_v59 = vld [vmem:[%s416_s27] sm:$0x1]  ;;  %s423_s19 = scalar_lea.vmem [#allocation2], %s910_s24 }
 0x196   : >> { %v424_v60 = vld [vmem:[%s423_s19] sm:$0x1]  ;;  %s446_s18 = sadd.s32 1, %s442_s12  ;;  %s427_s23 = scalar_lea.vmem [#allocation2], %s914_s25  ;;  %v471_v5 = vrot.slane %v397_v58, 4 }
 0x197   : >> { %v428_v61 = vld [vmem:[%s427_s23] sm:$0x1]  ;;  %s447_s7 = sld [smem:[#allocation6 + %s446_s18]]  ;;  %s432_s16 = scalar_lea.vmem [#allocation2], %s917_s21  ;;  %v418_v2 = vmax.f32 %v413_v56, %v417_v59 }
 0x198   : >> { %v429_v63 = vmax.f32 %v424_v60, %v428_v61  ;;  %v433_v0 = vld [vmem:[%s432_s16] sm:$0x1]  ;;  %s451_s29 = sadd.s32 2, %s442_s12  ;;  %s456_s4 = sadd.s32 3, %s442_s12  ;;  %v489_v11 = vsel %vm488_vm5, %v487_v6, %v471_v5 }
 0x199   : >> { %s452_s22 = sld [smem:[#allocation6 + %s451_s29]]  ;;  %s437_s30 = scalar_lea.vmem [#allocation2], %s923_s26  ;;  %v474_v9 = vrot.slane %v418_v2, 3 }
 0x19a   : >> { %v434_v3 = vmax.f32 %v429_v63, %v433_v0  ;;  %v438_v4 = vld [vmem:[%s437_s30] sm:$0x1]  ;;  %s457_s1 = sld [smem:[#allocation6 + %s456_s4]]  ;;  %s630_s24 = sshll.u32 %s739_s15, 3 }
 0x19b   : >> { %s444_s0 = scalar_lea.vmem [#allocation2], %s927_s2  ;;  %v491_v17 = vsel %vm490_vm6, %v489_v11, %v474_v9  ;;  %s496_s25 = scalar_lea.vmem [#allocation3], %s630_s24 }
 0x19c   : >> { %v439_v7 = vmax.f32 %v434_v3, %v438_v4  ;;  %v445_v8 = vld [vmem:[%s444_s0] sm:$0x1]  ;;  %s502_s28 = scalar_lea.vmem [#allocation4], %s630_s24  ;;  %s292_s15 = sadd.s32 1, %s739_s15  }
 0x19d   : >> { %s448_s10 = scalar_lea.vmem [#allocation2], %s447_s7  ;;  %v497_v21 = vld [vmem:[%s496_s25] sm:$0xff]  ;;  %p289_p9 = scmp.ge.s32.totalorder %s292_s15, 2  }
 0x19e   : >> { %v449_v10 = vld [vmem:[%s448_s10] sm:$0x1]  ;;  %v477_v14 = vrot.slane %v439_v7, 2  ;;  %vm514_vm10 = vcmask (%p289_p9), 519168  }
 0x19f   : >> { %v450_v12 = vmax.f32 %v445_v8, %v449_v10  ;;  %s453_s6 = scalar_lea.vmem [#allocation2], %s452_s22 }
 0x1a0   : >> { %v454_v13 = vld [vmem:[%s453_s6] sm:$0x1]  ;;  %s458_s13 = scalar_lea.vmem [#allocation2], %s457_s1  ;;  %v493_v19 = vsel %vm492_vm7, %v491_v17, %v477_v14 }
 0x1a1   : >> { %v455_v15 = vmax.f32 %v450_v12, %v454_v13  ;;  %v459_v16 = vld [vmem:[%s458_s13] sm:$0x1] }
 0x1a3   : >> { %v460_v18 = vmax.f32 %v455_v15, %v459_v16 }
 0x1a5   : >> { %v480_v20 = vrot.slane %v460_v18, 1 }
 0x1a7   : >> { %v495_v22 = vsel %vm494_vm8, %v493_v19, %v480_v20 }
 0x1a8   : >> { %v498_v23 = vadd.f32 %v497_v21, %v495_v22 }
 0x1a9   : > { %291 = sbr.rel (!%p289_p9) target bundleno = 360 (0x168), region = 103 }
 0x1aa   : >> { %vm499_vm9 = vcmp.gt.f32.partialorder %v498_v23, 0.0  ;;  %v500_v24 = vmul.f32 0.2, %v498_v23 }
 0x1ac   : >> { %v501_v25 = vsel %vm499_vm9, %v498_v23, %v500_v24 }
 0x1ad   : >> { %503 = vst.msk [vmem:[%s502_s28] sm:$0xff] %vm218_vm1, %v501_v25 }
 0x1b4   : > { %v504_v26 = vld [vmem:[#allocation4] sm:$0xff]  ;;  %v505_v27 = vld [vmem:[#allocation4 + $0x8] sm:$0xff] }
 0x1b5   : > { %v660_v28 = vpack.c.bf16 %v504_v26, %v504_v26  ;;  %v661_v29 = vpack.c.bf16 %v505_v27, %v505_v27 }
 0x1b7   : > { %515 = vst.msk [vmem:[%s803_s11] sm:$0xf] %vm514_vm10, %v660_v28  ;;  %516 = vst.msk [vmem:[%s803_s11 + $0x4] sm:$0xf] %vm514_vm10, %v661_v29 }
 0x1b8 PF: > { %s20_s20 = sadd.s32 1, %s735_s20  }
 0x1b9   : > { %p17_p10 = scmp.ge.s32.totalorder %s20_s20, 4  }
 0x1bb   :  { %19 = sbr.rel (!%p17_p10) target bundleno = 18 (0x12), region = 114 }

// kernel: dgcnn_forward.8
= control target key start
LH: loop header
LB: loop body
LE: loop exit
PB: predicated region body
PF: predicated region fallthrough
CT: control target
= control target key end

     0   :  { %s954_s0 = inlined_call_operand.vmem [shape: s32[128], index: 0, kind: input, shape index: {}]   ;;  %s955_s1 = inlined_call_operand.vmem [shape: bf16[2,16,64], index: 1, kind: input, shape index: {}]   ;;  %s956_s2 = inlined_call_operand.vmem [shape: bf16[64,256], index: 2, kind: input, shape index: {}]   ;;  %s957_s3 = inlined_call_operand.vmem [shape: f32[1,128], index: 3, kind: input, shape index: {}]   ;;  %s958_s4 = inlined_call_operand.vmem [shape: bf16[2,16,128], index: 4, kind: output, shape index: {}]  }
   0x1   :  { %959 = sst [smem:[#allocation8_spill]] %s955_s1  ;;  %s9_s17 = sshll.u32 %s954_s0, 4  ;;  %s10_s17 = int_to_ptr.vmem [resolvable:$true] %s9_s17 }
   0x2   :  { %960 = sst [smem:[#allocation9_spill]] %s956_s2  ;;  %s716_s18 = scalar_lea.vmem %s10_s17, 16 }
   0x3   :  { %961 = sst [smem:[#allocation10_spill]] %s957_s3  ;;  %p717_p0 = scmp.ne.s32.totalorder %s10_s17, %s716_s18 }
   0x4   :  { %962 = sst [smem:[#allocation11_spill]] %s958_s4  ;;  %p721_p1 = scmp.lt.s32.totalorder %s10_s17, %s10_s17 }
   0x5   :  { %p722_p2 = scmp.lt.s32.totalorder %s716_s18, %s716_s18 }
   0x7   :  { %p723_p3 = por %p722_p2, %p721_p1 }
   0x9   :  { %p724_p4 = pnand %p723_p3, %p717_p0 }
   0xb   :  { %727 = shalt.err (!%p724_p4)  }
   0xc   :  { %s746_s19 = smov [#allocation6]  }
   0xd   :  { %12 = dma.vmem_to_smem %s10_s17, 16, %s746_s19, [#allocation5] }
   0xe   :  { %736 = dma.done.wait [#allocation5], 16 }
   0xf   :  { %737 = vsyncadd [#allocation5], 4294967280 }
  0x10   :  { %14 = sfence }
  0x11   :  { %s776_s20 = smov 0  }
  0x12 LB: > { %s782_s0 = sadd.s32 4294967295, %s740_s20   ;;  %p624_p5 = scmp.ge.s32.totalorder %s740_s20, 1  ;;  %s740_s20 = sphi %s776_s20, %s20_s20  }
  0x13   : > { %p144_p6 = scmp.lt.s32.totalorder %s740_s20, 3 }
  0x15   : > { %p145_p7 = pnand %p624_p5, %p144_p6 }
  0x16   : > { %s963_s2 = sld [smem:[#allocation9_spill]] (!%p145_p7)  ;;  %p168_p8 = scmp.lt.s32.totalorder (!%p145_p7), %s782_s0, 1 }
  0x17   : > { %148 = sbr.rel (%p145_p7) target bundleno = 327 (0x147), region = 32  ;;  %s964_s1 = sld [smem:[#allocation8_spill]] (!%p145_p7) }
  0x18   : > { %s965_s4 = sld [smem:[#allocation11_spill]] (!%p145_p7)  ;;  %s821_s19 = sshll.u32 (!%p145_p7), %s782_s0, 6 }
  0x19   : > { %s966_s3 = sld [smem:[#allocation10_spill]] (!%p145_p7)  ;;  %s826_s23 = smov (!%p145_p7), 0  }
  0x1c   : > { %v703_v0 = vld [vmem:[%s963_s2 + $0x34] ss:$8 sps:$4 sm:$0xff]   ;;  %v705_v1 = vld [vmem:[%s963_s2 + $0x30] ss:$8 sps:$4 sm:$0xff]   ;;  %v747_v2 = vmov 0   ;;  %s169_s27 = scalar_select %p168_p8, %s782_s0, 1 }
  0x1d   : > { %270 = vmatprep.mubr.bf16.mxu0 %v747_v2  ;;  %246 = vmatprep.subr.bf16.mxu0 %v703_v0  ;;  %v706_v3 = vld [vmem:[%s963_s2 + $0x24] ss:$8 sps:$4 sm:$0xff]   ;;  %v708_v4 = vld [vmem:[%s963_s2 + $0x20] ss:$8 sps:$4 sm:$0xff]   ;;  %v709_v5 = vld [vmem:[%s963_s2 + $0x14] ss:$8 sps:$4 sm:$0xff]  }
  0x1e   : > { %247 = vmatpush1.bf16.msra.mxu0 %v705_v1  ;;  %s654_s6 = sshll.u32 %s169_s27, 3  ;;  %v711_v6 = vld [vmem:[%s963_s2 + $0x10] ss:$8 sps:$4 sm:$0xff]   ;;  %v712_v7 = vld [vmem:[%s963_s2 + $0x4] ss:$8 sps:$4 sm:$0xff]   ;;  %vm234_vm0 = vcmask 523264  }
  0x1f   : > { %248 = vmatprep.subr.bf16.mxu0 %v706_v3  ;;  %s172_s9 = scalar_lea.vmem %s964_s1, %s654_s6  ;;  %s809_s12 = scalar_lea.vmem %s965_s4, %s654_s6  ;;  %v714_v8 = vld [vmem:[%s963_s2] ss:$8 sps:$4 sm:$0xff]  }
  0x20   : > { %v715_v9 = vld [vmem:[%s172_s9] sm:$0xff]  }
  0x21   : > { %v639_v11 = vld [vmem:[%s966_s3] ss:$0 sm:$0xff] }
  0x22   : > { %249 = vmatpush1.bf16.msra.mxu0 %v708_v4 }
  0x23   : > { %250 = vmatprep.subr.bf16.mxu0 %v709_v5 }
  0x26   : > { %251 = vmatpush1.bf16.msra.mxu0 %v711_v6 }
  0x27   : > { %252 = vmatprep.subr.bf16.mxu0 %v712_v7 }
  0x2a   : > { %253 = vmatpush1.bf16.msra.mxu0 %v714_v8 }
  0x2d   : > { %638 = vmatmul.mubr.msk.bf16.vlgmr.msra.gmra.mxu0 %vm234_vm0, %v715_v9 }
  0xed   : > { %v272_v10 = vpop.f32.mrf.mxu0 }
  0xee   : > { %281 = vst [vmem:[#allocation2] sm:$0xff] %v272_v10 }
  0xef   : > { %v274_v12 = vpop.f32.mrf.mxu0 }
  0xf0   : > { %v290_v13 = vadd.f32 %v639_v11, %v274_v12 }
  0xf1   : > { %v276_v14 = vpop.f32.mrf.mxu0 }
  0xf2   : > { %292 = vst [vmem:[#allocation3] sm:$0xff] %v290_v13  ;;  %282 = vst [vmem:[#allocation2 + $0x8] sm:$0xff] %v276_v14 }
  0xf3   : > { %v278_v15 = vpop.f32.mrf.mxu0 }
  0xf4   : > { %v291_v16 = vadd.f32 %v639_v11, %v278_v15 }
  0xf6   : > { %293 = vst [vmem:[#allocation3 + $0x8] sm:$0xff] %v291_v16 }
  0xf7 LB: >> { %s832_s0 = sshll.u32 %s744_s23, 5  ;;  %vm490_vm1 = vcmask 1040384   ;;  %vm492_vm2 = vcmask 1041408   ;;  %vm494_vm3 = vcmask 1042432   ;;  %vm496_vm4 = vcmask 1043456   ;;  %s744_s23 = sphi %s826_s23, %s300_s23  }
  0xf8   : >> { %s303_s24 = sadd.s32 %s832_s0, %s821_s19  ;;  %s658_s25 = sadd.s32 4, %s832_s0  ;;  %vm498_vm5 = vcmask 1044480   ;;  %vm500_vm6 = vcmask 1045504   ;;  %vm502_vm7 = vcmask 1046528  }
  0xf9   : >> { %s837_s26 = sld [smem:[#allocation6 + %s303_s24]]  ;;  %s307_s27 = sadd.s32 1, %s303_s24 }
  0xfa   : >> { %s839_s28 = sld [smem:[#allocation6 + %s307_s27]]  ;;  %s312_s29 = sadd.s32 2, %s303_s24 }
  0xfb   : >> { %s841_s30 = sld [smem:[#allocation6 + %s312_s29]]  ;;  %s317_s5 = sadd.s32 3, %s303_s24 }
  0xfc   : >> { %s843_s6 = sld [smem:[#allocation6 + %s317_s5]]  ;;  %s324_s7 = sadd.s32 %s658_s25, %s821_s19 }
  0xfd   : >> { %s325_s8 = sld [smem:[#allocation6 + %s324_s7]]  ;;  %s328_s9 = sadd.s32 1, %s324_s7 }
  0xfe   : >> { %s329_s10 = sld [smem:[#allocation6 + %s328_s9]]  ;;  %s333_s11 = sadd.s32 2, %s324_s7 }
  0xff   : >> { %s846_s13 = sld [smem:[#allocation6 + %s333_s11]]  ;;  %s338_s14 = sadd.s32 3, %s324_s7 }
 0x100   : >> { %s848_s15 = sld [smem:[#allocation6 + %s338_s14]]  ;;  %s660_s16 = sadd.s32 8, %s832_s0 }
 0x101   : >> { %s345_s17 = sadd.s32 %s660_s16, %s821_s19  ;;  %s662_s29 = sadd.s32 12, %s832_s0 }
 0x102   : >> { %s852_s18 = sld [smem:[#allocation6 + %s345_s17]]  ;;  %s349_s21 = sadd.s32 1, %s345_s17 }
 0x103   : >> { %s854_s22 = sld [smem:[#allocation6 + %s349_s21]]  ;;  %s354_s24 = sadd.s32 2, %s345_s17 }
 0x104   : >> { %s856_s25 = sld [smem:[#allocation6 + %s354_s24]]  ;;  %s359_s27 = sadd.s32 3, %s345_s17 }
 0x105   : >> { %s859_s5 = sld [smem:[#allocation6 + %s359_s27]]  ;;  %s366_s9 = sadd.s32 %s662_s29, %s821_s19 }
 0x106   : >> { %s862_s7 = sld [smem:[#allocation6 + %s366_s9]]  ;;  %s370_s11 = sadd.s32 1, %s366_s9 }
 0x107   : >> { %s375_s14 = sadd.s32 2, %s366_s9  ;;  %s864_s16 = sld [smem:[#allocation6 + %s370_s11]] }
 0x108   : >> { %s866_s1 = sld [smem:[#allocation6 + %s375_s14]]  ;;  %s380_s21 = sadd.s32 3, %s366_s9 }
 0x109   : >> { %s664_s2 = sadd.s32 16, %s832_s0  ;;  %s869_s24 = sld [smem:[#allocation6 + %s380_s21]] }
 0x10a   : >> { %s387_s17 = sadd.s32 %s664_s2, %s821_s19  ;;  %s326_s3 = scalar_lea.vmem [#allocation2], %s325_s8 }
 0x10b   : >> { %v327_v17 = vld [vmem:[%s326_s3] sm:$0x1]  ;;  %s330_s27 = scalar_lea.vmem [#allocation2], %s329_s10  ;;  %s872_s29 = sld [smem:[#allocation6 + %s387_s17]] }
 0x10c   : >> { %v331_v18 = vld [vmem:[%s330_s27] sm:$0x1]  ;;  %s391_s4 = sadd.s32 1, %s387_s17  ;;  %s305_s14 = scalar_lea.vmem [#allocation2], %s837_s26 }
 0x10d   : >> { %s874_s11 = sld [smem:[#allocation6 + %s391_s4]]  ;;  %v306_v19 = vld [vmem:[%s305_s14] sm:$0x1]  ;;  %s396_s9 = sadd.s32 2, %s387_s17  ;;  %v332_v20 = vmax.f32 %v327_v17, %v331_v18 }
 0x10e   : >> { %s347_s21 = scalar_lea.vmem [#allocation2], %s852_s18  ;;  %s351_s2 = scalar_lea.vmem [#allocation2], %s854_s22 }
 0x10f   : >> { %v348_v21 = vld [vmem:[%s347_s21] sm:$0x1]  ;;  %s879_s3 = sld [smem:[#allocation6 + %s396_s9]]  ;;  %s401_s8 = sadd.s32 3, %s387_s17 }
 0x110   : >> { %v352_v22 = vld [vmem:[%s351_s2] sm:$0x1]  ;;  %s309_s10 = scalar_lea.vmem [#allocation2], %s839_s28  ;;  %s335_s4 = scalar_lea.vmem [#allocation2], %s846_s13 }
 0x111   : >> { %v310_v23 = vld [vmem:[%s309_s10] sm:$0x1]  ;;  %s883_s26 = sld [smem:[#allocation6 + %s401_s8]]  ;;  %s666_s27 = sadd.s32 20, %s832_s0  ;;  %v353_v25 = vmax.f32 %v348_v21, %v352_v22 }
 0x112   : >> { %v336_v24 = vld [vmem:[%s335_s4] sm:$0x1]  ;;  %s668_s14 = sadd.s32 24, %s832_s0  ;;  %s368_s18 = scalar_lea.vmem [#allocation2], %s862_s7  ;;  %v311_v28 = vmax.f32 %v306_v19, %v310_v23 }
 0x113   : >> { %v369_v26 = vld [vmem:[%s368_s18] sm:$0x1]  ;;  %s372_s22 = scalar_lea.vmem [#allocation2], %s864_s16  ;;  %s890_s9 = sadd.s32 %s666_s27, %s821_s19  ;;  %v337_v29 = vmax.f32 %v332_v20, %v336_v24 }
 0x114   : >> { %v373_v27 = vld [vmem:[%s372_s22] sm:$0x1]  ;;  %s356_s28 = scalar_lea.vmem [#allocation2], %s856_s25  ;;  %s894_s13 = sld [smem:[#allocation6 + %s890_s9]] }
 0x115   : >> { %v357_v30 = vld [vmem:[%s356_s28] sm:$0x1]  ;;  %s314_s17 = scalar_lea.vmem [#allocation2], %s841_s30  ;;  %s340_s7 = scalar_lea.vmem [#allocation2], %s848_s15  ;;  %v374_v33 = vmax.f32 %v369_v26, %v373_v27 }
 0x116   : >> { %v315_v31 = vld [vmem:[%s314_s17] sm:$0x1]  ;;  %s412_s16 = sadd.s32 1, %s890_s9  ;;  %s417_s21 = sadd.s32 2, %s890_s9  ;;  %v358_v36 = vmax.f32 %v353_v25, %v357_v30 }
 0x117   : >> { %v341_v32 = vld [vmem:[%s340_s7] sm:$0x1]  ;;  %s389_s2 = scalar_lea.vmem [#allocation2], %s872_s29  ;;  %s393_s8 = scalar_lea.vmem [#allocation2], %s874_s11  ;;  %v316_v38 = vmax.f32 %v311_v28, %v315_v31 }
 0x118   : >> { %v390_v34 = vld [vmem:[%s389_s2] sm:$0x1]  ;;  %s902_s25 = sld [smem:[#allocation6 + %s412_s16]]  ;;  %s377_s30 = scalar_lea.vmem [#allocation2], %s866_s1  ;;  %v342_v39 = vmax.f32 %v337_v29, %v341_v32 }
 0x119   : >> { %v394_v35 = vld [vmem:[%s393_s8] sm:$0x1]  ;;  %s905_s15 = sld [smem:[#allocation6 + %s417_s21]]  ;;  %s361_s10 = scalar_lea.vmem [#allocation2], %s859_s5 }
 0x11a   : >> { %v378_v37 = vld [vmem:[%s377_s30] sm:$0x1]  ;;  %s422_s4 = sadd.s32 3, %s890_s9  ;;  %s912_s29 = sadd.s32 %s668_s14, %s821_s19  ;;  %v395_v42 = vmax.f32 %v390_v34, %v394_v35  ;;  %v470_v49 = vrot.slane %v342_v39, 7 }
 0x11b   : >> { %v362_v40 = vld [vmem:[%s361_s10] sm:$0x1]  ;;  %s319_s11 = scalar_lea.vmem [#allocation2], %s843_s6  ;;  %s915_s1 = sld [smem:[#allocation6 + %s422_s4]]  ;;  %v379_v43 = vmax.f32 %v374_v33, %v378_v37 }
 0x11c   : >> { %v320_v41 = vld [vmem:[%s319_s11] sm:$0x1]  ;;  %s433_s27 = sadd.s32 1, %s912_s29  ;;  %s398_s18 = scalar_lea.vmem [#allocation2], %s879_s3  ;;  %v363_v45 = vmax.f32 %v358_v36, %v362_v40 }
 0x11d   : >> { %v399_v44 = vld [vmem:[%s398_s18] sm:$0x1]  ;;  %s920_s5 = sld [smem:[#allocation6 + %s912_s29]]  ;;  %s382_s14 = scalar_lea.vmem [#allocation2], %s869_s24  ;;  %v321_v48 = vmax.f32 %v316_v38, %v320_v41 }
 0x11e   : >> { %v383_v46 = vld [vmem:[%s382_s14] sm:$0x1]  ;;  %s410_s22 = scalar_lea.vmem [#allocation2], %s894_s13  ;;  %s924_s6 = sld [smem:[#allocation6 + %s433_s27]]  ;;  %v400_v50 = vmax.f32 %v395_v42, %v399_v44  ;;  %v473_v56 = vrot.slane %v363_v45, 6 }
 0x11f   : >> { %v411_v47 = vld [vmem:[%s410_s22] sm:$0x1]  ;;  %s438_s9 = sadd.s32 2, %s912_s29  ;;  %s414_s3 = scalar_lea.vmem [#allocation2], %s902_s25  ;;  %v384_v52 = vmax.f32 %v379_v43, %v383_v46  ;;  %v491_v58 = vsel %vm490_vm1, %v321_v48, %v470_v49 }
 0x120   : >> { %s927_s28 = sld [smem:[#allocation6 + %s438_s9]]  ;;  %v415_v51 = vld [vmem:[%s414_s3] sm:$0x1]  ;;  %s443_s17 = sadd.s32 3, %s912_s29  ;;  %v493_v2 = vsel %vm492_vm2, %v491_v58, %v473_v56 }
 0x121   : >> { %s403_s24 = scalar_lea.vmem [#allocation2], %s883_s26  ;;  %v416_v54 = vmax.f32 %v411_v47, %v415_v51  ;;  %s419_s13 = scalar_lea.vmem [#allocation2], %s905_s15  ;;  %v476_v63 = vrot.slane %v384_v52, 5 }
 0x122   : >> { %v404_v53 = vld [vmem:[%s403_s24] sm:$0x1]  ;;  %s933_s7 = sld [smem:[#allocation6 + %s443_s17]]  ;;  %s670_s16 = sadd.s32 28, %s832_s0 }
 0x123   : >> { %v420_v55 = vld [vmem:[%s419_s13] sm:$0x1]  ;;  %s450_s21 = sadd.s32 %s670_s16, %s821_s19  ;;  %v405_v59 = vmax.f32 %v400_v50, %v404_v53  ;;  %s424_s8 = scalar_lea.vmem [#allocation2], %s915_s1  ;;  %v495_v7 = vsel %vm494_vm3, %v493_v2, %v476_v63 }
 0x124   : >> { %v421_v57 = vmax.f32 %v416_v54, %v420_v55  ;;  %s937_s2 = sld [smem:[#allocation6 + %s450_s21]]  ;;  %v425_v60 = vld [vmem:[%s424_s8] sm:$0x1]  ;;  %s431_s26 = scalar_lea.vmem [#allocation2], %s920_s5 }
 0x125   : >> { %v432_v61 = vld [vmem:[%s431_s26] sm:$0x1]  ;;  %s454_s25 = sadd.s32 1, %s450_s21  ;;  %s435_s30 = scalar_lea.vmem [#allocation2], %s924_s6  ;;  %v479_v6 = vrot.slane %v405_v59, 4 }
 0x126   : >> { %v436_v62 = vld [vmem:[%s435_s30] sm:$0x1]  ;;  %s455_s15 = sld [smem:[#allocation6 + %s454_s25]]  ;;  %s440_s0 = scalar_lea.vmem [#allocation2], %s927_s28  ;;  %v426_v3 = vmax.f32 %v421_v57, %v425_v60 }
 0x127   : >> { %v437_v0 = vmax.f32 %v432_v61, %v436_v62  ;;  %v441_v1 = vld [vmem:[%s440_s0] sm:$0x1]  ;;  %s459_s10 = sadd.s32 2, %s450_s21  ;;  %s464_s4 = sadd.s32 3, %s450_s21  ;;  %v497_v12 = vsel %vm496_vm4, %v495_v7, %v479_v6 }
 0x128   : >> { %s460_s29 = sld [smem:[#allocation6 + %s459_s10]]  ;;  %s445_s11 = scalar_lea.vmem [#allocation2], %s933_s7  ;;  %v482_v10 = vrot.slane %v426_v3, 3 }
 0x129   : >> { %v442_v4 = vmax.f32 %v437_v0, %v441_v1  ;;  %v446_v5 = vld [vmem:[%s445_s11] sm:$0x1]  ;;  %s465_s1 = sld [smem:[#allocation6 + %s464_s4]]  ;;  %s641_s5 = sshll.u32 %s744_s23, 3 }
 0x12a   : >> { %s452_s27 = scalar_lea.vmem [#allocation2], %s937_s2  ;;  %v499_v18 = vsel %vm498_vm5, %v497_v12, %v482_v10  ;;  %s504_s6 = scalar_lea.vmem [#allocation3], %s641_s5 }
 0x12b   : >> { %v447_v8 = vmax.f32 %v442_v4, %v446_v5  ;;  %v453_v9 = vld [vmem:[%s452_s27] sm:$0x1]  ;;  %s510_s9 = scalar_lea.vmem [#allocation4], %s641_s5  ;;  %s300_s23 = sadd.s32 1, %s744_s23  }
 0x12c   : >> { %s456_s18 = scalar_lea.vmem [#allocation2], %s455_s15  ;;  %v505_v22 = vld [vmem:[%s504_s6] sm:$0xff]  ;;  %p297_p9 = scmp.ge.s32.totalorder %s300_s23, 2  }
 0x12d   : >> { %v457_v11 = vld [vmem:[%s456_s18] sm:$0x1]  ;;  %v485_v15 = vrot.slane %v447_v8, 2 }
 0x12e   : >> { %v458_v13 = vmax.f32 %v453_v9, %v457_v11  ;;  %s461_s14 = scalar_lea.vmem [#allocation2], %s460_s29 }
 0x12f   : >> { %v462_v14 = vld [vmem:[%s461_s14] sm:$0x1]  ;;  %s466_s22 = scalar_lea.vmem [#allocation2], %s465_s1  ;;  %v501_v20 = vsel %vm500_vm6, %v499_v18, %v485_v15 }
 0x130   : >> { %v463_v16 = vmax.f32 %v458_v13, %v462_v14  ;;  %v467_v17 = vld [vmem:[%s466_s22] sm:$0x1] }
 0x132   : >> { %v468_v19 = vmax.f32 %v463_v16, %v467_v17 }
 0x134   : >> { %v488_v21 = vrot.slane %v468_v19, 1 }
 0x136   : >> { %v503_v23 = vsel %vm502_vm7, %v501_v20, %v488_v21 }
 0x137   : >> { %v506_v24 = vadd.f32 %v505_v22, %v503_v23 }
 0x138   : > { %299 = sbr.rel (!%p297_p9) target bundleno = 247 (0xf7), region = 103 }
 0x139   : >> { %vm507_vm8 = vcmp.gt.f32.partialorder %v506_v24, 0.0  ;;  %v508_v25 = vmul.f32 0.2, %v506_v24 }
 0x13b   : >> { %v509_v26 = vsel %vm507_vm8, %v506_v24, %v508_v25 }
 0x13c   : >> { %511 = vst [vmem:[%s510_s9] sm:$0xff] %v509_v26 }
 0x143   : > { %v512_v27 = vld [vmem:[#allocation4] sm:$0xff]  ;;  %v513_v28 = vld [vmem:[#allocation4 + $0x8] sm:$0xff] }
 0x144   : > { %v676_v29 = vpack.c.bf16 %v513_v28, %v512_v27 }
 0x146   : > { %677 = vst [vmem:[%s809_s12] sm:$0xff] %v676_v29  }
 0x147 PF: > { %s20_s20 = sadd.s32 1, %s740_s20  }
 0x148   : > { %p17_p10 = scmp.ge.s32.totalorder %s20_s20, 4  }
 0x14a   :  { %19 = sbr.rel (!%p17_p10) target bundleno = 18 (0x12), region = 114 }

// kernel: dgcnn_forward.9
= control target key start
LH: loop header
LB: loop body
LE: loop exit
PB: predicated region body
PF: predicated region fallthrough
CT: control target
= control target key end

     0   :  { %s1838_s0 = inlined_call_operand.vmem [shape: s32[128], index: 0, kind: input, shape index: {}]   ;;  %s1839_s1 = inlined_call_operand.vmem [shape: bf16[2,16,128], index: 1, kind: input, shape index: {}]   ;;  %s1840_s2 = inlined_call_operand.vmem [shape: bf16[128,512], index: 2, kind: input, shape index: {}]   ;;  %s1841_s3 = inlined_call_operand.vmem [shape: f32[1,256], index: 3, kind: input, shape index: {}]   ;;  %s1842_s4 = inlined_call_operand.vmem [shape: bf16[2,16,256], index: 4, kind: output, shape index: {}]  }
   0x1   :  { %1848 = sst [smem:[#allocation23_spill]] %s1839_s1  ;;  %s9_s17 = sshll.u32 %s1838_s0, 4  ;;  %s10_s17 = int_to_ptr.vmem [resolvable:$true] %s9_s17 }
   0x2   :  { %1849 = sst [smem:[#allocation24_spill]] %s1840_s2  ;;  %s1444_s18 = scalar_lea.vmem %s10_s17, 16 }
   0x3   :  { %1850 = sst [smem:[#allocation25_spill]] %s1841_s3  ;;  %p1445_p0 = scmp.ne.s32.totalorder %s10_s17, %s1444_s18 }
   0x4   :  { %1851 = sst [smem:[#allocation26_spill]] %s1842_s4  ;;  %p1449_p1 = scmp.lt.s32.totalorder %s10_s17, %s10_s17 }
   0x5   :  { %p1450_p2 = scmp.lt.s32.totalorder %s1444_s18, %s1444_s18 }
   0x7   :  { %p1451_p3 = por %p1450_p2, %p1449_p1 }
   0x9   :  { %p1452_p4 = pnand %p1451_p3, %p1445_p0 }
   0xb   :  { %1455 = shalt.err (!%p1452_p4)  }
   0xc   :  { %s1474_s19 = smov [#allocation6]  }
   0xd   :  { %12 = dma.vmem_to_smem %s10_s17, 16, %s1474_s19, [#allocation5] }
   0xe   :  { %1464 = dma.done.wait [#allocation5], 16 }
   0xf   :  { %1465 = vsyncadd [#allocation5], 4294967280 }
  0x10   :  { %14 = sfence }
  0x11   :  { %s1504_s20 = smov 0  }
  0x12 LB: > { %1852 = sst [smem:[#allocation8_spill]] %s1468_s20  ;;  %s1510_s0 = sadd.s32 4294967295, %s1468_s20   ;;  %s1468_s20 = sphi %s1504_s20, %s20_s20  }
  0x13   : > { %p1198_p5 = scmp.ge.s32.totalorder %s1468_s20, 1  ;;  %p144_p6 = scmp.lt.s32.totalorder %s1468_s20, 3 }
  0x15   : > { %p145_p7 = pnand %p1198_p5, %p144_p6 }
  0x17   : > { %148 = sbr.rel (%p145_p7) target bundleno = 424 (0x1a8), region = 32 }
  0x1c   : > { %s1853_s2 = sld [smem:[#allocation24_spill]]  ;;  %p168_p8 = scmp.lt.s32.totalorder %s1510_s0, 1  ;;  %v1475_v2 = vmov 0   ;;  %v471_v34 = vlaneseq }
  0x1d   : > { %411 = vmatprep.mubr.bf16.mxu0 %v1475_v2  ;;  %454 = vmatprep.mubr.bf16.mxu1 %v1475_v2  ;;  %s1854_s4 = sld [smem:[#allocation26_spill]] }
  0x1e   : > { %s1531_s5 = scalar_select %p168_p8, %s1510_s0, 1  ;;  %v472_v35 = vshrl.u32 %v471_v34, 7 }
  0x1f   : > { %s1856_s1 = sld [smem:[#allocation23_spill]] }
  0x20   : > { %s1318_s12 = sshll.u32 %s1531_s5, 4  ;;  %s1317_s22 = sshll.u32 %s1531_s5, 3  ;;  %v1627_v36 = vsub.s32 0, %v472_v35  ;;  %v1632_v38 = vsub.s32 1, %v472_v35 }
  0x21   : > { %s1857_s3 = sld [smem:[#allocation25_spill]] }
  0x22   : > { %v1395_v0 = vld [vmem:[%s1853_s2 + $0xe4] ss:$16 sps:$4 sm:$0xff]   ;;  %v1397_v1 = vld [vmem:[%s1853_s2 + $0xec] ss:$16 sps:$4 sm:$0xff]   ;;  %v1399_v3 = vld [vmem:[%s1853_s2 + $0xe0] ss:$16 sps:$4 sm:$0xff]  }
  0x23   : > { %379 = vmatprep.subr.bf16.mxu0 %v1395_v0  ;;  %v1400_v4 = vld [vmem:[%s1853_s2 + $0xe8] ss:$16 sps:$4 sm:$0xff]   ;;  %422 = vmatprep.subr.bf16.mxu1 %v1397_v1  ;;  %v1401_v5 = vld [vmem:[%s1853_s2 + $0xc4] ss:$16 sps:$4 sm:$0xff]   ;;  %v1403_v6 = vld [vmem:[%s1853_s2 + $0xcc] ss:$16 sps:$4 sm:$0xff]   ;;  %s1549_s17 = scalar_lea.vmem %s1854_s4, %s1318_s12 }
  0x24   : > { %380 = vmatpush1.bf16.msra.mxu0 %v1399_v3  ;;  %423 = vmatpush1.bf16.msra.mxu1 %v1400_v4  ;;  %v1405_v7 = vld [vmem:[%s1853_s2 + $0xc0] ss:$16 sps:$4 sm:$0xff]   ;;  %v1406_v8 = vld [vmem:[%s1853_s2 + $0xc8] ss:$16 sps:$4 sm:$0xff]   ;;  %v1407_v9 = vld [vmem:[%s1853_s2 + $0xa4] ss:$16 sps:$4 sm:$0xff]  }
  0x25   : > { %381 = vmatprep.subr.bf16.mxu0 %v1401_v5  ;;  %424 = vmatprep.subr.bf16.mxu1 %v1403_v6  ;;  %1855 = sst [smem:[#allocation9_spill]] %s1549_s17  ;;  %v1409_v10 = vld [vmem:[%s1853_s2 + $0xac] ss:$16 sps:$4 sm:$0xff]   ;;  %v1411_v11 = vld [vmem:[%s1853_s2 + $0xa0] ss:$16 sps:$4 sm:$0xff]   ;;  %s172_s6 = scalar_lea.vmem %s1856_s1, %s1317_s22 }
  0x26   : > { %v1412_v12 = vld [vmem:[%s1853_s2 + $0xa8] ss:$16 sps:$4 sm:$0xff]   ;;  %v1413_v13 = vld [vmem:[%s1853_s2 + $0x84] ss:$16 sps:$4 sm:$0xff]   ;;  %v1415_v14 = vld [vmem:[%s1853_s2 + $0x8c] ss:$16 sps:$4 sm:$0xff]  }
  0x27   : > { %v1417_v15 = vld [vmem:[%s1853_s2 + $0x80] ss:$16 sps:$4 sm:$0xff]   ;;  %v1418_v16 = vld [vmem:[%s1853_s2 + $0x88] ss:$16 sps:$4 sm:$0xff]   ;;  %v1419_v17 = vld [vmem:[%s1853_s2 + $0x64] ss:$16 sps:$4 sm:$0xff]  }
  0x28   : > { %382 = vmatpush1.bf16.msra.mxu0 %v1405_v7  ;;  %425 = vmatpush1.bf16.msra.mxu1 %v1406_v8  ;;  %v1421_v18 = vld [vmem:[%s1853_s2 + $0x6c] ss:$16 sps:$4 sm:$0xff]   ;;  %v1423_v19 = vld [vmem:[%s1853_s2 + $0x60] ss:$16 sps:$4 sm:$0xff]   ;;  %v1424_v20 = vld [vmem:[%s1853_s2 + $0x68] ss:$16 sps:$4 sm:$0xff]  }
  0x29   : > { %383 = vmatprep.subr.bf16.mxu0 %v1407_v9  ;;  %426 = vmatprep.subr.bf16.mxu1 %v1409_v10  ;;  %v1425_v21 = vld [vmem:[%s1853_s2 + $0x44] ss:$16 sps:$4 sm:$0xff]   ;;  %v1427_v22 = vld [vmem:[%s1853_s2 + $0x4c] ss:$16 sps:$4 sm:$0xff]   ;;  %v1429_v23 = vld [vmem:[%s1853_s2 + $0x40] ss:$16 sps:$4 sm:$0xff]  }
  0x2a   : > { %v1430_v24 = vld [vmem:[%s1853_s2 + $0x48] ss:$16 sps:$4 sm:$0xff]   ;;  %v1431_v25 = vld [vmem:[%s1853_s2 + $0x24] ss:$16 sps:$4 sm:$0xff]   ;;  %v1433_v26 = vld [vmem:[%s1853_s2 + $0x2c] ss:$16 sps:$4 sm:$0xff]  }
  0x2b   : > { %v1435_v27 = vld [vmem:[%s1853_s2 + $0x20] ss:$16 sps:$4 sm:$0xff]   ;;  %v1436_v28 = vld [vmem:[%s1853_s2 + $0x28] ss:$16 sps:$4 sm:$0xff]   ;;  %v1437_v29 = vld [vmem:[%s1853_s2 + $0x4] ss:$16 sps:$4 sm:$0xff]  }
  0x2c   : > { %384 = vmatpush1.bf16.msra.mxu0 %v1411_v11  ;;  %427 = vmatpush1.bf16.msra.mxu1 %v1412_v12  ;;  %v1439_v30 = vld [vmem:[%s1853_s2 + $0xc] ss:$16 sps:$4 sm:$0xff]   ;;  %v1441_v31 = vld [vmem:[%s1853_s2] ss:$16 sps:$4 sm:$0xff]   ;;  %v1442_v32 = vld [vmem:[%s1853_s2 + $0x8] ss:$16 sps:$4 sm:$0xff]  }
  0x2d   : > { %385 = vmatprep.subr.bf16.mxu0 %v1413_v13  ;;  %428 = vmatprep.subr.bf16.mxu1 %v1415_v14  ;;  %v1443_v33 = vld [vmem:[%s172_s6] sm:$0xff]   ;;  %s1625_s22 = sshll.u32 %s1510_s0, 6  ;;  %s1636_s0 = smov 0  }
  0x2e   : > { %v469_v37 = vld [vmem:[%s1857_s3] sm:$0x3] }
  0x2f   : > { %v474_v39 = vrot.slane %v469_v37, %v1627_v36  ;;  %v478_v40 = vrot.slane %v469_v37, %v1632_v38 }
  0x30   : > { %386 = vmatpush1.bf16.msra.mxu0 %v1417_v15  ;;  %429 = vmatpush1.bf16.msra.mxu1 %v1418_v16 }
  0x31   : > { %387 = vmatprep.subr.bf16.mxu0 %v1419_v17  ;;  %430 = vmatprep.subr.bf16.mxu1 %v1421_v18 }
  0x34   : > { %388 = vmatpush1.bf16.msra.mxu0 %v1423_v19  ;;  %431 = vmatpush1.bf16.msra.mxu1 %v1424_v20 }
  0x35   : > { %389 = vmatprep.subr.bf16.mxu0 %v1425_v21  ;;  %432 = vmatprep.subr.bf16.mxu1 %v1427_v22 }
  0x38   : > { %390 = vmatpush1.bf16.msra.mxu0 %v1429_v23  ;;  %433 = vmatpush1.bf16.msra.mxu1 %v1430_v24 }
  0x39   : > { %391 = vmatprep.subr.bf16.mxu0 %v1431_v25  ;;  %434 = vmatprep.subr.bf16.mxu1 %v1433_v26 }
  0x3c   : > { %392 = vmatpush1.bf16.msra.mxu0 %v1435_v27  ;;  %435 = vmatpush1.bf16.msra.mxu1 %v1436_v28 }
  0x3d   : > { %393 = vmatprep.subr.bf16.mxu0 %v1437_v29  ;;  %436 = vmatprep.subr.bf16.mxu1 %v1439_v30 }
  0x40   : > { %394 = vmatpush1.bf16.msra.mxu0 %v1441_v31  ;;  %437 = vmatpush1.bf16.msra.mxu1 %v1442_v32 }
  0x43   : > { %412 = vmatmul.mubr.bf16.vlgmr.msra.gmra.mxu0 %v1443_v33  ;;  %455 = vmatmul.mubr.bf16.vlgmr.msra.gmra.mxu1 %v1443_v33 }
 0x103   : > { %v413_v41 = vpop.f32.mrf.mxu0  ;;  %v456_v42 = vpop.f32.mrf.mxu1 }
 0x104   : > { %465 = vst [vmem:[#allocation2] sm:$0xff] %v413_v41  ;;  %v481_v43 = vadd.f32 %v474_v39, %v456_v42 }
 0x105   : > { %v415_v44 = vpop.f32.mrf.mxu0  ;;  %v458_v45 = vpop.f32.mrf.mxu1 }
 0x106   : > { %485 = vst [vmem:[#allocation3] sm:$0xff] %v481_v43  ;;  %466 = vst [vmem:[#allocation2 + $0x8] sm:$0xff] %v415_v44  ;;  %v482_v46 = vadd.f32 %v478_v40, %v458_v45 }
 0x107   : > { %v417_v47 = vpop.f32.mrf.mxu0  ;;  %v460_v48 = vpop.f32.mrf.mxu1 }
 0x108   : > { %486 = vst [vmem:[#allocation3 + $0x8] sm:$0xff] %v482_v46  ;;  %467 = vst [vmem:[#allocation2 + $0x10] sm:$0xff] %v417_v47  ;;  %v483_v49 = vadd.f32 %v474_v39, %v460_v48 }
 0x109   : > { %v419_v50 = vpop.f32.mrf.mxu0  ;;  %v462_v51 = vpop.f32.mrf.mxu1 }
 0x10a   : > { %487 = vst [vmem:[#allocation3 + $0x10] sm:$0xff] %v483_v49  ;;  %468 = vst [vmem:[#allocation2 + $0x18] sm:$0xff] %v419_v50  ;;  %v484_v52 = vadd.f32 %v478_v40, %v462_v51 }
 0x10c   : > { %488 = vst [vmem:[#allocation3 + $0x18] sm:$0xff] %v484_v52 }
 0x10d LB: >> { %1858 = sst [smem:[#allocation10_spill]] %s1472_s0  ;;  %s1642_s25 = sshll.u32 %s1472_s0, 5  ;;  %vm976_vm0 = vcmask 1040384   ;;  %vm979_vm1 = vcmask 1041408   ;;  %vm982_vm2 = vcmask 1042432   ;;  %vm985_vm3 = vcmask 1043456   ;;  %s1472_s0 = sphi %s1636_s0, %s495_s0  }
 0x10e   : >> { %1859 = sst [smem:[#allocation11_spill]] %s1642_s25  ;;  %s498_s26 = sadd.s32 %s1642_s25, %s1625_s22  ;;  %vm988_vm4 = vcmask 1044480   ;;  %vm991_vm5 = vcmask 1045504   ;;  %vm994_vm6 = vcmask 1046528  }
 0x10f   : >> { %s1325_s27 = sadd.s32 4, %s1642_s25  ;;  %s499_s28 = sld [smem:[#allocation6 + %s498_s26]] }
 0x110   : >> { %s509_s29 = sadd.s32 1, %s498_s26  ;;  %s521_s6 = sadd.s32 2, %s498_s26 }
 0x111   : >> { %s510_s30 = sld [smem:[#allocation6 + %s509_s29]]  ;;  %s533_s7 = sadd.s32 3, %s498_s26 }
 0x112   : >> { %s522_s5 = sld [smem:[#allocation6 + %s521_s6]]  ;;  %s1648_s9 = sadd.s32 %s1325_s27, %s1625_s22 }
 0x113   : >> { %s534_s8 = sld [smem:[#allocation6 + %s533_s7]]  ;;  %s558_s11 = sadd.s32 1, %s1648_s9 }
 0x114   : >> { %s548_s10 = sld [smem:[#allocation6 + %s1648_s9]]  ;;  %s570_s23 = sadd.s32 2, %s1648_s9 }
 0x115   : >> { %s559_s12 = sld [smem:[#allocation6 + %s558_s11]]  ;;  %s500_s13 = sshra.s32 %s499_s28, 3 }
 0x116   : >> { %s503_s14 = sand.u32 7, %s499_s28  ;;  %s1320_s15 = sshll.u32 %s500_s13, 4 }
 0x117   : >> { %s511_s16 = sshra.s32 %s510_s30, 3  ;;  %s1652_s18 = sadd.s32 %s1320_s15, %s503_s14 }
 0x118   : >> { %s514_s19 = sand.u32 7, %s510_s30  ;;  %s1321_s21 = sshll.u32 %s511_s16, 4 }
 0x119   : >> { %s523_s24 = sshra.s32 %s522_s5, 3  ;;  %s1655_s26 = sadd.s32 %s1321_s21, %s514_s19 }
 0x11a   : >> { %s526_s27 = sand.u32 7, %s522_s5  ;;  %s1322_s29 = sshll.u32 %s523_s24, 4 }
 0x11b   : >> { %s535_s6 = sshra.s32 %s534_s8, 3  ;;  %s1657_s7 = sadd.s32 %s1322_s29, %s526_s27 }
 0x11c   : >> { %s538_s11 = sand.u32 7, %s534_s8  ;;  %s1323_s28 = sshll.u32 %s535_s6, 4 }
 0x11d   : >> { %s549_s13 = sshra.s32 %s548_s10, 3  ;;  %s1659_s1 = sadd.s32 %s1323_s28, %s538_s11 }
 0x11e   : >> { %1860 = sst [smem:[#allocation12_spill]] %s1659_s1  ;;  %s552_s14 = sand.u32 7, %s548_s10 }
 0x11f   : >> { %s1326_s30 = sshll.u32 %s549_s13, 4  ;;  %s560_s15 = sshra.s32 %s559_s12, 3 }
 0x120   : >> { %s1661_s16 = sadd.s32 %s1326_s30, %s552_s14  ;;  %s563_s19 = sand.u32 7, %s559_s12 }
 0x121   : >> { %s1327_s21 = sshll.u32 %s560_s15, 4  ;;  %s571_s24 = sld [smem:[#allocation6 + %s570_s23]] }
 0x122   : >> { %s1663_s5 = sadd.s32 %s1327_s21, %s563_s19  ;;  %s582_s2 = sadd.s32 3, %s1648_s9 }
 0x123   : >> { %s583_s27 = sld [smem:[#allocation6 + %s582_s2]]  ;;  %s1331_s29 = sadd.s32 8, %s1642_s25 }
 0x124   : >> { %s596_s3 = sadd.s32 %s1331_s29, %s1625_s22  ;;  %s1337_s30 = sadd.s32 12, %s1642_s25 }
 0x125   : >> { %s597_s8 = sld [smem:[#allocation6 + %s596_s3]]  ;;  %s607_s6 = sadd.s32 1, %s596_s3 }
 0x126   : >> { %s608_s4 = sld [smem:[#allocation6 + %s607_s6]]  ;;  %s619_s11 = sadd.s32 2, %s596_s3 }
 0x127   : >> { %s572_s28 = sshra.s32 %s571_s24, 3  ;;  %s575_s10 = sand.u32 7, %s571_s24 }
 0x128   : >> { %s1328_s13 = sshll.u32 %s572_s28, 4  ;;  %s620_s20 = sld [smem:[#allocation6 + %s619_s11]] }
 0x129   : >> { %s584_s14 = sshra.s32 %s583_s27, 3  ;;  %s1669_s12 = sadd.s32 %s1328_s13, %s575_s10 }
 0x12a   : >> { %1861 = sst [smem:[#allocation13_spill]] %s1669_s12  ;;  %s587_s15 = sand.u32 7, %s583_s27 }
 0x12b   : >> { %s1329_s19 = sshll.u32 %s584_s14, 4  ;;  %s598_s23 = sshra.s32 %s597_s8, 3 }
 0x12c   : >> { %s1671_s2 = sadd.s32 %s1329_s19, %s587_s15  ;;  %s601_s9 = sand.u32 7, %s597_s8 }
 0x12d   : >> { %1862 = sst [smem:[#allocation14_spill]] %s1671_s2  ;;  %s1332_s21 = sshll.u32 %s598_s23, 4 }
 0x12e   : >> { %s609_s29 = sshra.s32 %s608_s4, 3  ;;  %s1673_s6 = sadd.s32 %s1332_s21, %s601_s9 }
 0x12f   : >> { %s612_s17 = sand.u32 7, %s608_s4  ;;  %s1333_s24 = sshll.u32 %s609_s29, 4 }
 0x130   : >> { %s621_s11 = sshra.s32 %s620_s20, 3  ;;  %s1675_s28 = sadd.s32 %s1333_s24, %s612_s17 }
 0x131   : >> { %s624_s10 = sand.u32 7, %s620_s20  ;;  %s1334_s13 = sshll.u32 %s621_s11, 4 }
 0x132   : >> { %s631_s27 = sadd.s32 3, %s596_s3  ;;  %s1677_s14 = sadd.s32 %s1334_s13, %s624_s10 }
 0x133   : >> { %1863 = sst [smem:[#allocation15_spill]] %s1677_s14  ;;  %s645_s1 = sadd.s32 %s1337_s30, %s1625_s22 }
 0x134   : >> { %s632_s0 = sld [smem:[#allocation6 + %s631_s27]]  ;;  %s1343_s15 = sadd.s32 16, %s1642_s25 }
 0x135   : >> { %s646_s19 = sld [smem:[#allocation6 + %s645_s1]]  ;;  %s656_s8 = sadd.s32 1, %s645_s1 }
 0x136   : >> { %s657_s23 = sld [smem:[#allocation6 + %s656_s8]]  ;;  %s668_s2 = sadd.s32 2, %s645_s1 }
 0x137   : >> { %s680_s9 = sadd.s32 3, %s645_s1  ;;  %s669_s21 = sld [smem:[#allocation6 + %s668_s2]] }
 0x138   : >> { %s1682_s4 = sadd.s32 %s1343_s15, %s1625_s22  ;;  %s681_s20 = sld [smem:[#allocation6 + %s680_s9]] }
 0x139   : >> { %s695_s3 = sld [smem:[#allocation6 + %s1682_s4]] }
 0x13a   : >> { %s633_s29 = sshra.s32 %s632_s0, 3  ;;  %s636_s17 = sand.u32 7, %s632_s0 }
 0x13b   : >> { %s1335_s24 = sshll.u32 %s633_s29, 4  ;;  %s647_s11 = sshra.s32 %s646_s19, 3 }
 0x13c   : >> { %s1685_s10 = sadd.s32 %s1335_s24, %s636_s17  ;;  %s650_s13 = sand.u32 7, %s646_s19 }
 0x13d   : >> { %1864 = sst [smem:[#allocation16_spill]] %s1685_s10  ;;  %s1338_s30 = sshll.u32 %s647_s11, 4 }
 0x13e   : >> { %s658_s27 = sshra.s32 %s657_s23, 3  ;;  %s1687_s14 = sadd.s32 %s1338_s30, %s650_s13 }
 0x13f   : >> { %1865 = sst [smem:[#allocation17_spill]] %s1687_s14  ;;  %s661_s8 = sand.u32 7, %s657_s23 }
 0x140   : >> { %s1339_s1 = sshll.u32 %s658_s27, 4  ;;  %s670_s2 = sshra.s32 %s669_s21, 3 }
 0x141   : >> { %s1689_s15 = sadd.s32 %s1339_s1, %s661_s8  ;;  %s673_s0 = sand.u32 7, %s669_s21 }
 0x142   : >> { %1866 = sst [smem:[#allocation18_spill]] %s1689_s15  ;;  %s1340_s29 = sshll.u32 %s670_s2, 4 }
 0x143   : >> { %s682_s9 = sshra.s32 %s681_s20, 3  ;;  %s1691_s17 = sadd.s32 %s1340_s29, %s673_s0 }
 0x144   : >> { %1867 = sst [smem:[#allocation19_spill]] %s1691_s17  ;;  %s685_s19 = sand.u32 7, %s681_s20 }
 0x145   : >> { %s1341_s24 = sshll.u32 %s682_s9, 4  ;;  %s696_s13 = sshra.s32 %s695_s3, 3 }
 0x146   : >> { %s1693_s11 = sadd.s32 %s1341_s24, %s685_s19  ;;  %s699_s30 = sand.u32 7, %s695_s3 }
 0x147   : >> { %1868 = sst [smem:[#allocation20_spill]] %s1693_s11  ;;  %s1344_s23 = sshll.u32 %s696_s13, 4 }
 0x148   : >> { %s705_s27 = sadd.s32 1, %s1682_s4  ;;  %s1696_s8 = sadd.s32 %s1344_s23, %s699_s30 }
 0x149   : >> { %s706_s10 = sld [smem:[#allocation6 + %s705_s27]]  ;;  %s717_s1 = sadd.s32 2, %s1682_s4 }
 0x14a   : >> { %1869 = sst [smem:[#allocation21_spill]] %s1696_s8  ;;  %s729_s2 = sadd.s32 3, %s1682_s4 }
 0x14b   : >> { %s718_s21 = sld [smem:[#allocation6 + %s717_s1]]  ;;  %s1349_s14 = sadd.s32 20, %s1642_s25 }
 0x14c   : >> { %s730_s15 = sld [smem:[#allocation6 + %s729_s2]]  ;;  %s1702_s12 = sadd.s32 %s1349_s14, %s1625_s22 }
 0x14d   : >> { %s744_s20 = sld [smem:[#allocation6 + %s1702_s12]]  ;;  %s754_s0 = sadd.s32 1, %s1702_s12 }
 0x14e   : >> { %s755_s19 = sld [smem:[#allocation6 + %s754_s0]]  ;;  %s1355_s13 = sadd.s32 24, %s1642_s25 }
 0x14f   : >> { %s707_s29 = sshra.s32 %s706_s10, 3  ;;  %s710_s9 = sand.u32 7, %s706_s10 }
 0x150   : >> { %s1345_s3 = sshll.u32 %s707_s29, 4 }
 0x151   : >> { %s719_s24 = sshra.s32 %s718_s21, 3  ;;  %s1707_s30 = sadd.s32 %s1345_s3, %s710_s9 }
 0x152   : >> { %s722_s23 = sand.u32 7, %s718_s21  ;;  %s1346_s27 = sshll.u32 %s719_s24, 4 }
 0x153   : >> { %s731_s4 = sshra.s32 %s730_s15, 3  ;;  %s1709_s14 = sadd.s32 %s1346_s27, %s722_s23 }
 0x154   : >> { %s734_s1 = sand.u32 7, %s730_s15  ;;  %s1347_s2 = sshll.u32 %s731_s4, 4 }
 0x155   : >> { %s745_s11 = sshra.s32 %s744_s20, 3  ;;  %s1711_s17 = sadd.s32 %s1347_s2, %s734_s1 }
 0x156   : >> { %1870 = sst [smem:[#allocation22_spill]] %s1711_s17  ;;  %s748_s10 = sand.u32 7, %s744_s20 }
 0x157   : >> { %s1350_s0 = sshll.u32 %s745_s11, 4  ;;  %s756_s29 = sshra.s32 %s755_s19, 3 }
 0x158   : >> { %s1713_s8 = sadd.s32 %s1350_s0, %s748_s10  ;;  %s759_s9 = sand.u32 7, %s755_s19 }
 0x159   : >> { %s1351_s21 = sshll.u32 %s756_s29, 4  ;;  %s766_s3 = sadd.s32 2, %s1702_s12 }
 0x15a   : >> { %s1716_s24 = sadd.s32 %s1351_s21, %s759_s9  ;;  %s1718_s23 = sld [smem:[#allocation6 + %s766_s3]] }
 0x15b   : >> { %s778_s15 = sadd.s32 3, %s1702_s12  ;;  %s792_s27 = sadd.s32 %s1355_s13, %s1625_s22 }
 0x15c   : >> { %s1722_s4 = sld [smem:[#allocation6 + %s778_s15]]  ;;  %s803_s11 = sadd.s32 1, %s792_s27 }
 0x15d   : >> { %s1724_s20 = sld [smem:[#allocation6 + %s792_s27]]  ;;  %s815_s1 = sadd.s32 2, %s792_s27 }
 0x15e   : >> { %s507_s19 = scalar_lea.vmem [#allocation2], %s1652_s18  ;;  %s1727_s2 = sld [smem:[#allocation6 + %s803_s11]] }
 0x15f   : >> { %v508_v53 = vld [vmem:[%s507_s19] ss:$8 sm:$0x3]  ;;  %s518_s10 = scalar_lea.vmem [#allocation2], %s1655_s26  ;;  %s1730_s12 = sld [smem:[#allocation6 + %s815_s1]] }
 0x160   : >> { %v519_v54 = vld [vmem:[%s518_s10] ss:$8 sm:$0x3]  ;;  %s827_s13 = sadd.s32 3, %s792_s27  ;;  %s556_s0 = scalar_lea.vmem [#allocation2], %s1661_s16 }
 0x161   : >> { %v557_v55 = vld [vmem:[%s556_s0] ss:$8 sm:$0x3]  ;;  %s768_s29 = sshra.s32 %s1718_s23, 3  ;;  %s771_s9 = sand.u32 7, %s1718_s23  ;;  %v520_v58 = vmax.f32 %v508_v53, %v519_v54 }
 0x162   : >> { %s567_s21 = scalar_lea.vmem [#allocation2], %s1663_s5  ;;  %s1352_s18 = sshll.u32 %s768_s29, 4 }
 0x163   : >> { %v568_v56 = vld [vmem:[%s567_s21] ss:$8 sm:$0x3]  ;;  %s1871_s3 = sld [smem:[#allocation13_spill]]  ;;  %s530_s11 = scalar_lea.vmem [#allocation2], %s1657_s7 }
 0x164   : >> { %v531_v57 = vld [vmem:[%s530_s11] ss:$8 sm:$0x3]  ;;  %s780_s26 = sshra.s32 %s1722_s4, 3  ;;  %s1872_s19 = sld [smem:[#allocation12_spill]]  ;;  %v569_v60 = vmax.f32 %v557_v55, %v568_v56 }
 0x165   : >> { %s1739_s1 = sld [smem:[#allocation6 + %s827_s13]]  ;;  %s605_s27 = scalar_lea.vmem [#allocation2], %s1673_s6  ;;  %v532_v1 = vmax.f32 %v520_v58, %v531_v57 }
 0x166   : >> { %s1873_s16 = sld [smem:[#allocation17_spill]]  ;;  %v606_v59 = vld [vmem:[%s605_s27] ss:$8 sm:$0x3]  ;;  %s1742_s10 = sadd.s32 %s1352_s18, %s771_s9 }
 0x167   : >> { %s783_s23 = sand.u32 7, %s1722_s4  ;;  %s1874_s5 = sld [smem:[#allocation14_spill]] }
 0x168   : >> { %s616_s0 = scalar_lea.vmem [#allocation2], %s1675_s28  ;;  %s1875_s29 = sld [smem:[#allocation18_spill]] }
 0x169   : >> { %v617_v61 = vld [vmem:[%s616_s0] ss:$8 sm:$0x3]  ;;  %s1353_s21 = sshll.u32 %s780_s26, 4  ;;  %s794_s7 = sshra.s32 %s1724_s20, 3 }
 0x16a   : >> { %s579_s11 = scalar_lea.vmem [#allocation2], %s1871_s3  ;;  %s1876_s15 = sld [smem:[#allocation15_spill]]  ;;  %v618_v3 = vmax.f32 %v606_v59, %v617_v61 }
 0x16b   : >> { %v580_v62 = vld [vmem:[%s579_s11] ss:$8 sm:$0x3]  ;;  %s1748_s13 = sadd.s32 %s1353_s21, %s783_s23  ;;  %s797_s17 = sand.u32 7, %s1724_s20 }
 0x16c   : >> { %s542_s25 = scalar_lea.vmem [#allocation2], %s1872_s19  ;;  %s1877_s6 = sld [smem:[#allocation21_spill]]  ;;  %v581_v5 = vmax.f32 %v569_v60, %v580_v62 }
 0x16d   : >> { %v543_v63 = vld [vmem:[%s542_s25] ss:$8 sm:$0x3]  ;;  %s654_s9 = scalar_lea.vmem [#allocation2], %s1873_s16  ;;  %s1356_s4 = sshll.u32 %s794_s7, 4 }
 0x16e   : >> { %v655_v0 = vld [vmem:[%s654_s9] ss:$8 sm:$0x3]  ;;  %s1878_s28 = sld [smem:[#allocation16_spill]]  ;;  %s591_s18 = scalar_lea.vmem [#allocation2], %s1874_s5  ;;  %v544_v11 = vmax.f32 %v532_v1, %v543_v63 }
 0x16f   : >> { %v592_v2 = vld [vmem:[%s591_s18] ss:$8 sm:$0x3]  ;;  %s665_s3 = scalar_lea.vmem [#allocation2], %s1875_s29  ;;  %s805_s26 = sshra.s32 %s1727_s2, 3 }
 0x170   : >> { %v666_v4 = vld [vmem:[%s665_s3] ss:$8 sm:$0x3]  ;;  %s628_s20 = scalar_lea.vmem [#allocation2], %s1876_s15  ;;  %s1879_s19 = sld [smem:[#allocation19_spill]]  ;;  %v593_v14 = vmax.f32 %v581_v5, %v592_v2  ;;  %v892_v23 = vrot.slane %v544_v11, %v1627_v36  ;;  %v896_v26 = vrot.slane %v544_v11, %v1632_v38 }
 0x171   : >> { %v629_v6 = vld [vmem:[%s628_s20] ss:$8 sm:$0x3]  ;;  %s1757_s25 = sadd.s32 %s1356_s4, %s797_s17  ;;  %s808_s16 = sand.u32 7, %s1727_s2  ;;  %v667_v9 = vmax.f32 %v655_v0, %v666_v4 }
 0x172   : >> { %s703_s27 = scalar_lea.vmem [#allocation2], %s1877_s6  ;;  %s1357_s23 = sshll.u32 %s805_s26, 4  ;;  %v630_v12 = vmax.f32 %v618_v3, %v629_v6  ;;  %v903_v27 = vrot.slane %v593_v14, %v1627_v36  ;;  %v907_v28 = vrot.slane %v593_v14, %v1632_v38 }
 0x173   : >> { %v704_v7 = vld [vmem:[%s703_s27] ss:$8 sm:$0x3]  ;;  %s817_s0 = sshra.s32 %s1730_s12, 3  ;;  %s1880_s21 = sld [smem:[#allocation20_spill]] }
 0x174   : >> { %s640_s5 = scalar_lea.vmem [#allocation2], %s1878_s28  ;;  %s714_s29 = scalar_lea.vmem [#allocation2], %s1707_s30  ;;  %v977_v40 = vsel %vm976_vm0, %v892_v23, %v903_v27  ;;  %v978_v41 = vsel %vm976_vm0, %v896_v26, %v907_v28 }
 0x175   : >> { %v641_v8 = vld [vmem:[%s640_s5] ss:$8 sm:$0x3]  ;;  %s1764_s7 = sadd.s32 %s1357_s23, %s808_s16  ;;  %s820_s15 = sand.u32 7, %s1730_s12 }
 0x176   : >> { %v715_v10 = vld [vmem:[%s714_s29] ss:$8 sm:$0x3]  ;;  %s677_s17 = scalar_lea.vmem [#allocation2], %s1879_s19  ;;  %s1358_s2 = sshll.u32 %s817_s0, 4  ;;  %v642_v21 = vmax.f32 %v630_v12, %v641_v8 }
 0x177   : >> { %v678_v13 = vld [vmem:[%s677_s17] ss:$8 sm:$0x3]  ;;  %s1881_s11 = sld [smem:[#allocation11_spill]]  ;;  %s752_s6 = scalar_lea.vmem [#allocation2], %s1713_s8  ;;  %v716_v17 = vmax.f32 %v704_v7, %v715_v10 }
 0x178   : >> { %v753_v15 = vld [vmem:[%s752_s6] ss:$8 sm:$0x3]  ;;  %s1769_s9 = sadd.s32 %s1358_s2, %s820_s15  ;;  %s829_s30 = sshra.s32 %s1739_s1, 3  ;;  %v679_v19 = vmax.f32 %v667_v9, %v678_v13  ;;  %v914_v34 = vrot.slane %v642_v21, %v1627_v36  ;;  %v918_v35 = vrot.slane %v642_v21, %v1632_v38 }
 0x179   : >> { %s689_s4 = scalar_lea.vmem [#allocation2], %s1880_s21  ;;  %s763_s12 = scalar_lea.vmem [#allocation2], %s1716_s24 }
 0x17a   : >> { %v690_v16 = vld [vmem:[%s689_s4] ss:$8 sm:$0x3]  ;;  %s832_s28 = sand.u32 7, %s1739_s1  ;;  %s726_s18 = scalar_lea.vmem [#allocation2], %s1709_s14  ;;  %v980_v47 = vsel %vm979_vm1, %v977_v40, %v914_v34  ;;  %v981_v48 = vsel %vm979_vm1, %v978_v41, %v918_v35 }
 0x17b   : >> { %v764_v18 = vld [vmem:[%s763_s12] ss:$8 sm:$0x3]  ;;  %s1359_s3 = sshll.u32 %s829_s30, 4  ;;  %s801_s8 = scalar_lea.vmem [#allocation2], %s1757_s25  ;;  %v691_v31 = vmax.f32 %v679_v19, %v690_v16 }
 0x17c   : >> { %v727_v20 = vld [vmem:[%s726_s18] ss:$8 sm:$0x3]  ;;  %s1883_s24 = sld [smem:[#allocation22_spill]]  ;;  %v765_v24 = vmax.f32 %v753_v15, %v764_v18  ;;  %s812_s1 = scalar_lea.vmem [#allocation2], %s1764_s7 }
 0x17d   : >> { %s1882_s26 = sadd.s32 28, %s1881_s11  ;;  %v802_v22 = vld [vmem:[%s801_s8] ss:$8 sm:$0x3]  ;;  %s1787_s14 = sadd.s32 %s1359_s3, %s832_s28  ;;  %v728_v29 = vmax.f32 %v716_v17, %v727_v20  ;;  %v925_v44 = vrot.slane %v691_v31, %v1627_v36  ;;  %v929_v45 = vrot.slane %v691_v31, %v1632_v38 }
 0x17e   : >> { %s1779_s20 = sadd.s32 %s1882_s26, %s1625_s22  ;;  %v813_v25 = vld [vmem:[%s812_s1] ss:$8 sm:$0x3]  ;;  %s1884_s16 = sld [smem:[#allocation10_spill]] }
 0x17f   : >> { %s1783_s19 = sld [smem:[#allocation6 + %s1779_s20]]  ;;  %s852_s27 = sadd.s32 1, %s1779_s20  ;;  %v814_v33 = vmax.f32 %v802_v22, %v813_v25  ;;  %v983_v54 = vsel %vm982_vm2, %v980_v47, %v925_v44  ;;  %v984_v55 = vsel %vm982_vm2, %v981_v48, %v929_v45 }
 0x180   : >> { %s775_s25 = scalar_lea.vmem [#allocation2], %s1742_s10  ;;  %s1794_s23 = sld [smem:[#allocation6 + %s852_s27]] }
 0x181   : >> { %v776_v30 = vld [vmem:[%s775_s25] ss:$8 sm:$0x3]  ;;  %s864_s0 = sadd.s32 2, %s1779_s20  ;;  %s876_s29 = sadd.s32 3, %s1779_s20 }
 0x182   : >> { %s738_s5 = scalar_lea.vmem [#allocation2], %s1883_s24  ;;  %s1798_s21 = sld [smem:[#allocation6 + %s864_s0]]  ;;  %v777_v37 = vmax.f32 %v765_v24, %v776_v30 }
 0x183   : >> { %v739_v32 = vld [vmem:[%s738_s5] ss:$8 sm:$0x3]  ;;  %s824_s10 = scalar_lea.vmem [#allocation2], %s1769_s9  ;;  %s1805_s15 = sld [smem:[#allocation6 + %s876_s29]] }
 0x184   : >> { %s1237_s7 = sshll.u32 %s1884_s16, 3  ;;  %v825_v39 = vld [vmem:[%s824_s10] ss:$8 sm:$0x3]  ;;  %v740_v42 = vmax.f32 %v728_v29, %v739_v32  ;;  %s787_s17 = scalar_lea.vmem [#allocation2], %s1748_s13 }
 0x185   : >> { %v788_v43 = vld [vmem:[%s787_s17] ss:$8 sm:$0x3]  ;;  %s843_s2 = sshra.s32 %s1783_s19, 3  ;;  %s846_s11 = sand.u32 7, %s1783_s19  ;;  %v826_v46 = vmax.f32 %v814_v33, %v825_v39 }
 0x186   : >> { %s1362_s6 = sshll.u32 %s843_s2, 4  ;;  %s1812_s9 = sshra.s32 %s1237_s7, 3  ;;  %v789_v49 = vmax.f32 %v777_v37, %v788_v43  ;;  %v936_v51 = vrot.slane %v740_v42, %v1627_v36  ;;  %v940_v52 = vrot.slane %v740_v42, %v1632_v38 }
 0x187   : >> { %s849_s30 = sadd.s32 %s1362_s6, %s846_s11  ;;  %s854_s4 = sshra.s32 %s1794_s23, 3 }
 0x188   : >> { %s836_s13 = scalar_lea.vmem [#allocation2], %s1787_s14  ;;  %s857_s12 = sand.u32 7, %s1794_s23  ;;  %v947_v58 = vrot.slane %v789_v49, %v1627_v36  ;;  %v951_v59 = vrot.slane %v789_v49, %v1632_v38  ;;  %v986_v61 = vsel %vm985_vm3, %v983_v54, %v936_v51  ;;  %v987_v62 = vsel %vm985_vm3, %v984_v55, %v940_v52 }
 0x189   : >> { %v837_v50 = vld [vmem:[%s836_s13] ss:$8 sm:$0x3]  ;;  %s1363_s28 = sshll.u32 %s854_s4, 4  ;;  %s866_s18 = sshra.s32 %s1798_s21, 3 }
 0x18a   : >> { %s850_s3 = scalar_lea.vmem [#allocation2], %s849_s30  ;;  %s860_s26 = sadd.s32 %s1363_s28, %s857_s12  ;;  %v838_v56 = vmax.f32 %v826_v46, %v837_v50  ;;  %v989_v3 = vsel %vm988_vm4, %v986_v61, %v947_v58  ;;  %v990_v4 = vsel %vm988_vm4, %v987_v62, %v951_v59 }
 0x18b   : >> { %v851_v53 = vld [vmem:[%s850_s3] ss:$8 sm:$0x3]  ;;  %s869_s20 = sand.u32 7, %s1798_s21  ;;  %s1364_s8 = sshll.u32 %s866_s18, 4 }
 0x18c   : >> { %s861_s19 = scalar_lea.vmem [#allocation2], %s860_s26  ;;  %s872_s24 = sadd.s32 %s1364_s8, %s869_s20  ;;  %v958_v1 = vrot.slane %v838_v56, %v1627_v36  ;;  %v962_v2 = vrot.slane %v838_v56, %v1632_v38 }
 0x18d   : >> { %v862_v57 = vld [vmem:[%s861_s19] ss:$8 sm:$0x3]  ;;  %s878_s1 = sshra.s32 %s1805_s15, 3  ;;  %s881_s14 = sand.u32 7, %s1805_s15 }
 0x18e   : >> { %v863_v60 = vmax.f32 %v851_v53, %v862_v57  ;;  %s873_s27 = scalar_lea.vmem [#allocation2], %s872_s24  ;;  %s1365_s25 = sshll.u32 %s878_s1, 4  ;;  %v992_v7 = vsel %vm991_vm5, %v989_v3, %v958_v1  ;;  %v993_v8 = vsel %vm991_vm5, %v990_v4, %v962_v2 }
 0x18f   : >> { %v874_v63 = vld [vmem:[%s873_s27] ss:$8 sm:$0x3]  ;;  %s1366_s23 = sshll.u32 %s1812_s9, 4  ;;  %s884_s0 = sadd.s32 %s1365_s25, %s881_s14 }
 0x190   : >> { %v875_v0 = vmax.f32 %v863_v60, %v874_v63  ;;  %s885_s5 = scalar_lea.vmem [#allocation2], %s884_s0  ;;  %s1001_s21 = scalar_lea.vmem [#allocation3], %s1366_s23 }
 0x191   : >> { %v886_v5 = vld [vmem:[%s885_s5] ss:$8 sm:$0x3]  ;;  %s1013_s29 = scalar_lea.vmem [#allocation4], %s1366_s23  ;;  %s495_s0 = sadd.s32 1, %s1884_s16  }
 0x192   : >> { %v887_v6 = vmax.f32 %v875_v0, %v886_v5  ;;  %v1002_v11 = vld [vmem:[%s1001_s21] sm:$0xff]  ;;  %v1003_v12 = vld [vmem:[%s1001_s21 + $0x8] sm:$0xff]  ;;  %p492_p9 = scmp.ge.s32.totalorder %s495_s0, 2  }
 0x193   : > { %s1885_s7 = sld [smem:[#allocation9_spill]] (%p492_p9) }
 0x194   : >> { %v969_v9 = vrot.slane %v887_v6, %v1627_v36  ;;  %v973_v10 = vrot.slane %v887_v6, %v1632_v38 }
 0x196   : >> { %v995_v13 = vsel %vm994_vm6, %v992_v7, %v969_v9  ;;  %v996_v14 = vsel %vm994_vm6, %v993_v8, %v973_v10 }
 0x197   : >> { %v1004_v15 = vadd.f32 %v1002_v11, %v995_v13  ;;  %v1005_v16 = vadd.f32 %v1003_v12, %v996_v14 }
 0x198   : > { %494 = sbr.rel (!%p492_p9) target bundleno = 269 (0x10d), region = 103 }
 0x199   : >> { %vm1006_vm7 = vcmp.gt.f32.partialorder %v1004_v15, 0.0  ;;  %vm1007_vm8 = vcmp.gt.f32.partialorder %v1005_v16, 0.0  ;;  %v1008_v17 = vmul.f32 0.2, %v1004_v15  ;;  %v1009_v18 = vmul.f32 0.2, %v1005_v16 }
 0x19b   : >> { %v1010_v19 = vsel %vm1006_vm7, %v1004_v15, %v1008_v17  ;;  %v1011_v20 = vsel %vm1007_vm8, %v1005_v16, %v1009_v18 }
 0x19c   : >> { %1014 = vst [vmem:[%s1013_s29] sm:$0xff] %v1010_v19  ;;  %1015 = vst [vmem:[%s1013_s29 + $0x8] sm:$0xff] %v1011_v20 }
 0x1a3   : > { %v1016_v21 = vld [vmem:[#allocation4] sm:$0xff]  ;;  %v1017_v22 = vld [vmem:[#allocation4 + $0x8] sm:$0xff]  ;;  %v1018_v23 = vld [vmem:[#allocation4 + $0x10] sm:$0xff] }
 0x1a4   : > { %v1368_v24 = vpack.c.bf16 %v1017_v22, %v1016_v21  ;;  %v1019_v25 = vld [vmem:[#allocation4 + $0x18] sm:$0xff] }
 0x1a5   : > { %v1369_v26 = vpack.c.bf16 %v1019_v25, %v1018_v23 }
 0x1a6   : > { %1032 = vst [vmem:[%s1885_s7] sm:$0xff] %v1368_v24 }
 0x1a7   : > { %1033 = vst [vmem:[%s1885_s7 + $0x8] sm:$0xff] %v1369_v26 }
 0x1a8 PF: > { %s1886_s10 = sld [smem:[#allocation8_spill]] }
 0x1ae   : > { %s20_s20 = sadd.s32 1, %s1886_s10  }
 0x1af   : > { %p17_p10 = scmp.ge.s32.totalorder %s20_s20, 4  }
 0x1b1   :  { %19 = sbr.rel (!%p17_p10) target bundleno = 18 (0x12), region = 114 }

// kernel: dgcnn_forward.10
= control target key start
LH: loop header
LB: loop body
LE: loop exit
PB: predicated region body
PF: predicated region fallthrough
CT: control target
= control target key end

     0   :  { %s1447_s13 = smov 0   ;;  %s1449_s14 = smov 0   ;;  %s1630_s0 = inlined_call_operand.vmem [shape: bf16[2,16,64], index: 0, kind: input, shape index: {}]   ;;  %s1631_s1 = inlined_call_operand.vmem [shape: bf16[2,16,64], index: 1, kind: input, shape index: {}]   ;;  %s1632_s2 = inlined_call_operand.vmem [shape: bf16[2,16,128], index: 2, kind: input, shape index: {}]   ;;  %s1633_s3 = inlined_call_operand.vmem [shape: bf16[2,16,256], index: 3, kind: input, shape index: {}]   ;;  %s1634_s4 = inlined_call_operand.vmem [shape: bf16[64,64], index: 4, kind: input, shape index: {}]   ;;  %s1635_s5 = inlined_call_operand.vmem [shape: bf16[64,64], index: 5, kind: input, shape index: {}]   ;;  %s1636_s6 = inlined_call_operand.vmem [shape: bf16[128,64], index: 6, kind: input, shape index: {}]   ;;  %s1637_s7 = inlined_call_operand.vmem [shape: bf16[256,64], index: 7, kind: input, shape index: {}]   ;;  %s1638_s8 = inlined_call_operand.vmem [shape: f32[1,64], index: 8, kind: input, shape index: {}]   ;;  %s1639_s9 = inlined_call_operand.vmem [shape: f32[1,64], index: 9, kind: input, shape index: {}]   ;;  %s1640_s10 = inlined_call_operand.vmem [shape: f32[2,1,128], index: 10, kind: output, shape index: {}]  }
   0x1   :  { %s1451_s15 = smov 0  }
   0x2 LB: > { %s32_s16 = sadd.s32 1, %s1383_s14  ;;  %p1159_p0 = scmp.ge.s32.totalorder %s1387_s15, 1  ;;  %s1387_s15 = sphi %s1451_s15, %s20_s15   ;;  %s1383_s14 = sphi %s1449_s14, %s1642_s14   ;;  %s1379_s13 = sphi %s1447_s13, %s1641_s13  }
   0x3   : > { %p34_p1 = scmp.ge.s32.totalorder %s32_s16, 2  ;;  %p383_p2 = scmp.lt.s32.totalorder %s1387_s15, 3 }
   0x5   : > { %s1644_s16 = smov (%p34_p1, %s32_s16), 0  ;;  %p384_p3 = pnand %p1159_p0, %p383_p2 }
   0x6   : > { %p452_p4 = scmp.lt.s32.totalorder (!%p384_p3), %s1379_s13, 1  ;;  %s1391_s23 = smov (!%p384_p3), 64  }
   0x7   : > { %387 = sbr.rel (%p384_p3) target bundleno = 416 (0x1a0), region = 60 }
   0xc   : > { %v1327_v0 = vld [vmem:[%s1635_s5 + $0x18] sm:$0xff]   ;;  %v1389_v1 = vmov 0.0   ;;  %v1329_v3 = vld [vmem:[%s1635_s5 + $0x10] sm:$0xff]   ;;  %vm1390_vm0 = vmmov 0   ;;  %s1646_s13 = smov (!%p452_p4, %s1379_s13), 1  ;;  %v1331_v5 = vld [vmem:[%s1635_s5 + $0x8] sm:$0xff]  }
   0xd   : > { %1256 = vmatprep.subr.bf16.mxu0 %v1389_v1  ;;  %1268 = vmatprep.subr.bf16.mxu1 %v1389_v1  ;;  %v1328_v2 = vld [vmem:[%s1634_s4 + $0x18] sm:$0xff]   ;;  %v1330_v4 = vld [vmem:[%s1634_s4 + $0x10] sm:$0xff]   ;;  %s1491_s27 = sshll.u32 %s1646_s13, 3  ;;  %v1332_v6 = vld [vmem:[%s1634_s4 + $0x8] sm:$0xff]   ;;  %vm545_vm1 = vcmask 523264   ;;  %s1214_s20 = sshll.u32 %s1646_s13, 4 }
   0xe   : > { %1257 = vmatpush3.bf16.msra.mxu0 %v1327_v0  ;;  %1264 = vmatprep.mubr.msk.bf16.mxu0 %vm1390_vm0, %v1389_v1  ;;  %s469_s12 = scalar_lea.vmem %s1631_s1, %s1491_s27  ;;  %s459_s19 = scalar_lea.vmem %s1630_s0, %s1491_s27  ;;  %v1333_v7 = vld [vmem:[%s1635_s5] sm:$0xff]   ;;  %v1337_v10 = vld [vmem:[%s1637_s7 + $0x78] sm:$0xff]   ;;  %v1340_v14 = vld [vmem:[%s1637_s7 + $0x70] sm:$0xff]   ;;  %vm1007_vm4 = vcmask 516096  }
   0xf   : > { %1269 = vmatpush3.bf16.msra.mxu1 %v1328_v2  ;;  %1258 = vmatprep.subr.bf16.mxu0 %v1389_v1  ;;  %v1334_v8 = vld [vmem:[%s1634_s4] sm:$0xff]   ;;  %v1338_v12 = vld [vmem:[%s1636_s6 + $0x38] sm:$0xff]   ;;  %v1341_v15 = vld [vmem:[%s1636_s6 + $0x30] sm:$0xff]   ;;  %s490_s30 = scalar_lea.vmem %s1633_s3, %s1214_s20  ;;  %s479_s22 = scalar_lea.vmem %s1632_s2, %s1491_s27 }
  0x10   : > { %1270 = vmatprep.subr.bf16.mxu1 %v1389_v1  ;;  %1276 = vmatprep.mubr.msk.bf16.mxu1 %vm1390_vm0, %v1389_v1  ;;  %v1335_v9 = vld [vmem:[%s469_s12] sm:$0xff]   ;;  %v1339_v13 = vld [vmem:[%s1637_s7 + $0x38] sm:$0xff]   ;;  %v1342_v16 = vld [vmem:[%s1637_s7 + $0x30] sm:$0xff]   ;;  %s494_s25 = scalar_lea.vmem %s1640_s10, %s1646_s13 }
  0x11   : > { %v1336_v11 = vld [vmem:[%s459_s19] sm:$0xff]   ;;  %v1343_v17 = vld [vmem:[%s1637_s7 + $0x68] sm:$0xff]   ;;  %v1349_v23 = vld [vmem:[%s1637_s7 + $0x58] sm:$0xff]  }
  0x12   : > { %1259 = vmatpush3.bf16.msra.mxu0 %v1329_v3  ;;  %v1344_v18 = vld [vmem:[%s1636_s6 + $0x28] sm:$0xff]   ;;  %v1346_v20 = vld [vmem:[%s1637_s7 + $0x60] sm:$0xff]   ;;  %v1350_v24 = vld [vmem:[%s1636_s6 + $0x18] sm:$0xff]  }
  0x13   : > { %1271 = vmatpush3.bf16.msra.mxu1 %v1330_v4  ;;  %1260 = vmatprep.subr.bf16.mxu0 %v1389_v1  ;;  %v1345_v19 = vld [vmem:[%s1637_s7 + $0x28] sm:$0xff]   ;;  %v1347_v21 = vld [vmem:[%s1636_s6 + $0x20] sm:$0xff]   ;;  %v1351_v25 = vld [vmem:[%s1637_s7 + $0x18] sm:$0xff]  }
  0x14   : > { %1272 = vmatprep.subr.bf16.mxu1 %v1389_v1  ;;  %v1348_v22 = vld [vmem:[%s1637_s7 + $0x20] sm:$0xff]   ;;  %v1352_v26 = vld [vmem:[%s1637_s7 + $0x50] sm:$0xff]   ;;  %v1355_v30 = vld [vmem:[%s1637_s7 + $0x48] sm:$0xff]  }
  0x15   : > { %v1353_v27 = vld [vmem:[%s1636_s6 + $0x10] sm:$0xff]   ;;  %v1363_v29 = vld [vmem:[%s490_s30 + $0x4] ss:$8 sps:$4 sm:$0xff]   ;;  %v1361_v37 = vld [vmem:[%s490_s30] ss:$8 sps:$4 sm:$0xff]  }
  0x16   : > { %1261 = vmatpush3.bf16.msra.mxu0 %v1331_v5  ;;  %v1354_v28 = vld [vmem:[%s1637_s7 + $0x10] sm:$0xff]   ;;  %v1356_v31 = vld [vmem:[%s1636_s6 + $0x8] sm:$0xff]   ;;  %v1358_v33 = vld [vmem:[%s1637_s7 + $0x40] sm:$0xff]  }
  0x17   : > { %1273 = vmatpush3.bf16.msra.mxu1 %v1332_v6  ;;  %1262 = vmatprep.subr.bf16.mxu0 %v1389_v1  ;;  %v1357_v32 = vld [vmem:[%s1637_s7 + $0x8] sm:$0xff]   ;;  %v1359_v34 = vld [vmem:[%s1636_s6] sm:$0xff]  }
  0x18   : > { %1274 = vmatprep.subr.bf16.mxu1 %v1389_v1  ;;  %v1360_v35 = vld [vmem:[%s1637_s7] sm:$0xff]  }
  0x19   : > { %v1364_v36 = vld [vmem:[%s479_s22] sm:$0xff]  }
  0x1a   : > { %1263 = vmatpush3.bf16.msra.mxu0 %v1333_v7  ;;  %v1207_v54 = vld [vmem:[%s1638_s8] ss:$0 sm:$0xff] }
  0x1b   : > { %1275 = vmatpush3.bf16.msra.mxu1 %v1334_v8  ;;  %1280 = vmatprep.subr.bf16.mxu0 %v1389_v1  ;;  %v1208_v59 = vld [vmem:[%s1639_s9] ss:$0 sm:$0xff] }
  0x1c   : > { %1234 = vmatprep.subr.bf16.mxu1 %v1337_v10 }
  0x1d   : > { %1265 = vmatmul.mubr.msk.bf16.vlgmr.msra.gmra.mxu0 %vm545_vm1, %v1335_v9 }
  0x1e   : > { %1277 = vmatmul.mubr.msk.bf16.vlgmr.msra.gmra.mxu1 %vm545_vm1, %v1336_v11  ;;  %1281 = vmatpush3.bf16.msra.mxu0 %v1338_v12 }
  0x1f   : > { %1235 = vmatpush3.bf16.msra.mxu1 %v1339_v13  ;;  %1282 = vmatprep.subr.bf16.mxu0 %v1389_v1 }
  0x20   : > { %1236 = vmatprep.subr.bf16.mxu1 %v1340_v14  ;;  %1296 = vmatprep.mubr.msk.bf16.mxu0 %vm1390_vm0, %v1389_v1 }
  0x21   : > { %950 = vmatprep.mubr.bf16.mxu1 %v1363_v29 }
  0x22   : > { %1283 = vmatpush3.bf16.msra.mxu0 %v1341_v15 }
  0x23   : > { %1237 = vmatpush3.bf16.msra.mxu1 %v1342_v16  ;;  %1284 = vmatprep.subr.bf16.mxu0 %v1389_v1 }
  0x24   : > { %1238 = vmatprep.subr.bf16.mxu1 %v1343_v17 }
  0x26   : > { %1285 = vmatpush3.bf16.msra.mxu0 %v1344_v18 }
  0x27   : > { %1239 = vmatpush3.bf16.msra.mxu1 %v1345_v19  ;;  %1286 = vmatprep.subr.bf16.mxu0 %v1389_v1 }
  0x28   : > { %1240 = vmatprep.subr.bf16.mxu1 %v1346_v20 }
  0x2a   : > { %1287 = vmatpush3.bf16.msra.mxu0 %v1347_v21 }
  0x2b   : > { %1241 = vmatpush3.bf16.msra.mxu1 %v1348_v22  ;;  %1288 = vmatprep.subr.bf16.mxu0 %v1389_v1 }
  0x2c   : > { %1242 = vmatprep.subr.bf16.mxu1 %v1349_v23 }
  0x2e   : > { %1289 = vmatpush3.bf16.msra.mxu0 %v1350_v24 }
  0x2f   : > { %1243 = vmatpush3.bf16.msra.mxu1 %v1351_v25  ;;  %1290 = vmatprep.subr.bf16.mxu0 %v1389_v1 }
  0x30   : > { %1244 = vmatprep.subr.bf16.mxu1 %v1352_v26  ;;  %v1028_v26 = vlaneseq }
  0x32   : > { %1291 = vmatpush3.bf16.msra.mxu0 %v1353_v27  ;;  %v1029_v27 = vshrl.u32 %v1028_v26, 7 }
  0x33   : > { %1245 = vmatpush3.bf16.msra.mxu1 %v1354_v28  ;;  %1292 = vmatprep.subr.bf16.mxu0 %v1389_v1 }
  0x34   : > { %1246 = vmatprep.subr.bf16.mxu1 %v1355_v30  ;;  %v1030_v28 = vsub.s32 0, %v1029_v27 }
  0x36   : > { %1293 = vmatpush3.bf16.msra.mxu0 %v1356_v31 }
  0x37   : > { %1247 = vmatpush3.bf16.msra.mxu1 %v1357_v32  ;;  %1294 = vmatprep.subr.bf16.mxu0 %v1389_v1 }
  0x38   : > { %1248 = vmatprep.subr.bf16.mxu1 %v1358_v33 }
  0x3a   : > { %1295 = vmatpush3.bf16.msra.mxu0 %v1359_v34 }
  0x3b   : > { %1249 = vmatpush3.bf16.msra.mxu1 %v1360_v35 }
  0x3d   : > { %1297 = vmatmul.mubr.bf16.vlgmr.msra.gmra.mxu0 %v1364_v36 }
  0x3e   : > { %951 = vmatmul.mubr.bf16.vlgmr.msra.gmra.mxu1 %v1361_v37 }
  0xdd   : > { %v583_v38 = vpop.f32.mrf.mxu0 }
  0xde   : > { %v656_v39 = vpop.f32.mrf.mxu1 }
  0xdf   : > { %v1266_v40 = vpop.f32.mrf.mxu0  ;;  %v657_v48 = vadd.f32 %v656_v39, %v583_v38 }
  0xe0   : > { %v1278_v41 = vpop.f32.mrf.mxu1 }
  0xe1   : > { %v586_v42 = vpop.f32.mrf.mxu0 }
  0xe2   : > { %v659_v43 = vpop.f32.mrf.mxu1 }
  0xe3   : > { %v1267_v44 = vpop.f32.mrf.mxu0  ;;  %v660_v56 = vadd.f32 %v659_v43, %v586_v42 }
  0xe4   : > { %v1279_v45 = vpop.f32.mrf.mxu1 }
  0xfd   : > { %v769_v46 = vpop.f32.mrf.mxu0 }
  0xfe   : > { %v1250_v47 = vpop.f32.mrf.mxu1  ;;  %v776_v51 = vadd.f32 %v769_v46, %v657_v48 }
  0xff   : > { %v1298_v49 = vpop.f32.mrf.mxu0 }
 0x100   : > { %v1251_v50 = vpop.f32.mrf.mxu1 }
 0x101   : > { %v1252_v52 = vadd.f32 %v1251_v50, %v1250_v47  ;;  %v772_v53 = vpop.f32.mrf.mxu0 }
 0x102   : > { %v1253_v55 = vpop.f32.mrf.mxu1  ;;  %v777_v62 = vadd.f32 %v772_v53, %v660_v56 }
 0x103   : > { %v959_v57 = vadd.f32 %v1252_v52, %v776_v51  ;;  %v1299_v58 = vpop.f32.mrf.mxu0 }
 0x104   : > { %v1254_v60 = vpop.f32.mrf.mxu1 }
 0x105   : > { %v968_v61 = vmul.f32 %v1207_v54, %v959_v57  ;;  %v1255_v63 = vadd.f32 %v1254_v60, %v1253_v55 }
 0x107   : > { %v977_v0 = vadd.f32 %v1208_v59, %v968_v61  ;;  %v960_v1 = vadd.f32 %v1255_v63, %v777_v62 }
 0x109   : > { %v981_v2 = vmul.f32 0.2, %v977_v0  ;;  %v969_v3 = vmul.f32 %v1207_v54, %v960_v1  ;;  %vm979_vm2 = vcmp.gt.f32.partialorder %v977_v0, 0.0 }
 0x10b   : > { %v978_v4 = vadd.f32 %v1208_v59, %v969_v3  ;;  %v983_v5 = vsel %vm979_vm2, %v977_v0, %v981_v2 }
 0x10c   : > { %v985_v8 = vsel %vm545_vm1, %v983_v5, -inf  ;;  %v994_v9 = vsel %vm545_vm1, %v983_v5, 0.0 }
 0x10d   : > { %vm980_vm3 = vcmp.gt.f32.partialorder %v978_v4, 0.0  ;;  %v982_v6 = vmul.f32 0.2, %v978_v4 }
 0x10f   : > { %v984_v7 = vsel %vm980_vm3, %v978_v4, %v982_v6 }
 0x110   : > { %v986_v10 = vsel %vm545_vm1, %v984_v7, -inf  ;;  %v995_v11 = vsel %vm545_vm1, %v984_v7, 0.0 }
 0x111   : > { %v987_v12 = vmax.f32 %v985_v8, %v986_v10  ;;  %v996_v13 = vadd.f32 %v995_v11, %v994_v9 }
 0x113   : > { %v988_v14 = vrot.slane %v987_v12, 4  ;;  %v997_v15 = vrot.slane %v996_v13, 4 }
 0x115   : > { %v989_v16 = vmax.f32 %v987_v12, %v988_v14  ;;  %v998_v17 = vadd.f32 %v997_v15, %v996_v13 }
 0x117   : > { %v990_v18 = vrot.slane %v989_v16, 2  ;;  %v999_v19 = vrot.slane %v998_v17, 2 }
 0x119   : > { %v991_v20 = vmax.f32 %v989_v16, %v990_v18  ;;  %v1000_v21 = vadd.f32 %v999_v19, %v998_v17 }
 0x11b   : > { %v992_v22 = vrot.slane %v991_v20, 1  ;;  %v1001_v23 = vrot.slane %v1000_v21, 1 }
 0x11d   : > { %v993_v24 = vmax.f32 %v991_v20, %v992_v22  ;;  %v1002_v25 = vadd.f32 %v1001_v23, %v1000_v21 }
 0x11f   : > { %1008 = vst.msk [vmem:[#allocation2] sm:$0x1] %vm1007_vm4, %v993_v24  ;;  %1009 = vst.msk [vmem:[#allocation3] sm:$0x1] %vm1007_vm4, %v1002_v25 }
 0x126   : > { %v1025_v29 = vld [vmem:[#allocation3] sm:$0x1]  ;;  %v1024_v32 = vld [vmem:[#allocation2] sm:$0x1] }
 0x127   : > { %v1026_v30 = vmul.f32 0.0625, %v1025_v29 }
 0x129   : > { %v1031_v31 = vrot.slane %v1026_v30, %v1030_v28 }
 0x12b   : > { %1032 = vrot.lane.b32.xlu0 %v1031_v31, %s1391_s23 }
 0x19d   : > { %v1033_v33 = vpop.permute.xlu0 %1032 }
 0x19e   : > { %v1035_v34 = vsel %vm545_vm1, %v1024_v32, %v1033_v33 }
 0x19f   : > { %1036 = vst [vmem:[%s494_s25] sm:$0x1] %v1035_v34 }
 0x1a0 PF: > { %s20_s15 = sadd.s32 1, %s1387_s15   ;;  %s1641_s13 = smov %s1383_s14 }
 0x1a1   : > { %p17_p5 = scmp.ge.s32.totalorder %s20_s15, 4   ;;  %s1642_s14 = smov %s1644_s16 }
 0x1a3   :  { %19 = sbr.rel (!%p17_p5) target bundleno = 2 (0x2), region = 111 }

// kernel: dgcnn_forward.11
= control target key start
LH: loop header
LB: loop body
LE: loop exit
PB: predicated region body
PF: predicated region fallthrough
CT: control target
= control target key end

     0   :  { %s1550_s0 = inlined_call_operand.vmem [shape: f32[2,128], index: 0, kind: input, shape index: {}]   ;;  %s1551_s1 = inlined_call_operand.vmem [shape: f32[128,512], index: 1, kind: input, shape index: {}]   ;;  %s1552_s2 = inlined_call_operand.vmem [shape: f32[1,512], index: 2, kind: input, shape index: {}]   ;;  %s1553_s3 = inlined_call_operand.vmem [shape: f32[1,512], index: 3, kind: input, shape index: {}]   ;;  %s1554_s4 = inlined_call_operand.vmem [shape: f32[512,256], index: 4, kind: input, shape index: {}]   ;;  %s1555_s5 = inlined_call_operand.vmem [shape: f32[1,256], index: 5, kind: input, shape index: {}]   ;;  %s1556_s6 = inlined_call_operand.vmem [shape: f32[1,256], index: 6, kind: input, shape index: {}]   ;;  %s1557_s7 = inlined_call_operand.vmem [shape: f32[256,40], index: 7, kind: input, shape index: {}]   ;;  %s1558_s8 = inlined_call_operand.vmem [shape: f32[1,40], index: 8, kind: input, shape index: {}]   ;;  %s1559_s9 = inlined_call_operand.hbm [shape: f32[2,40], index: 9, kind: output, shape index: {}]  }
   0x1   :  { %v95_v0 = vld [vmem:[%s1551_s1 + $0x1e8] sm:$0xff]  ;;  %v97_v1 = vld [vmem:[%s1551_s1 + $0x1f8] sm:$0xff]  ;;  %v94_v2 = vld [vmem:[%s1551_s1 + $0x1e0] sm:$0xff] }
   0x2   :  { %98 = vmatprep.subr.mxu0 %v95_v0  ;;  %169 = vmatprep.subr.mxu1 %v97_v1  ;;  %v96_v3 = vld [vmem:[%s1551_s1 + $0x1f0] sm:$0xff]  ;;  %v91_v4 = vld [vmem:[%s1551_s1 + $0x1c8] sm:$0xff]  ;;  %v93_v5 = vld [vmem:[%s1551_s1 + $0x1d8] sm:$0xff]  ;;  %v793_v1 = vmov 0.0  }
   0x3   :  { %99 = vmatpush1.msra.mxu0 %v94_v2  ;;  %170 = vmatpush1.msra.mxu1 %v96_v3  ;;  %v90_v6 = vld [vmem:[%s1551_s1 + $0x1c0] sm:$0xff]  ;;  %v92_v7 = vld [vmem:[%s1551_s1 + $0x1d0] sm:$0xff]  ;;  %v87_v8 = vld [vmem:[%s1551_s1 + $0x1a8] sm:$0xff] }
   0x4   :  { %100 = vmatprep.subr.mxu0 %v91_v4  ;;  %171 = vmatprep.subr.mxu1 %v93_v5  ;;  %v89_v9 = vld [vmem:[%s1551_s1 + $0x1b8] sm:$0xff]  ;;  %v86_v10 = vld [vmem:[%s1551_s1 + $0x1a0] sm:$0xff]  ;;  %v88_v11 = vld [vmem:[%s1551_s1 + $0x1b0] sm:$0xff] }
   0x5   :  { %101 = vmatpush1.msra.mxu0 %v90_v6  ;;  %172 = vmatpush1.msra.mxu1 %v92_v7  ;;  %v83_v12 = vld [vmem:[%s1551_s1 + $0x188] sm:$0xff]  ;;  %v85_v13 = vld [vmem:[%s1551_s1 + $0x198] sm:$0xff]  ;;  %v82_v14 = vld [vmem:[%s1551_s1 + $0x180] sm:$0xff] }
   0x6   :  { %102 = vmatprep.subr.mxu0 %v87_v8  ;;  %173 = vmatprep.subr.mxu1 %v89_v9  ;;  %v84_v15 = vld [vmem:[%s1551_s1 + $0x190] sm:$0xff]  ;;  %v79_v16 = vld [vmem:[%s1551_s1 + $0x168] sm:$0xff]  ;;  %v81_v17 = vld [vmem:[%s1551_s1 + $0x178] sm:$0xff] }
   0x7   :  { %103 = vmatpush1.msra.mxu0 %v86_v10  ;;  %174 = vmatpush1.msra.mxu1 %v88_v11  ;;  %v78_v18 = vld [vmem:[%s1551_s1 + $0x160] sm:$0xff]  ;;  %v80_v19 = vld [vmem:[%s1551_s1 + $0x170] sm:$0xff]  ;;  %v75_v20 = vld [vmem:[%s1551_s1 + $0x148] sm:$0xff] }
   0x8   :  { %104 = vmatprep.subr.mxu0 %v83_v12  ;;  %175 = vmatprep.subr.mxu1 %v85_v13  ;;  %v77_v21 = vld [vmem:[%s1551_s1 + $0x158] sm:$0xff]  ;;  %v74_v22 = vld [vmem:[%s1551_s1 + $0x140] sm:$0xff]  ;;  %v76_v23 = vld [vmem:[%s1551_s1 + $0x150] sm:$0xff] }
   0x9   :  { %105 = vmatpush1.msra.mxu0 %v82_v14  ;;  %176 = vmatpush1.msra.mxu1 %v84_v15  ;;  %v71_v24 = vld [vmem:[%s1551_s1 + $0x128] sm:$0xff]  ;;  %v73_v25 = vld [vmem:[%s1551_s1 + $0x138] sm:$0xff]  ;;  %v70_v26 = vld [vmem:[%s1551_s1 + $0x120] sm:$0xff] }
   0xa   :  { %106 = vmatprep.subr.mxu0 %v79_v16  ;;  %177 = vmatprep.subr.mxu1 %v81_v17  ;;  %v72_v27 = vld [vmem:[%s1551_s1 + $0x130] sm:$0xff]  ;;  %v67_v28 = vld [vmem:[%s1551_s1 + $0x108] sm:$0xff]  ;;  %v69_v29 = vld [vmem:[%s1551_s1 + $0x118] sm:$0xff] }
   0xb   :  { %107 = vmatpush1.msra.mxu0 %v78_v18  ;;  %178 = vmatpush1.msra.mxu1 %v80_v19  ;;  %v66_v30 = vld [vmem:[%s1551_s1 + $0x100] sm:$0xff]  ;;  %v68_v31 = vld [vmem:[%s1551_s1 + $0x110] sm:$0xff]  ;;  %v63_v32 = vld [vmem:[%s1551_s1 + $0xe8] sm:$0xff] }
   0xc   :  { %108 = vmatprep.subr.mxu0 %v75_v20  ;;  %179 = vmatprep.subr.mxu1 %v77_v21  ;;  %v65_v33 = vld [vmem:[%s1551_s1 + $0xf8] sm:$0xff]  ;;  %v62_v34 = vld [vmem:[%s1551_s1 + $0xe0] sm:$0xff]  ;;  %v64_v35 = vld [vmem:[%s1551_s1 + $0xf0] sm:$0xff] }
   0xd   :  { %109 = vmatpush1.msra.mxu0 %v74_v22  ;;  %180 = vmatpush1.msra.mxu1 %v76_v23  ;;  %v59_v36 = vld [vmem:[%s1551_s1 + $0xc8] sm:$0xff]  ;;  %v61_v37 = vld [vmem:[%s1551_s1 + $0xd8] sm:$0xff]  ;;  %v58_v38 = vld [vmem:[%s1551_s1 + $0xc0] sm:$0xff] }
   0xe   :  { %110 = vmatprep.subr.mxu0 %v71_v24  ;;  %181 = vmatprep.subr.mxu1 %v73_v25  ;;  %v60_v39 = vld [vmem:[%s1551_s1 + $0xd0] sm:$0xff]  ;;  %v55_v40 = vld [vmem:[%s1551_s1 + $0xa8] sm:$0xff]  ;;  %v57_v41 = vld [vmem:[%s1551_s1 + $0xb8] sm:$0xff] }
   0xf   :  { %111 = vmatpush1.msra.mxu0 %v70_v26  ;;  %182 = vmatpush1.msra.mxu1 %v72_v27  ;;  %v54_v42 = vld [vmem:[%s1551_s1 + $0xa0] sm:$0xff]  ;;  %v56_v43 = vld [vmem:[%s1551_s1 + $0xb0] sm:$0xff]  ;;  %v51_v44 = vld [vmem:[%s1551_s1 + $0x88] sm:$0xff] }
  0x10   :  { %112 = vmatprep.subr.mxu0 %v67_v28  ;;  %183 = vmatprep.subr.mxu1 %v69_v29  ;;  %v53_v45 = vld [vmem:[%s1551_s1 + $0x98] sm:$0xff]  ;;  %v50_v46 = vld [vmem:[%s1551_s1 + $0x80] sm:$0xff]  ;;  %v52_v47 = vld [vmem:[%s1551_s1 + $0x90] sm:$0xff] }
  0x11   :  { %113 = vmatpush1.msra.mxu0 %v66_v30  ;;  %184 = vmatpush1.msra.mxu1 %v68_v31  ;;  %v47_v48 = vld [vmem:[%s1551_s1 + $0x68] sm:$0xff]  ;;  %v49_v49 = vld [vmem:[%s1551_s1 + $0x78] sm:$0xff]  ;;  %v46_v50 = vld [vmem:[%s1551_s1 + $0x60] sm:$0xff] }
  0x12   :  { %114 = vmatprep.subr.mxu0 %v63_v32  ;;  %185 = vmatprep.subr.mxu1 %v65_v33  ;;  %v48_v51 = vld [vmem:[%s1551_s1 + $0x70] sm:$0xff]  ;;  %v43_v52 = vld [vmem:[%s1551_s1 + $0x48] sm:$0xff]  ;;  %v45_v53 = vld [vmem:[%s1551_s1 + $0x58] sm:$0xff] }
  0x13   :  { %115 = vmatpush1.msra.mxu0 %v62_v34  ;;  %186 = vmatpush1.msra.mxu1 %v64_v35  ;;  %v42_v54 = vld [vmem:[%s1551_s1 + $0x40] sm:$0xff]  ;;  %v44_v55 = vld [vmem:[%s1551_s1 + $0x50] sm:$0xff]  ;;  %v39_v56 = vld [vmem:[%s1551_s1 + $0x28] sm:$0xff] }
  0x14   :  { %116 = vmatprep.subr.mxu0 %v59_v36  ;;  %187 = vmatprep.subr.mxu1 %v61_v37  ;;  %v41_v57 = vld [vmem:[%s1551_s1 + $0x38] sm:$0xff]  ;;  %v38_v58 = vld [vmem:[%s1551_s1 + $0x20] sm:$0xff]  ;;  %v40_v59 = vld [vmem:[%s1551_s1 + $0x30] sm:$0xff] }
  0x15   :  { %117 = vmatpush1.msra.mxu0 %v58_v38  ;;  %188 = vmatpush1.msra.mxu1 %v60_v39  ;;  %v35_v60 = vld [vmem:[%s1551_s1 + $0x8] sm:$0xff]  ;;  %v37_v61 = vld [vmem:[%s1551_s1 + $0x18] sm:$0xff]  ;;  %v34_v62 = vld [vmem:[%s1551_s1] sm:$0xff] }
  0x16   :  { %118 = vmatprep.subr.mxu0 %v55_v40  ;;  %189 = vmatprep.subr.mxu1 %v57_v41  ;;  %v36_v63 = vld [vmem:[%s1551_s1 + $0x10] sm:$0xff]  ;;  %v33_v0 = vld [vmem:[%s1550_s0] sm:$0x3]  ;;  %v335_v2 = vld [vmem:[%s1554_s4 + $0xf8] sm:$0xff] }
  0x17   :  { %119 = vmatpush1.msra.mxu0 %v54_v42  ;;  %190 = vmatpush1.msra.mxu1 %v56_v43  ;;  %v399_v3 = vld [vmem:[%s1554_s4 + $0x2f8] sm:$0xff]  ;;  %v334_v4 = vld [vmem:[%s1554_s4 + $0xf0] sm:$0xff]  ;;  %v333_v6 = vld [vmem:[%s1554_s4 + $0xe8] sm:$0xff] }
  0x18   :  { %120 = vmatprep.subr.mxu0 %v51_v44  ;;  %191 = vmatprep.subr.mxu1 %v53_v45  ;;  %v398_v5 = vld [vmem:[%s1554_s4 + $0x2f0] sm:$0xff]  ;;  %v397_v7 = vld [vmem:[%s1554_s4 + $0x2e8] sm:$0xff]  ;;  %v332_v8 = vld [vmem:[%s1554_s4 + $0xe0] sm:$0xff] }
  0x19   :  { %121 = vmatpush1.msra.mxu0 %v50_v46  ;;  %192 = vmatpush1.msra.mxu1 %v52_v47  ;;  %v396_v9 = vld [vmem:[%s1554_s4 + $0x2e0] sm:$0xff]  ;;  %v331_v10 = vld [vmem:[%s1554_s4 + $0xd8] sm:$0xff]  ;;  %v330_v12 = vld [vmem:[%s1554_s4 + $0xd0] sm:$0xff] }
  0x1a   :  { %122 = vmatprep.subr.mxu0 %v47_v48  ;;  %193 = vmatprep.subr.mxu1 %v49_v49  ;;  %v395_v11 = vld [vmem:[%s1554_s4 + $0x2d8] sm:$0xff]  ;;  %v394_v13 = vld [vmem:[%s1554_s4 + $0x2d0] sm:$0xff]  ;;  %v329_v14 = vld [vmem:[%s1554_s4 + $0xc8] sm:$0xff] }
  0x1b   :  { %123 = vmatpush1.msra.mxu0 %v46_v50  ;;  %194 = vmatpush1.msra.mxu1 %v48_v51  ;;  %v393_v15 = vld [vmem:[%s1554_s4 + $0x2c8] sm:$0xff]  ;;  %v328_v16 = vld [vmem:[%s1554_s4 + $0xc0] sm:$0xff]  ;;  %v327_v18 = vld [vmem:[%s1554_s4 + $0xb8] sm:$0xff] }
  0x1c   :  { %124 = vmatprep.subr.mxu0 %v43_v52  ;;  %195 = vmatprep.subr.mxu1 %v45_v53  ;;  %v392_v17 = vld [vmem:[%s1554_s4 + $0x2c0] sm:$0xff]  ;;  %v391_v19 = vld [vmem:[%s1554_s4 + $0x2b8] sm:$0xff]  ;;  %v326_v20 = vld [vmem:[%s1554_s4 + $0xb0] sm:$0xff] }
  0x1d   :  { %125 = vmatpush1.msra.mxu0 %v42_v54  ;;  %196 = vmatpush1.msra.mxu1 %v44_v55  ;;  %v390_v21 = vld [vmem:[%s1554_s4 + $0x2b0] sm:$0xff]  ;;  %v325_v22 = vld [vmem:[%s1554_s4 + $0xa8] sm:$0xff]  ;;  %v324_v24 = vld [vmem:[%s1554_s4 + $0xa0] sm:$0xff] }
  0x1e   :  { %126 = vmatprep.subr.mxu0 %v39_v56  ;;  %197 = vmatprep.subr.mxu1 %v41_v57  ;;  %v389_v23 = vld [vmem:[%s1554_s4 + $0x2a8] sm:$0xff]  ;;  %v388_v25 = vld [vmem:[%s1554_s4 + $0x2a0] sm:$0xff]  ;;  %v323_v26 = vld [vmem:[%s1554_s4 + $0x98] sm:$0xff] }
  0x1f   :  { %127 = vmatpush1.msra.mxu0 %v38_v58  ;;  %198 = vmatpush1.msra.mxu1 %v40_v59  ;;  %v387_v27 = vld [vmem:[%s1554_s4 + $0x298] sm:$0xff]  ;;  %v322_v28 = vld [vmem:[%s1554_s4 + $0x90] sm:$0xff]  ;;  %v321_v30 = vld [vmem:[%s1554_s4 + $0x88] sm:$0xff] }
  0x20   :  { %128 = vmatprep.subr.mxu0 %v35_v60  ;;  %199 = vmatprep.subr.mxu1 %v37_v61  ;;  %v386_v29 = vld [vmem:[%s1554_s4 + $0x290] sm:$0xff]  ;;  %v385_v31 = vld [vmem:[%s1554_s4 + $0x288] sm:$0xff]  ;;  %v320_v32 = vld [vmem:[%s1554_s4 + $0x80] sm:$0xff] }
  0x21   :  { %129 = vmatpush1.msra.mxu0 %v34_v62  ;;  %162 = vmatprep.mubr.f32.mxu0 %v793_v1  ;;  %v384_v33 = vld [vmem:[%s1554_s4 + $0x280] sm:$0xff]  ;;  %v319_v34 = vld [vmem:[%s1554_s4 + $0x78] sm:$0xff]  ;;  %v318_v36 = vld [vmem:[%s1554_s4 + $0x70] sm:$0xff] }
  0x22   :  { %200 = vmatpush1.msra.mxu1 %v36_v63  ;;  %233 = vmatprep.mubr.f32.mxu1 %v793_v1  ;;  %v383_v35 = vld [vmem:[%s1554_s4 + $0x278] sm:$0xff]  ;;  %v382_v37 = vld [vmem:[%s1554_s4 + $0x270] sm:$0xff]  ;;  %v317_v38 = vld [vmem:[%s1554_s4 + $0x68] sm:$0xff] }
  0x23   :  { %163 = vmatmul.mubr.f32.vlgmr.msra.gmra.mxu0 %v33_v0  ;;  %234 = vmatmul.mubr.f32.vlgmr.msra.gmra.mxu1 %v33_v0  ;;  %v381_v39 = vld [vmem:[%s1554_s4 + $0x268] sm:$0xff]  ;;  %v316_v40 = vld [vmem:[%s1554_s4 + $0x60] sm:$0xff]  ;;  %v315_v42 = vld [vmem:[%s1554_s4 + $0x58] sm:$0xff] }
  0x24   :  { %432 = vmatprep.subr.mxu0 %v335_v2  ;;  %503 = vmatprep.subr.mxu1 %v399_v3  ;;  %v380_v41 = vld [vmem:[%s1554_s4 + $0x260] sm:$0xff]  ;;  %v379_v43 = vld [vmem:[%s1554_s4 + $0x258] sm:$0xff]  ;;  %v314_v44 = vld [vmem:[%s1554_s4 + $0x50] sm:$0xff] }
  0x25   :  { %433 = vmatpush1.msra.mxu0 %v334_v4  ;;  %504 = vmatpush1.msra.mxu1 %v398_v5  ;;  %v378_v45 = vld [vmem:[%s1554_s4 + $0x250] sm:$0xff]  ;;  %v313_v46 = vld [vmem:[%s1554_s4 + $0x48] sm:$0xff]  ;;  %v312_v48 = vld [vmem:[%s1554_s4 + $0x40] sm:$0xff] }
  0x26   :  { %434 = vmatprep.subr.mxu0 %v333_v6  ;;  %505 = vmatprep.subr.mxu1 %v397_v7  ;;  %v377_v47 = vld [vmem:[%s1554_s4 + $0x248] sm:$0xff]  ;;  %v376_v49 = vld [vmem:[%s1554_s4 + $0x240] sm:$0xff]  ;;  %v311_v50 = vld [vmem:[%s1554_s4 + $0x38] sm:$0xff] }
  0x27   :  { %435 = vmatpush1.msra.mxu0 %v332_v8  ;;  %506 = vmatpush1.msra.mxu1 %v396_v9  ;;  %v375_v51 = vld [vmem:[%s1554_s4 + $0x238] sm:$0xff]  ;;  %v310_v52 = vld [vmem:[%s1554_s4 + $0x30] sm:$0xff] }
  0x28   :  { %436 = vmatprep.subr.mxu0 %v331_v10  ;;  %507 = vmatprep.subr.mxu1 %v395_v11  ;;  %v374_v53 = vld [vmem:[%s1554_s4 + $0x230] sm:$0xff] }
  0x29   :  { %437 = vmatpush1.msra.mxu0 %v330_v12  ;;  %508 = vmatpush1.msra.mxu1 %v394_v13 }
  0x2a   :  { %438 = vmatprep.subr.mxu0 %v329_v14  ;;  %509 = vmatprep.subr.mxu1 %v393_v15 }
  0x2b   :  { %439 = vmatpush1.msra.mxu0 %v328_v16  ;;  %510 = vmatpush1.msra.mxu1 %v392_v17 }
  0x2c   :  { %440 = vmatprep.subr.mxu0 %v327_v18  ;;  %511 = vmatprep.subr.mxu1 %v391_v19 }
  0x2d   :  { %441 = vmatpush1.msra.mxu0 %v326_v20  ;;  %512 = vmatpush1.msra.mxu1 %v390_v21 }
  0x2e   :  { %442 = vmatprep.subr.mxu0 %v325_v22  ;;  %513 = vmatprep.subr.mxu1 %v389_v23 }
  0x2f   :  { %443 = vmatpush1.msra.mxu0 %v324_v24  ;;  %514 = vmatpush1.msra.mxu1 %v388_v25 }
  0x30   :  { %444 = vmatprep.subr.mxu0 %v323_v26  ;;  %515 = vmatprep.subr.mxu1 %v387_v27 }
  0x31   :  { %445 = vmatpush1.msra.mxu0 %v322_v28  ;;  %516 = vmatpush1.msra.mxu1 %v386_v29 }
  0x32   :  { %446 = vmatprep.subr.mxu0 %v321_v30  ;;  %517 = vmatprep.subr.mxu1 %v385_v31 }
  0x33   :  { %447 = vmatpush1.msra.mxu0 %v320_v32  ;;  %518 = vmatpush1.msra.mxu1 %v384_v33 }
  0x34   :  { %448 = vmatprep.subr.mxu0 %v319_v34  ;;  %519 = vmatprep.subr.mxu1 %v383_v35 }
  0x35   :  { %449 = vmatpush1.msra.mxu0 %v318_v36  ;;  %520 = vmatpush1.msra.mxu1 %v382_v37 }
  0x36   :  { %450 = vmatprep.subr.mxu0 %v317_v38  ;;  %521 = vmatprep.subr.mxu1 %v381_v39 }
  0x37   :  { %451 = vmatpush1.msra.mxu0 %v316_v40  ;;  %522 = vmatpush1.msra.mxu1 %v380_v41 }
  0x38   :  { %452 = vmatprep.subr.mxu0 %v315_v42  ;;  %523 = vmatprep.subr.mxu1 %v379_v43 }
  0x39   :  { %453 = vmatpush1.msra.mxu0 %v314_v44  ;;  %524 = vmatpush1.msra.mxu1 %v378_v45 }
  0x3a   :  { %454 = vmatprep.subr.mxu0 %v313_v46  ;;  %525 = vmatprep.subr.mxu1 %v377_v47 }
  0x3b   :  { %14 = vsyncpa [#allocation3], 0  ;;  %455 = vmatpush1.msra.mxu0 %v312_v48  ;;  %526 = vmatpush1.msra.mxu1 %v376_v49  ;;  %v309_v54 = vld [vmem:[%s1554_s4 + $0x28] sm:$0xff]  ;;  %v308_v56 = vld [vmem:[%s1554_s4 + $0x20] sm:$0xff]  ;;  %vm717_vm6 = vcmask 320512  }
  0x3c   :  { %v373_v55 = vld [vmem:[%s1554_s4 + $0x228] sm:$0xff]  ;;  %456 = vmatprep.subr.mxu0 %v311_v50  ;;  %527 = vmatprep.subr.mxu1 %v375_v51  ;;  %v372_v57 = vld [vmem:[%s1554_s4 + $0x220] sm:$0xff]  ;;  %v307_v58 = vld [vmem:[%s1554_s4 + $0x18] sm:$0xff] }
  0x3d   :  { %457 = vmatpush1.msra.mxu0 %v310_v52  ;;  %528 = vmatpush1.msra.mxu1 %v374_v53  ;;  %v371_v59 = vld [vmem:[%s1554_s4 + $0x218] sm:$0xff]  ;;  %v306_v60 = vld [vmem:[%s1554_s4 + $0x10] sm:$0xff]  ;;  %v305_v62 = vld [vmem:[%s1554_s4 + $0x8] sm:$0xff] }
  0x3e   :  { %458 = vmatprep.subr.mxu0 %v309_v54  ;;  %529 = vmatprep.subr.mxu1 %v373_v55  ;;  %v370_v61 = vld [vmem:[%s1554_s4 + $0x210] sm:$0xff]  ;;  %v369_v63 = vld [vmem:[%s1554_s4 + $0x208] sm:$0xff]  ;;  %v304_v0 = vld [vmem:[%s1554_s4] sm:$0xff] }
  0x3f   :  { %459 = vmatpush1.msra.mxu0 %v308_v56  ;;  %530 = vmatpush1.msra.mxu1 %v372_v57  ;;  %v368_v1 = vld [vmem:[%s1554_s4 + $0x200] sm:$0xff]  ;;  %v367_v2 = vld [vmem:[%s1554_s4 + $0x1f8] sm:$0xff]  ;;  %v366_v4 = vld [vmem:[%s1554_s4 + $0x1f0] sm:$0xff] }
  0x40   :  { %460 = vmatprep.subr.mxu0 %v307_v58  ;;  %531 = vmatprep.subr.mxu1 %v371_v59  ;;  %v431_v3 = vld [vmem:[%s1554_s4 + $0x3f8] sm:$0xff]  ;;  %v430_v5 = vld [vmem:[%s1554_s4 + $0x3f0] sm:$0xff]  ;;  %v365_v6 = vld [vmem:[%s1554_s4 + $0x1e8] sm:$0xff] }
  0x41   :  { %461 = vmatpush1.msra.mxu0 %v306_v60  ;;  %532 = vmatpush1.msra.mxu1 %v370_v61  ;;  %v429_v7 = vld [vmem:[%s1554_s4 + $0x3e8] sm:$0xff]  ;;  %v364_v8 = vld [vmem:[%s1554_s4 + $0x1e0] sm:$0xff]  ;;  %v363_v10 = vld [vmem:[%s1554_s4 + $0x1d8] sm:$0xff] }
  0x42   :  { %462 = vmatprep.subr.mxu0 %v305_v62  ;;  %533 = vmatprep.subr.mxu1 %v369_v63  ;;  %v428_v9 = vld [vmem:[%s1554_s4 + $0x3e0] sm:$0xff]  ;;  %v427_v11 = vld [vmem:[%s1554_s4 + $0x3d8] sm:$0xff]  ;;  %v362_v12 = vld [vmem:[%s1554_s4 + $0x1d0] sm:$0xff] }
  0x43   :  { %463 = vmatpush1.msra.mxu0 %v304_v0  ;;  %534 = vmatpush1.msra.mxu1 %v368_v1  ;;  %v426_v13 = vld [vmem:[%s1554_s4 + $0x3d0] sm:$0xff]  ;;  %v361_v14 = vld [vmem:[%s1554_s4 + $0x1c8] sm:$0xff]  ;;  %v360_v16 = vld [vmem:[%s1554_s4 + $0x1c0] sm:$0xff] }
  0x44   :  { %464 = vmatprep.subr.mxu0 %v367_v2  ;;  %535 = vmatprep.subr.mxu1 %v431_v3  ;;  %v425_v15 = vld [vmem:[%s1554_s4 + $0x3c8] sm:$0xff]  ;;  %v424_v17 = vld [vmem:[%s1554_s4 + $0x3c0] sm:$0xff]  ;;  %v359_v18 = vld [vmem:[%s1554_s4 + $0x1b8] sm:$0xff]  ;;  %v242_v3 = vlaneseq }
  0x45   :  { %465 = vmatpush2.msra.mxu0 %v366_v4  ;;  %536 = vmatpush2.msra.mxu1 %v430_v5  ;;  %v423_v19 = vld [vmem:[%s1554_s4 + $0x3b8] sm:$0xff]  ;;  %v358_v20 = vld [vmem:[%s1554_s4 + $0x1b0] sm:$0xff]  ;;  %v357_v22 = vld [vmem:[%s1554_s4 + $0x1a8] sm:$0xff] }
  0x46   :  { %466 = vmatprep.subr.mxu0 %v365_v6  ;;  %537 = vmatprep.subr.mxu1 %v429_v7  ;;  %v422_v21 = vld [vmem:[%s1554_s4 + $0x3b0] sm:$0xff]  ;;  %v421_v23 = vld [vmem:[%s1554_s4 + $0x3a8] sm:$0xff]  ;;  %v356_v24 = vld [vmem:[%s1554_s4 + $0x1a0] sm:$0xff]  ;;  %v243_v4 = vshrl.u32 %v242_v3, 7 }
  0x47   :  { %467 = vmatpush2.msra.mxu0 %v364_v8  ;;  %538 = vmatpush2.msra.mxu1 %v428_v9  ;;  %v420_v25 = vld [vmem:[%s1554_s4 + $0x3a0] sm:$0xff]  ;;  %v355_v26 = vld [vmem:[%s1554_s4 + $0x198] sm:$0xff]  ;;  %v354_v28 = vld [vmem:[%s1554_s4 + $0x190] sm:$0xff] }
  0x48   :  { %468 = vmatprep.subr.mxu0 %v363_v10  ;;  %539 = vmatprep.subr.mxu1 %v427_v11  ;;  %v419_v27 = vld [vmem:[%s1554_s4 + $0x398] sm:$0xff]  ;;  %v418_v29 = vld [vmem:[%s1554_s4 + $0x390] sm:$0xff]  ;;  %v353_v30 = vld [vmem:[%s1554_s4 + $0x188] sm:$0xff]  ;;  %v1427_v5 = vsub.s32 0, %v243_v4  ;;  %v252_v6 = vsub.s32 2, %v243_v4  ;;  %v1432_v8 = vsub.s32 1, %v243_v4 }
  0x49   :  { %469 = vmatpush2.msra.mxu0 %v362_v12  ;;  %540 = vmatpush2.msra.mxu1 %v426_v13  ;;  %v417_v31 = vld [vmem:[%s1554_s4 + $0x388] sm:$0xff]  ;;  %v352_v32 = vld [vmem:[%s1554_s4 + $0x180] sm:$0xff]  ;;  %v351_v34 = vld [vmem:[%s1554_s4 + $0x178] sm:$0xff]  ;;  %v256_v9 = vsub.s32 3, %v243_v4 }
  0x4a   :  { %470 = vmatprep.subr.mxu0 %v361_v14  ;;  %541 = vmatprep.subr.mxu1 %v425_v15  ;;  %v416_v33 = vld [vmem:[%s1554_s4 + $0x380] sm:$0xff]  ;;  %v415_v35 = vld [vmem:[%s1554_s4 + $0x378] sm:$0xff]  ;;  %v350_v36 = vld [vmem:[%s1554_s4 + $0x170] sm:$0xff] }
  0x4b   :  { %471 = vmatpush2.msra.mxu0 %v360_v16  ;;  %542 = vmatpush2.msra.mxu1 %v424_v17  ;;  %v414_v37 = vld [vmem:[%s1554_s4 + $0x370] sm:$0xff]  ;;  %v349_v38 = vld [vmem:[%s1554_s4 + $0x168] sm:$0xff]  ;;  %v348_v40 = vld [vmem:[%s1554_s4 + $0x160] sm:$0xff] }
  0x4c   :  { %472 = vmatprep.subr.mxu0 %v359_v18  ;;  %543 = vmatprep.subr.mxu1 %v423_v19  ;;  %v413_v39 = vld [vmem:[%s1554_s4 + $0x368] sm:$0xff]  ;;  %v412_v41 = vld [vmem:[%s1554_s4 + $0x360] sm:$0xff]  ;;  %v347_v42 = vld [vmem:[%s1554_s4 + $0x158] sm:$0xff] }
  0x4d   :  { %473 = vmatpush2.msra.mxu0 %v358_v20  ;;  %544 = vmatpush2.msra.mxu1 %v422_v21  ;;  %v411_v43 = vld [vmem:[%s1554_s4 + $0x358] sm:$0xff]  ;;  %v346_v44 = vld [vmem:[%s1554_s4 + $0x150] sm:$0xff]  ;;  %v345_v46 = vld [vmem:[%s1554_s4 + $0x148] sm:$0xff] }
  0x4e   :  { %474 = vmatprep.subr.mxu0 %v357_v22  ;;  %545 = vmatprep.subr.mxu1 %v421_v23  ;;  %v410_v45 = vld [vmem:[%s1554_s4 + $0x350] sm:$0xff]  ;;  %v409_v47 = vld [vmem:[%s1554_s4 + $0x348] sm:$0xff]  ;;  %v344_v48 = vld [vmem:[%s1554_s4 + $0x140] sm:$0xff] }
  0x4f   :  { %475 = vmatpush2.msra.mxu0 %v356_v24  ;;  %546 = vmatpush2.msra.mxu1 %v420_v25  ;;  %v408_v49 = vld [vmem:[%s1554_s4 + $0x340] sm:$0xff]  ;;  %v343_v50 = vld [vmem:[%s1554_s4 + $0x138] sm:$0xff]  ;;  %v342_v52 = vld [vmem:[%s1554_s4 + $0x130] sm:$0xff] }
  0x50   :  { %476 = vmatprep.subr.mxu0 %v355_v26  ;;  %547 = vmatprep.subr.mxu1 %v419_v27  ;;  %v407_v51 = vld [vmem:[%s1554_s4 + $0x338] sm:$0xff]  ;;  %v406_v53 = vld [vmem:[%s1554_s4 + $0x330] sm:$0xff]  ;;  %v341_v54 = vld [vmem:[%s1554_s4 + $0x128] sm:$0xff] }
  0x51   :  { %477 = vmatpush2.msra.mxu0 %v354_v28  ;;  %548 = vmatpush2.msra.mxu1 %v418_v29  ;;  %v405_v55 = vld [vmem:[%s1554_s4 + $0x328] sm:$0xff]  ;;  %v340_v56 = vld [vmem:[%s1554_s4 + $0x120] sm:$0xff]  ;;  %v339_v58 = vld [vmem:[%s1554_s4 + $0x118] sm:$0xff] }
  0x52   :  { %478 = vmatprep.subr.mxu0 %v353_v30  ;;  %549 = vmatprep.subr.mxu1 %v417_v31  ;;  %v404_v57 = vld [vmem:[%s1554_s4 + $0x320] sm:$0xff]  ;;  %v403_v59 = vld [vmem:[%s1554_s4 + $0x318] sm:$0xff]  ;;  %v338_v60 = vld [vmem:[%s1554_s4 + $0x110] sm:$0xff] }
  0x53   :  { %479 = vmatpush2.msra.mxu0 %v352_v32  ;;  %550 = vmatpush2.msra.mxu1 %v416_v33  ;;  %v402_v61 = vld [vmem:[%s1554_s4 + $0x310] sm:$0xff]  ;;  %v337_v62 = vld [vmem:[%s1554_s4 + $0x108] sm:$0xff]  ;;  %v336_v0 = vld [vmem:[%s1554_s4 + $0x100] sm:$0xff] }
  0x54   :  { %480 = vmatprep.subr.mxu0 %v351_v34  ;;  %551 = vmatprep.subr.mxu1 %v415_v35  ;;  %v401_v63 = vld [vmem:[%s1554_s4 + $0x308] sm:$0xff]  ;;  %v400_v1 = vld [vmem:[%s1554_s4 + $0x300] sm:$0xff]  ;;  %v639_v2 = vld [vmem:[%s1557_s7 + $0xf8] sm:$0xff] }
  0x55   :  { %481 = vmatpush2.msra.mxu0 %v350_v36  ;;  %552 = vmatpush2.msra.mxu1 %v414_v37  ;;  %v240_v7 = vld [vmem:[%s1552_s2] sm:$0xf]  ;;  %v623_v37 = vld [vmem:[%s1557_s7 + $0x78] sm:$0xff]  ;;  %v609_v3 = vld [vmem:[%s1557_s7 + $0x8] sm:$0xff] }
  0x56   :  { %482 = vmatprep.subr.mxu0 %v349_v38  ;;  %553 = vmatprep.subr.mxu1 %v413_v39  ;;  %v266_v10 = vld [vmem:[%s1553_s3] sm:$0xf]  ;;  %v245_v11 = vrot.slane %v240_v7, %v1427_v5  ;;  %v253_v12 = vrot.slane %v240_v7, %v252_v6  ;;  %v249_v15 = vrot.slane %v240_v7, %v1432_v8 }
  0x57   :  { %483 = vmatpush2.msra.mxu0 %v348_v40  ;;  %554 = vmatpush2.msra.mxu1 %v412_v41  ;;  %v271_v13 = vrot.slane %v266_v10, %v1427_v5  ;;  %v279_v14 = vrot.slane %v266_v10, %v252_v6  ;;  %v257_v16 = vrot.slane %v240_v7, %v256_v9  ;;  %v638_v40 = vld [vmem:[%s1557_s7 + $0xf0] sm:$0xff]  ;;  %v624_v4 = vld [vmem:[%s1557_s7 + $0x80] sm:$0xff] }
  0x58   :  { %484 = vmatprep.subr.mxu0 %v347_v42  ;;  %555 = vmatprep.subr.mxu1 %v411_v43  ;;  %v275_v21 = vrot.slane %v266_v10, %v1432_v8  ;;  %v283_v22 = vrot.slane %v266_v10, %v256_v9  ;;  %v622_v41 = vld [vmem:[%s1557_s7 + $0x70] sm:$0xff]  ;;  %v637_v42 = vld [vmem:[%s1557_s7 + $0xe8] sm:$0xff]  ;;  %v608_v6 = vld [vmem:[%s1557_s7] sm:$0xff] }
  0x59   :  { %485 = vmatpush2.msra.mxu0 %v346_v44  ;;  %556 = vmatpush2.msra.mxu1 %v410_v45  ;;  %v621_v43 = vld [vmem:[%s1557_s7 + $0x68] sm:$0xff]  ;;  %v636_v44 = vld [vmem:[%s1557_s7 + $0xe0] sm:$0xff] }
  0x5a   :  { %486 = vmatprep.subr.mxu0 %v345_v46  ;;  %557 = vmatprep.subr.mxu1 %v409_v47  ;;  %v620_v45 = vld [vmem:[%s1557_s7 + $0x60] sm:$0xff]  ;;  %v635_v46 = vld [vmem:[%s1557_s7 + $0xd8] sm:$0xff] }
  0x5b   :  { %487 = vmatpush2.msra.mxu0 %v344_v48  ;;  %558 = vmatpush2.msra.mxu1 %v408_v49  ;;  %v619_v47 = vld [vmem:[%s1557_s7 + $0x58] sm:$0xff]  ;;  %v634_v48 = vld [vmem:[%s1557_s7 + $0xd0] sm:$0xff]  ;;  %v574_v7 = vld [vmem:[%s1555_s5] sm:$0x3] }
  0x5c   :  { %488 = vmatprep.subr.mxu0 %v343_v50  ;;  %559 = vmatprep.subr.mxu1 %v407_v51  ;;  %v618_v49 = vld [vmem:[%s1557_s7 + $0x50] sm:$0xff]  ;;  %v633_v50 = vld [vmem:[%s1557_s7 + $0xc8] sm:$0xff]  ;;  %v588_v9 = vld [vmem:[%s1556_s6] sm:$0x3]  ;;  %v579_v10 = vrot.slane %v574_v7, %v1427_v5 }
  0x5d   :  { %489 = vmatpush2.msra.mxu0 %v342_v52  ;;  %560 = vmatpush2.msra.mxu1 %v406_v53  ;;  %v617_v51 = vld [vmem:[%s1557_s7 + $0x48] sm:$0xff]  ;;  %v632_v52 = vld [vmem:[%s1557_s7 + $0xc0] sm:$0xff] }
  0x5e   :  { %490 = vmatprep.subr.mxu0 %v341_v54  ;;  %561 = vmatprep.subr.mxu1 %v405_v55  ;;  %v616_v53 = vld [vmem:[%s1557_s7 + $0x40] sm:$0xff]  ;;  %v631_v54 = vld [vmem:[%s1557_s7 + $0xb8] sm:$0xff] }
  0x5f   :  { %491 = vmatpush2.msra.mxu0 %v340_v56  ;;  %562 = vmatpush2.msra.mxu1 %v404_v57  ;;  %v615_v55 = vld [vmem:[%s1557_s7 + $0x38] sm:$0xff]  ;;  %v630_v56 = vld [vmem:[%s1557_s7 + $0xb0] sm:$0xff] }
  0x60   :  { %492 = vmatprep.subr.mxu0 %v339_v58  ;;  %563 = vmatprep.subr.mxu1 %v403_v59  ;;  %v614_v57 = vld [vmem:[%s1557_s7 + $0x30] sm:$0xff]  ;;  %v629_v58 = vld [vmem:[%s1557_s7 + $0xa8] sm:$0xff] }
  0x61   :  { %493 = vmatpush2.msra.mxu0 %v338_v60  ;;  %564 = vmatpush2.msra.mxu1 %v402_v61  ;;  %v613_v59 = vld [vmem:[%s1557_s7 + $0x28] sm:$0xff]  ;;  %v628_v60 = vld [vmem:[%s1557_s7 + $0xa0] sm:$0xff] }
  0x62   :  { %494 = vmatprep.subr.mxu0 %v337_v62  ;;  %565 = vmatprep.subr.mxu1 %v401_v63  ;;  %v612_v61 = vld [vmem:[%s1557_s7 + $0x20] sm:$0xff]  ;;  %v627_v62 = vld [vmem:[%s1557_s7 + $0x98] sm:$0xff] }
  0x63   :  { %495 = vmatpush2.msra.mxu0 %v336_v0  ;;  %566 = vmatpush2.msra.mxu1 %v400_v1  ;;  %v611_v63 = vld [vmem:[%s1557_s7 + $0x18] sm:$0xff]  ;;  %v626_v0 = vld [vmem:[%s1557_s7 + $0x90] sm:$0xff] }
  0x64   :  { %734 = vmatprep.subr.mxu0 %v639_v2  ;;  %v610_v1 = vld [vmem:[%s1557_s7 + $0x10] sm:$0xff]  ;;  %v625_v2 = vld [vmem:[%s1557_s7 + $0x88] sm:$0xff]  ;;  %s794_s7 = smov [#allocation2]  }
  0x65   :  { %s725_s10 = sshll.u32 %s794_s7, 4  ;;  %s726_s10 = int_to_ptr.vmem [resolvable:$true] %s725_s10 }
  0x66   :  { %s771_s11 = scalar_lea.vmem %s726_s10, 32  ;;  %p776_p1 = scmp.lt.s32.totalorder %s726_s10, %s726_s10 }
  0x67   :  { %p772_p0 = scmp.ne.s32.totalorder %s726_s10, %s771_s11  ;;  %p777_p2 = scmp.lt.s32.totalorder %s771_s11, %s771_s11 }
  0x69   :  { %p778_p3 = por %p777_p2, %p776_p1 }
  0x6b   :  { %p779_p4 = pnand %p778_p3, %p772_p0 }
  0xe3   :  { %v164_v17 = vpop.f32.mrf.mxu0  ;;  %v235_v18 = vpop.f32.mrf.mxu1 }
  0xe4   :  { %v262_v19 = vmul.f32 %v245_v11, %v164_v17  ;;  %v264_v20 = vmul.f32 %v253_v12, %v235_v18 }
  0xe5   :  { %v166_v23 = vpop.f32.mrf.mxu0  ;;  %v237_v24 = vpop.f32.mrf.mxu1 }
  0xe6   :  { %v288_v25 = vadd.f32 %v271_v13, %v262_v19  ;;  %v290_v26 = vadd.f32 %v279_v14, %v264_v20  ;;  %v263_v27 = vmul.f32 %v249_v15, %v166_v23  ;;  %v265_v28 = vmul.f32 %v257_v16, %v237_v24 }
  0xe7   :  { %v593_v14 = vrot.slane %v588_v9, %v1427_v5  ;;  %v583_v15 = vrot.slane %v574_v7, %v1432_v8  ;;  %v597_v20 = vrot.slane %v588_v9, %v1432_v8 }
  0xe8   :  { %v289_v29 = vadd.f32 %v275_v21, %v263_v27  ;;  %v291_v30 = vadd.f32 %v283_v22, %v265_v28  ;;  %v296_v31 = vmul.f32 0.2, %v288_v25  ;;  %v298_v32 = vmul.f32 0.2, %v290_v26  ;;  %v733_v28 = vld [vmem:[%s1558_s8] ss:$0 sm:$0xff] }
  0xe9   :  { %vm292_vm0 = vcmp.gt.f32.partialorder %v288_v25, 0.0  ;;  %vm294_vm1 = vcmp.gt.f32.partialorder %v290_v26, 0.0 }
  0xea   :  { %vm293_vm2 = vcmp.gt.f32.partialorder %v289_v29, 0.0  ;;  %v297_v33 = vmul.f32 0.2, %v289_v29  ;;  %vm295_vm3 = vcmp.gt.f32.partialorder %v291_v30, 0.0  ;;  %v299_v34 = vmul.f32 0.2, %v291_v30 }
  0xeb   :  { %v300_v38 = vsel %vm292_vm0, %v288_v25, %v296_v31  ;;  %v302_v39 = vsel %vm294_vm1, %v290_v26, %v298_v32 }
  0xec   :  { %v301_v35 = vsel %vm293_vm2, %v289_v29, %v297_v33  ;;  %v303_v36 = vsel %vm295_vm3, %v291_v30, %v299_v34 }
  0xed   :  { %496 = vmatprep.mubr.f32.mxu0 %v301_v35  ;;  %567 = vmatprep.mubr.f32.mxu1 %v303_v36 }
  0xee   :  { %497 = vmatmul.mubr.f32.vlgmr.msra.gmra.mxu0 %v300_v38  ;;  %568 = vmatmul.mubr.f32.vlgmr.msra.gmra.mxu1 %v302_v39 }
  0xef   :  { %735 = vmatpush3.msra.mxu0 %v623_v37 }
  0xf0   :  { %736 = vmatprep.subr.mxu0 %v638_v40 }
  0xf1   :  { %737 = vmatpush3.msra.mxu0 %v622_v41 }
  0xf2   :  { %738 = vmatprep.subr.mxu0 %v637_v42 }
  0xf3   :  { %739 = vmatpush3.msra.mxu0 %v621_v43 }
  0xf4   :  { %740 = vmatprep.subr.mxu0 %v636_v44 }
  0xf5   :  { %741 = vmatpush3.msra.mxu0 %v620_v45 }
  0xf6   :  { %742 = vmatprep.subr.mxu0 %v635_v46 }
  0xf7   :  { %743 = vmatpush3.msra.mxu0 %v619_v47 }
  0xf8   :  { %744 = vmatprep.subr.mxu0 %v634_v48 }
  0xf9   :  { %745 = vmatpush3.msra.mxu0 %v618_v49 }
  0xfa   :  { %746 = vmatprep.subr.mxu0 %v633_v50 }
  0xfb   :  { %747 = vmatpush3.msra.mxu0 %v617_v51 }
  0xfc   :  { %748 = vmatprep.subr.mxu0 %v632_v52 }
  0xfd   :  { %749 = vmatpush3.msra.mxu0 %v616_v53 }
  0xfe   :  { %750 = vmatprep.subr.mxu0 %v631_v54 }
  0xff   :  { %751 = vmatpush3.msra.mxu0 %v615_v55 }
 0x100   :  { %752 = vmatprep.subr.mxu0 %v630_v56 }
 0x101   :  { %753 = vmatpush3.msra.mxu0 %v614_v57 }
 0x102   :  { %754 = vmatprep.subr.mxu0 %v629_v58 }
 0x103   :  { %755 = vmatpush3.msra.mxu0 %v613_v59 }
 0x104   :  { %756 = vmatprep.subr.mxu0 %v628_v60 }
 0x105   :  { %757 = vmatpush3.msra.mxu0 %v612_v61 }
 0x106   :  { %758 = vmatprep.subr.mxu0 %v627_v62 }
 0x107   :  { %759 = vmatpush3.msra.mxu0 %v611_v63 }
 0x108   :  { %760 = vmatprep.subr.mxu0 %v626_v0 }
 0x109   :  { %761 = vmatpush3.msra.mxu0 %v610_v1 }
 0x10a   :  { %762 = vmatprep.subr.mxu0 %v625_v2 }
 0x10b   :  { %763 = vmatpush3.msra.mxu0 %v609_v3 }
 0x10c   :  { %764 = vmatprep.subr.mxu0 %v624_v4 }
 0x10d   :  { %765 = vmatpush3.msra.mxu0 %v608_v6 }
 0x1ae   :  { %v498_v11 = vpop.f32.mrf.mxu0  ;;  %v569_v12 = vpop.f32.mrf.mxu1 }
 0x1af   :  { %v570_v13 = vadd.f32 %v569_v12, %v498_v11 }
 0x1b0   :  { %v500_v16 = vpop.f32.mrf.mxu0  ;;  %v571_v17 = vpop.f32.mrf.mxu1 }
 0x1b1   :  { %v586_v18 = vmul.f32 %v579_v10, %v570_v13  ;;  %v572_v19 = vadd.f32 %v571_v17, %v500_v16 }
 0x1b3   :  { %v600_v21 = vadd.f32 %v593_v14, %v586_v18  ;;  %v587_v22 = vmul.f32 %v583_v15, %v572_v19 }
 0x1b5   :  { %v601_v23 = vadd.f32 %v597_v20, %v587_v22  ;;  %v604_v24 = vmul.f32 0.2, %v600_v21  ;;  %vm602_vm5 = vcmp.gt.f32.partialorder %v600_v21, 0.0 }
 0x1b7   :  { %vm603_vm4 = vcmp.gt.f32.partialorder %v601_v23, 0.0  ;;  %v605_v25 = vmul.f32 0.2, %v601_v23  ;;  %v606_v27 = vsel %vm602_vm5, %v600_v21, %v604_v24 }
 0x1b9   :  { %v607_v26 = vsel %vm603_vm4, %v601_v23, %v605_v25 }
 0x1ba   :  { %711 = vmatprep.mubr.f32.mxu0 %v607_v26 }
 0x1bb   :  { %712 = vmatmul.mubr.f32.vlgmr.msra.gmra.mxu0 %v606_v27 }
 0x27b   :  { %v766_v5 = vpop.f32.mrf.mxu0 }
 0x27d   :  { %v767_v29 = vpop.f32.mrf.mxu0 }
 0x27e   :  { %v768_v8 = vadd.f32 %v767_v29, %v766_v5 }
 0x280   :  { %v714_v30 = vadd.f32 %v768_v8, %v733_v28 }
 0x282   :  { %718 = vst.msk [vmem:[#allocation2] sm:$0x3] %vm717_vm6, %v714_v30 }
 0x283   :  { %782 = shalt.err (!%p779_p4)
}
 0x284   :  { %728 = dma.vmem_to_hbm [thread:$0]  %s726_s10, 32, %s1559_s9, [#allocation3]  }
 0x285   :  { %791 = dma.done.wait [#allocation3], 32  }
 0x286   :  { %792 = vsyncadd [#allocation3], 4294967264 }
 0x287   :  { %732 = vsyncpa [#allocation3], 1 }

</bundles_post_ra>
